<compile_context>
chip_gen: v6e
topology: v6e:2x2x1
jax: 0.10.0
libtpu: 0.0.40
codegen_flags: <defaults>
</compile_context>

<pallas_src>
import functools

import jax
import jax.numpy as jnp
from jax.experimental import pallas as pl
from jax.experimental.pallas import tpu as pltpu

EPS = 1e-5


# ------------------------------ Pallas kernel -------------------------------

def _dw_conv3x3(pad_ref, t, w3, bias, *, H, W, C):
    """Depthwise 3x3 conv, padding=1, on t:(H,W,C); w3:(3,3,C); bias:(1,C).

    The 1-pixel zero halo is built in the VMEM scratch `pad_ref` (no HBM pad).
    Only 3 sublane-shifted loads (one per kw); the kh taps are free slices on
    the untiled H axis.
    """
    zrow = jnp.zeros((1, W + 2, C), jnp.float32)
    pad_ref[0:1, :, 0:C] = zrow
    pad_ref[H + 1:H + 2, :, 0:C] = zrow
    zcol = jnp.zeros((H, 1, C), jnp.float32)
    pad_ref[1:H + 1, 0:1, 0:C] = zcol
    pad_ref[1:H + 1, W + 1:W + 2, 0:C] = zcol
    pad_ref[1:H + 1, 1:W + 1, 0:C] = t

    # accumulator initialized with the (BN-folded) bias -> saves a full add pass
    acc = jnp.broadcast_to(bias, (H, W, C)).astype(jnp.float32)
    for kw in range(3):
        col = pad_ref[0:H + 2, kw:kw + W, 0:C]        # (H+2, W, C), one shifted load
        for kh in range(3):
            acc = acc + col[kh:kh + H] * w3[kh, kw]
    return acc


def _eblock_kernel(x_ref, w1_ref, b1_ref, wd1_ref, bd1_ref,
                   w2_ref, b2_ref, wd2_ref, bd2_ref,
                   wr_ref, br_ref, o_ref, pad_ref, *, H, W, relu_in):
    Cin = x_ref.shape[-1]
    C0 = w1_ref.shape[1]
    C1 = w2_ref.shape[1]
    Ho, Wo = H // 2, W // 2
    NEG = jnp.float32(jnp.finfo(jnp.float32).min)

    # ---- residual branch: 1x1 conv, stride 2 (+ folded BN) -----------------
    # stride-2 column taps directly on the input ref (sublane-strided load);
    # stride-2 rows via a reshape/slice on the untiled H axis (free).
    x_cols = x_ref[:, pl.ds(0, Wo, stride=2), :]            # cols 0,2,... (H, Wo, Cin)
    x_s2 = x_cols.reshape(Ho, 2, Wo, Cin)[:, 0]             # rows 0,2,... (Ho, Wo, Cin)
    res = jnp.dot(x_s2.reshape(Ho * Wo, Cin).astype(jnp.bfloat16), wr_ref[...],
                  preferred_element_type=jnp.float32) + br_ref[...]
    res = res.reshape(Ho, Wo, C1)

    # ---- main branch --------------------------------------------------------
    x = x_ref[...]                                          # (H, W, Cin) f32
    xa = x.reshape(H * W, Cin)                              # W % 8 == 0 -> no-op reshape
    if relu_in:                                             # EBlock's leading ReLU
        xa = jnp.maximum(xa, 0.0)

    # sep_conv1.conv_1x1 (+BN): bf16 MXU matmul, f32 accumulation
    t = jnp.dot(xa.astype(jnp.bfloat16), w1_ref[...],
                preferred_element_type=jnp.float32) + b1_ref[...]
    # sep_conv1.conv_3x3 depthwise (+BN)
    t = _dw_conv3x3(pad_ref, t.reshape(H, W, C0), wd1_ref[...], bd1_ref[...],
                    H=H, W=W, C=C0)
    # relu -> sep_conv2.conv_1x1 (+BN)
    t = jnp.maximum(t, 0.0)
    t = jnp.dot(t.reshape(H * W, C0).astype(jnp.bfloat16), w2_ref[...],
                preferred_element_type=jnp.float32) + b2_ref[...]
    # sep_conv2.conv_3x3 depthwise (+BN)
    y = _dw_conv3x3(pad_ref, t.reshape(H, W, C1), wd2_ref[...], bd2_ref[...],
                    H=H, W=W, C=C1)

    # ---- 3x3 / stride-2 / pad-1 maxpool, evaluated on the output grid ------
    # window rows of output row i are {2i-1, 2i, 2i+1} (row-parity split on H)
    y4 = y.reshape(Ho, 2, W, C1)
    r_even = y4[:, 0]                                       # rows 2i   (Ho, W, C1)
    r_odd = y4[:, 1]                                        # rows 2i+1
    pad_ref[0:1, 0:W, 0:C1] = jnp.full((1, W, C1), NEG, jnp.float32)
    pad_ref[1:Ho + 1, 0:W, 0:C1] = r_odd
    r_up = pad_ref[0:Ho, 0:W, 0:C1]                         # rows 2i-1 (pad at i=0)
    row_max = jnp.maximum(jnp.maximum(r_even, r_odd), r_up)    # (Ho, W, C1)
    # window cols of output col j are {2j-1, 2j, 2j+1}: left-pad one column and
    # take three stride-2 taps directly on the output grid.
    pad_ref[0:Ho, 0:1, 0:C1] = jnp.full((Ho, 1, C1), NEG, jnp.float32)
    pad_ref[0:Ho, 1:W + 1, 0:C1] = row_max
    pooled = pad_ref[0:Ho, pl.ds(0, Wo, stride=2), 0:C1]
    pooled = jnp.maximum(pooled, pad_ref[0:Ho, pl.ds(1, Wo, stride=2), 0:C1])
    pooled = jnp.maximum(pooled, pad_ref[0:Ho, pl.ds(2, Wo, stride=2), 0:C1])

    o_ref[...] = pooled + res


# ------------------------------ host wrapper --------------------------------

def _fold_bn(gamma, beta, mean, var):
    scale = gamma / jnp.sqrt(var + EPS)
    shift = beta - mean * scale
    return scale, shift


def _rep_spec(shape):
    nd = len(shape)
    return pl.BlockSpec(shape, lambda n: (0,) * nd)


@functools.partial(jax.jit, static_argnames=("init",))
def eblock_pallas(x_nchw, p, init=False):
    N, Cin, H, W = x_nchw.shape
    assert H % 2 == 0, "H must be even"
    assert W % 16 == 0, "W must be a multiple of 16 (sublane-aligned stride-2 layout)"

    # Fold BN (in f32) into per-channel scale/bias, then cast matmul weights to bf16.
    s1, t1 = _fold_bn(*p['bn1'])
    w1 = (p['w1'][:, :, 0, 0].T * s1[None, :]).astype(jnp.bfloat16)          # (Cin, C0)
    b1 = (p['b1'] * s1 + t1).reshape(1, -1)

    s2, t2 = _fold_bn(*p['bn_d1'])
    wd1 = jnp.transpose(p['wd1'][:, 0, :, :], (1, 2, 0)) * s2[None, None, :]  # (3,3,C0)
    bd1 = (p['bd1'] * s2 + t2).reshape(1, -1)

    s3, t3 = _fold_bn(*p['bn2'])
    w2 = (p['w2'][:, :, 0, 0].T * s3[None, :]).astype(jnp.bfloat16)          # (C0, C1)
    b2 = (p['b2'] * s3 + t3).reshape(1, -1)

    s4, t4 = _fold_bn(*p['bn_d2'])
    wd2 = jnp.transpose(p['wd2'][:, 0, :, :], (1, 2, 0)) * s4[None, None, :]  # (3,3,C1)
    bd2 = (p['bd2'] * s4 + t4).reshape(1, -1)

    sr, tr = _fold_bn(*p['bn_r'])
    wr = (p['wr'][:, :, 0, 0].T * sr[None, :]).astype(jnp.bfloat16)          # (Cin, C1)
    br = (p['br'] * sr + tr).reshape(1, -1)

    C0, C1 = w1.shape[1], w2.shape[1]
    Ho, Wo = H // 2, W // 2
    Cmax = max(Cin, C0, C1)

    x_nhwc = jnp.transpose(x_nchw, (0, 2, 3, 1))            # NCHW -> NHWC

    kernel = functools.partial(_eblock_kernel, H=H, W=W, relu_in=(not init))

    out_nhwc = pl.pallas_call(
        kernel,
        out_shape=jax.ShapeDtypeStruct((N, Ho, Wo, C1), jnp.float32),
        grid=(N,),
        in_specs=[
            pl.BlockSpec((None, H, W, Cin), lambda n: (n, 0, 0, 0)),
            _rep_spec(w1.shape), _rep_spec(b1.shape),
            _rep_spec(wd1.shape), _rep_spec(bd1.shape),
            _rep_spec(w2.shape), _rep_spec(b2.shape),
            _rep_spec(wd2.shape), _rep_spec(bd2.shape),
            _rep_spec(wr.shape), _rep_spec(br.shape),
        ],
        out_specs=pl.BlockSpec((None, Ho, Wo, C1), lambda n: (n, 0, 0, 0)),
        scratch_shapes=[pltpu.VMEM((H + 2, W + 2, Cmax), jnp.float32)],
        compiler_params=pltpu.CompilerParams(
            dimension_semantics=("parallel",),
            vmem_limit_bytes=32 * 1024 * 1024),
    )(x_nhwc, w1, b1, wd1, bd1, w2, b2, wd2, bd2, wr, br)

    return jnp.transpose(out_nhwc, (0, 3, 1, 2))            # NHWC -> NCHW


# ------------------------------- pure-JAX ref --------------------------------

def _conv_ref(x, w, b, stride=1, pad=0, groups=1):
    y = jax.lax.conv_general_dilated(
        x, w, (stride, stride), [(pad, pad), (pad, pad)],
        dimension_numbers=('NCHW', 'OIHW', 'NCHW'),
        feature_group_count=groups)
    return y + b[None, :, None, None]


def _bn_ref(x, gamma, beta, mean, var):
    s = gamma / jnp.sqrt(var + EPS)
    return (x - mean[None, :, None, None]) * s[None, :, None, None] + beta[None, :, None, None]


def eblock_ref(x, p, init=False):
    xo = x if init else jax.nn.relu(x)
    xo = _bn_ref(_conv_ref(xo, p['w1'], p['b1']), *p['bn1'])
    C0 = p['w1'].shape[0]
    xo = _bn_ref(_conv_ref(xo, p['wd1'], p['bd1'], pad=1, groups=C0), *p['bn_d1'])
    xo = jax.nn.relu(xo)
    xo = _bn_ref(_conv_ref(xo, p['w2'], p['b2']), *p['bn2'])
    C1 = p['w2'].shape[0]
    xo = _bn_ref(_conv_ref(xo, p['wd2'], p['bd2'], pad=1, groups=C1), *p['bn_d2'])
    xo = jax.lax.reduce_window(xo, -jnp.inf, jax.lax.max,
                               (1, 1, 3, 3), (1, 1, 2, 2),
                               [(0, 0), (0, 0), (1, 1), (1, 1)])
    xr = _bn_ref(_conv_ref(x, p['wr'], p['br'], stride=2), *p['bn_r'])
    return xo + xr


# --------------------------------- params -----------------------------------

def init_conv(key, cout, cin_per_group, kh, kw):
    k1, k2 = jax.random.split(key)
    bound = 1.0 / jnp.sqrt(float(cin_per_group * kh * kw))
    w = jax.random.uniform(k1, (cout, cin_per_group, kh, kw), jnp.float32, -bound, bound)
    b = jax.random.uniform(k2, (cout,), jnp.float32, -bound, bound)
    return w, b


def init_bn(key, c):
    k1, k2, k3, k4 = jax.random.split(key, 4)
    gamma = jax.random.uniform(k1, (c,), jnp.float32, 0.5, 1.5)
    beta = jax.random.normal(k2, (c,), jnp.float32) * 0.1
    mean = jax.random.normal(k3, (c,), jnp.float32) * 0.1
    var = jax.random.uniform(k4, (c,), jnp.float32, 0.5, 1.5)
    return gamma, beta, mean, var


if __name__ == "__main__":
    key = jax.random.PRNGKey(0)
    keys = jax.random.split(key, 11)
    in_channels, out_channels = 4, 8
    N, H, W = 2, 16, 16

    p = {}
    p['w1'], p['b1'] = init_conv(keys[0], out_channels, in_channels, 1, 1)
    p['bn1'] = init_bn(keys[1], out_channels)
    p['wd1'], p['bd1'] = init_conv(keys[2], out_channels, 1, 3, 3)
    p['bn_d1'] = init_bn(keys[3], out_channels)
    p['w2'], p['b2'] = init_conv(keys[4], out_channels, out_channels, 1, 1)
    p['bn2'] = init_bn(keys[5], out_channels)
    p['wd2'], p['bd2'] = init_conv(keys[6], out_channels, 1, 3, 3)
    p['bn_d2'] = init_bn(keys[7], out_channels)
    p['wr'], p['br'] = init_conv(keys[8], out_channels, in_channels, 1, 1)
    p['bn_r'] = init_bn(keys[9], out_channels)

    x = jax.random.normal(keys[10], (N, in_channels, H, W), jnp.float32)

    out = eblock_pallas(x, p, init=False)
    out = jax.block_until_ready(out)

    ref = eblock_ref(x, p, init=False)
    assert out.shape == ref.shape == (N, out_channels, H // 2, W // 2)
    err = float(jnp.max(jnp.abs(out - ref)))
    # 1x1-conv inputs/weights are bf16 (f32 accumulation), reference is pure f32,
    # so allow ~1% relative drift of the activation scale.
    assert jnp.allclose(out, ref, rtol=5e-2, atol=1e-1), err

    print("KERNEL_OK")
</pallas_src>

<mosaic_0001>
module attributes {stable_mosaic.version = 11 : i64} {
  func.func @_eblock_kernel(%arg0: i32, %arg1: memref<1x16x16x4xf32, #tpu.memory_space<vmem>>, %arg2: memref<4x8xbf16, #tpu.memory_space<vmem>>, %arg3: memref<1x8xf32, #tpu.memory_space<vmem>>, %arg4: memref<3x3x8xf32, #tpu.memory_space<vmem>>, %arg5: memref<1x8xf32, #tpu.memory_space<vmem>>, %arg6: memref<8x8xbf16, #tpu.memory_space<vmem>>, %arg7: memref<1x8xf32, #tpu.memory_space<vmem>>, %arg8: memref<3x3x8xf32, #tpu.memory_space<vmem>>, %arg9: memref<1x8xf32, #tpu.memory_space<vmem>>, %arg10: memref<4x8xbf16, #tpu.memory_space<vmem>>, %arg11: memref<1x8xf32, #tpu.memory_space<vmem>>, %arg12: memref<1x8x8x8xf32, #tpu.memory_space<vmem>>, %arg13: memref<18x18x8xf32, #tpu.memory_space<vmem>>) attributes {dimension_semantics = [#tpu.dimension_semantics<parallel>], iteration_bounds = array<i64: 2>, scalar_prefetch = 0 : i64, scratch_operands = 1 : i64, tpu.core_type = #tpu.core_type<tc>, window_params = [{transform_indices = @transform_0, window_bounds = array<i64: 1, 16, 16, 4>}, {pipeline_mode = #tpu.pipeline_mode<synchronous>, transform_indices = @transform_1, window_bounds = array<i64: 4, 8>}, {pipeline_mode = #tpu.pipeline_mode<synchronous>, transform_indices = @transform_2, window_bounds = array<i64: 1, 8>}, {pipeline_mode = #tpu.pipeline_mode<synchronous>, transform_indices = @transform_3, window_bounds = array<i64: 3, 3, 8>}, {pipeline_mode = #tpu.pipeline_mode<synchronous>, transform_indices = @transform_4, window_bounds = array<i64: 1, 8>}, {pipeline_mode = #tpu.pipeline_mode<synchronous>, transform_indices = @transform_5, window_bounds = array<i64: 8, 8>}, {pipeline_mode = #tpu.pipeline_mode<synchronous>, transform_indices = @transform_6, window_bounds = array<i64: 1, 8>}, {pipeline_mode = #tpu.pipeline_mode<synchronous>, transform_indices = @transform_7, window_bounds = array<i64: 3, 3, 8>}, {pipeline_mode = #tpu.pipeline_mode<synchronous>, transform_indices = @transform_8, window_bounds = array<i64: 1, 8>}, {pipeline_mode = #tpu.pipeline_mode<synchronous>, transform_indices = @transform_9, window_bounds = array<i64: 4, 8>}, {pipeline_mode = #tpu.pipeline_mode<synchronous>, transform_indices = @transform_10, window_bounds = array<i64: 1, 8>}, {transform_indices = @transform_11, window_bounds = array<i64: 1, 8, 8, 8>}]} {
    %c0 = arith.constant 0 : index
    %c0_0 = arith.constant 0 : index
    %c0_1 = arith.constant 0 : index
    %c0_2 = arith.constant 0 : index
    %0 = tpu.strided_load %arg1[%c0, %c0_0, %c0_1, %c0_2] {strides = array<i32: 1, 1, 2, 1>} : memref<1x16x16x4xf32, #tpu.memory_space<vmem>>, vector<1x16x8x4xf32>
    %1 = vector.shape_cast %0 : vector<1x16x8x4xf32> to vector<16x8x4xf32>
    %2 = vector.shape_cast %1 : vector<16x8x4xf32> to vector<8x2x8x4xf32>
    %3 = vector.extract_strided_slice %2 {offsets = [0, 0, 0, 0], sizes = [8, 1, 8, 4], strides = [1, 1, 1, 1]} : vector<8x2x8x4xf32> to vector<8x1x8x4xf32>
    %4 = vector.shape_cast %3 : vector<8x1x8x4xf32> to vector<8x8x4xf32>
    %5 = vector.shape_cast %4 : vector<8x8x4xf32> to vector<64x4xf32>
    %6 = arith.truncf %5 : vector<64x4xf32> to vector<64x4xbf16>
    %c0_3 = arith.constant 0 : index
    %c0_4 = arith.constant 0 : index
    %7 = vector.load %arg10[%c0_3, %c0_4] : memref<4x8xbf16, #tpu.memory_space<vmem>>, vector<4x8xbf16>
    %cst = arith.constant dense<0.000000e+00> : vector<64x8xf32>
    %8 = tpu.matmul %6, %7, %cst {dimension_numbers = #tpu.dot_dimension_numbers<[1], [0], [0], [1], [0, 0, 1, 1], [], []>} : vector<64x4xbf16>, vector<4x8xbf16>, vector<64x8xf32> -> vector<64x8xf32>
    %c0_5 = arith.constant 0 : index
    %c0_6 = arith.constant 0 : index
    %9 = vector.load %arg11[%c0_5, %c0_6] : memref<1x8xf32, #tpu.memory_space<vmem>>, vector<1x8xf32>
    %10 = vector.broadcast %9 : vector<1x8xf32> to vector<64x8xf32>
    %11 = arith.addf %8, %10 : vector<64x8xf32>
    %12 = vector.shape_cast %11 : vector<64x8xf32> to vector<8x8x8xf32>
    %c0_7 = arith.constant 0 : index
    %c0_8 = arith.constant 0 : index
    %c0_9 = arith.constant 0 : index
    %c0_10 = arith.constant 0 : index
    %13 = vector.load %arg1[%c0_7, %c0_8, %c0_9, %c0_10] : memref<1x16x16x4xf32, #tpu.memory_space<vmem>>, vector<1x16x16x4xf32>
    %14 = vector.shape_cast %13 : vector<1x16x16x4xf32> to vector<16x16x4xf32>
    %15 = vector.shape_cast %14 : vector<16x16x4xf32> to vector<256x4xf32>
    %cst_11 = arith.constant 0.000000e+00 : f32
    %16 = vector.broadcast %cst_11 : f32 to vector<256x4xf32>
    %17 = arith.maximumf %15, %16 : vector<256x4xf32>
    %18 = arith.truncf %17 : vector<256x4xf32> to vector<256x4xbf16>
    %c0_12 = arith.constant 0 : index
    %c0_13 = arith.constant 0 : index
    %19 = vector.load %arg2[%c0_12, %c0_13] : memref<4x8xbf16, #tpu.memory_space<vmem>>, vector<4x8xbf16>
    %cst_14 = arith.constant dense<0.000000e+00> : vector<256x8xf32>
    %20 = tpu.matmul %18, %19, %cst_14 {dimension_numbers = #tpu.dot_dimension_numbers<[1], [0], [0], [1], [0, 0, 1, 1], [], []>} : vector<256x4xbf16>, vector<4x8xbf16>, vector<256x8xf32> -> vector<256x8xf32>
    %c0_15 = arith.constant 0 : index
    %c0_16 = arith.constant 0 : index
    %21 = vector.load %arg3[%c0_15, %c0_16] : memref<1x8xf32, #tpu.memory_space<vmem>>, vector<1x8xf32>
    %22 = vector.broadcast %21 : vector<1x8xf32> to vector<256x8xf32>
    %23 = arith.addf %20, %22 : vector<256x8xf32>
    %24 = vector.shape_cast %23 : vector<256x8xf32> to vector<16x16x8xf32>
    %c0_17 = arith.constant 0 : index
    %c0_18 = arith.constant 0 : index
    %c0_19 = arith.constant 0 : index
    %25 = vector.load %arg4[%c0_17, %c0_18, %c0_19] : memref<3x3x8xf32, #tpu.memory_space<vmem>>, vector<3x3x8xf32>
    %c0_20 = arith.constant 0 : index
    %c0_21 = arith.constant 0 : index
    %26 = vector.load %arg5[%c0_20, %c0_21] : memref<1x8xf32, #tpu.memory_space<vmem>>, vector<1x8xf32>
    %cst_22 = arith.constant 0.000000e+00 : f32
    %27 = vector.broadcast %cst_22 : f32 to vector<1x18x8xf32>
    %c0_23 = arith.constant 0 : index
    %c0_24 = arith.constant 0 : index
    %c0_25 = arith.constant 0 : index
    %28 = vector.load %arg13[%c0_23, %c0_24, %c0_25] : memref<18x18x8xf32, #tpu.memory_space<vmem>>, vector<1x18x8xf32>
    tpu.vector_store %arg13[%c0_23, %c0_24, %c0_25], %27 {strides = array<i32>} : memref<18x18x8xf32, #tpu.memory_space<vmem>>, vector<1x18x8xf32>,
    %c17 = arith.constant 17 : index
    %c0_26 = arith.constant 0 : index
    %c0_27 = arith.constant 0 : index
    %29 = vector.load %arg13[%c17, %c0_26, %c0_27] : memref<18x18x8xf32, #tpu.memory_space<vmem>>, vector<1x18x8xf32>
    tpu.vector_store %arg13[%c17, %c0_26, %c0_27], %27 {strides = array<i32>} : memref<18x18x8xf32, #tpu.memory_space<vmem>>, vector<1x18x8xf32>,
    %cst_28 = arith.constant 0.000000e+00 : f32
    %30 = vector.broadcast %cst_28 : f32 to vector<16x1x8xf32>
    %c1 = arith.constant 1 : index
    %c0_29 = arith.constant 0 : index
    %c0_30 = arith.constant 0 : index
    %31 = vector.load %arg13[%c1, %c0_29, %c0_30] : memref<18x18x8xf32, #tpu.memory_space<vmem>>, vector<16x1x8xf32>
    tpu.vector_store %arg13[%c1, %c0_29, %c0_30], %30 {strides = array<i32>} : memref<18x18x8xf32, #tpu.memory_space<vmem>>, vector<16x1x8xf32>,
    %c1_31 = arith.constant 1 : index
    %c17_32 = arith.constant 17 : index
    %c0_33 = arith.constant 0 : index
    %32 = vector.load %arg13[%c1_31, %c17_32, %c0_33] : memref<18x18x8xf32, #tpu.memory_space<vmem>>, vector<16x1x8xf32>
    tpu.vector_store %arg13[%c1_31, %c17_32, %c0_33], %30 {strides = array<i32>} : memref<18x18x8xf32, #tpu.memory_space<vmem>>, vector<16x1x8xf32>,
    %c1_34 = arith.constant 1 : index
    %c1_35 = arith.constant 1 : index
    %c0_36 = arith.constant 0 : index
    %33 = vector.load %arg13[%c1_34, %c1_35, %c0_36] : memref<18x18x8xf32, #tpu.memory_space<vmem>>, vector<16x16x8xf32>
    tpu.vector_store %arg13[%c1_34, %c1_35, %c0_36], %24 {strides = array<i32>} : memref<18x18x8xf32, #tpu.memory_space<vmem>>, vector<16x16x8xf32>,
    %34 = vector.shape_cast %26 : vector<1x8xf32> to vector<1x1x8xf32>
    %35 = vector.broadcast %34 : vector<1x1x8xf32> to vector<16x16x8xf32>
    %c0_37 = arith.constant 0 : index
    %c0_38 = arith.constant 0 : index
    %c0_39 = arith.constant 0 : index
    %36 = vector.load %arg13[%c0_37, %c0_38, %c0_39] : memref<18x18x8xf32, #tpu.memory_space<vmem>>, vector<18x16x8xf32>
    %37 = vector.extract_strided_slice %36 {offsets = [0, 0, 0], sizes = [16, 16, 8], strides = [1, 1, 1]} : vector<18x16x8xf32> to vector<16x16x8xf32>
    %38 = vector.extract_strided_slice %25 {offsets = [0, 0, 0], sizes = [1, 1, 8], strides = [1, 1, 1]} : vector<3x3x8xf32> to vector<1x1x8xf32>
    %39 = vector.shape_cast %38 : vector<1x1x8xf32> to vector<8xf32>
    %40 = vector.shape_cast %39 : vector<8xf32> to vector<1x1x8xf32>
    %41 = vector.broadcast %40 : vector<1x1x8xf32> to vector<16x16x8xf32>
    %42 = arith.mulf %37, %41 : vector<16x16x8xf32>
    %43 = arith.addf %35, %42 : vector<16x16x8xf32>
    %44 = vector.extract_strided_slice %36 {offsets = [1, 0, 0], sizes = [16, 16, 8], strides = [1, 1, 1]} : vector<18x16x8xf32> to vector<16x16x8xf32>
    %45 = vector.extract_strided_slice %25 {offsets = [1, 0, 0], sizes = [1, 1, 8], strides = [1, 1, 1]} : vector<3x3x8xf32> to vector<1x1x8xf32>
    %46 = vector.shape_cast %45 : vector<1x1x8xf32> to vector<8xf32>
    %47 = vector.shape_cast %46 : vector<8xf32> to vector<1x1x8xf32>
    %48 = vector.broadcast %47 : vector<1x1x8xf32> to vector<16x16x8xf32>
    %49 = arith.mulf %44, %48 : vector<16x16x8xf32>
    %50 = arith.addf %43, %49 : vector<16x16x8xf32>
    %51 = vector.extract_strided_slice %36 {offsets = [2, 0, 0], sizes = [16, 16, 8], strides = [1, 1, 1]} : vector<18x16x8xf32> to vector<16x16x8xf32>
    %52 = vector.extract_strided_slice %25 {offsets = [2, 0, 0], sizes = [1, 1, 8], strides = [1, 1, 1]} : vector<3x3x8xf32> to vector<1x1x8xf32>
    %53 = vector.shape_cast %52 : vector<1x1x8xf32> to vector<8xf32>
    %54 = vector.shape_cast %53 : vector<8xf32> to vector<1x1x8xf32>
    %55 = vector.broadcast %54 : vector<1x1x8xf32> to vector<16x16x8xf32>
    %56 = arith.mulf %51, %55 : vector<16x16x8xf32>
    %57 = arith.addf %50, %56 : vector<16x16x8xf32>
    %c0_40 = arith.constant 0 : index
    %c1_41 = arith.constant 1 : index
    %c0_42 = arith.constant 0 : index
    %58 = vector.load %arg13[%c0_40, %c1_41, %c0_42] : memref<18x18x8xf32, #tpu.memory_space<vmem>>, vector<18x16x8xf32>
    %59 = vector.extract_strided_slice %58 {offsets = [0, 0, 0], sizes = [16, 16, 8], strides = [1, 1, 1]} : vector<18x16x8xf32> to vector<16x16x8xf32>
    %60 = vector.extract_strided_slice %25 {offsets = [0, 1, 0], sizes = [1, 1, 8], strides = [1, 1, 1]} : vector<3x3x8xf32> to vector<1x1x8xf32>
    %61 = vector.shape_cast %60 : vector<1x1x8xf32> to vector<8xf32>
    %62 = vector.shape_cast %61 : vector<8xf32> to vector<1x1x8xf32>
    %63 = vector.broadcast %62 : vector<1x1x8xf32> to vector<16x16x8xf32>
    %64 = arith.mulf %59, %63 : vector<16x16x8xf32>
    %65 = arith.addf %57, %64 : vector<16x16x8xf32>
    %66 = vector.extract_strided_slice %58 {offsets = [1, 0, 0], sizes = [16, 16, 8], strides = [1, 1, 1]} : vector<18x16x8xf32> to vector<16x16x8xf32>
    %67 = vector.extract_strided_slice %25 {offsets = [1, 1, 0], sizes = [1, 1, 8], strides = [1, 1, 1]} : vector<3x3x8xf32> to vector<1x1x8xf32>
    %68 = vector.shape_cast %67 : vector<1x1x8xf32> to vector<8xf32>
    %69 = vector.shape_cast %68 : vector<8xf32> to vector<1x1x8xf32>
    %70 = vector.broadcast %69 : vector<1x1x8xf32> to vector<16x16x8xf32>
    %71 = arith.mulf %66, %70 : vector<16x16x8xf32>
    %72 = arith.addf %65, %71 : vector<16x16x8xf32>
    %73 = vector.extract_strided_slice %58 {offsets = [2, 0, 0], sizes = [16, 16, 8], strides = [1, 1, 1]} : vector<18x16x8xf32> to vector<16x16x8xf32>
    %74 = vector.extract_strided_slice %25 {offsets = [2, 1, 0], sizes = [1, 1, 8], strides = [1, 1, 1]} : vector<3x3x8xf32> to vector<1x1x8xf32>
    %75 = vector.shape_cast %74 : vector<1x1x8xf32> to vector<8xf32>
    %76 = vector.shape_cast %75 : vector<8xf32> to vector<1x1x8xf32>
    %77 = vector.broadcast %76 : vector<1x1x8xf32> to vector<16x16x8xf32>
    %78 = arith.mulf %73, %77 : vector<16x16x8xf32>
    %79 = arith.addf %72, %78 : vector<16x16x8xf32>
    %c0_43 = arith.constant 0 : index
    %c2 = arith.constant 2 : index
    %c0_44 = arith.constant 0 : index
    %80 = vector.load %arg13[%c0_43, %c2, %c0_44] : memref<18x18x8xf32, #tpu.memory_space<vmem>>, vector<18x16x8xf32>
    %81 = vector.extract_strided_slice %80 {offsets = [0, 0, 0], sizes = [16, 16, 8], strides = [1, 1, 1]} : vector<18x16x8xf32> to vector<16x16x8xf32>
    %82 = vector.extract_strided_slice %25 {offsets = [0, 2, 0], sizes = [1, 1, 8], strides = [1, 1, 1]} : vector<3x3x8xf32> to vector<1x1x8xf32>
    %83 = vector.shape_cast %82 : vector<1x1x8xf32> to vector<8xf32>
    %84 = vector.shape_cast %83 : vector<8xf32> to vector<1x1x8xf32>
    %85 = vector.broadcast %84 : vector<1x1x8xf32> to vector<16x16x8xf32>
    %86 = arith.mulf %81, %85 : vector<16x16x8xf32>
    %87 = arith.addf %79, %86 : vector<16x16x8xf32>
    %88 = vector.extract_strided_slice %80 {offsets = [1, 0, 0], sizes = [16, 16, 8], strides = [1, 1, 1]} : vector<18x16x8xf32> to vector<16x16x8xf32>
    %89 = vector.extract_strided_slice %25 {offsets = [1, 2, 0], sizes = [1, 1, 8], strides = [1, 1, 1]} : vector<3x3x8xf32> to vector<1x1x8xf32>
    %90 = vector.shape_cast %89 : vector<1x1x8xf32> to vector<8xf32>
    %91 = vector.shape_cast %90 : vector<8xf32> to vector<1x1x8xf32>
    %92 = vector.broadcast %91 : vector<1x1x8xf32> to vector<16x16x8xf32>
    %93 = arith.mulf %88, %92 : vector<16x16x8xf32>
    %94 = arith.addf %87, %93 : vector<16x16x8xf32>
    %95 = vector.extract_strided_slice %80 {offsets = [2, 0, 0], sizes = [16, 16, 8], strides = [1, 1, 1]} : vector<18x16x8xf32> to vector<16x16x8xf32>
    %96 = vector.extract_strided_slice %25 {offsets = [2, 2, 0], sizes = [1, 1, 8], strides = [1, 1, 1]} : vector<3x3x8xf32> to vector<1x1x8xf32>
    %97 = vector.shape_cast %96 : vector<1x1x8xf32> to vector<8xf32>
    %98 = vector.shape_cast %97 : vector<8xf32> to vector<1x1x8xf32>
    %99 = vector.broadcast %98 : vector<1x1x8xf32> to vector<16x16x8xf32>
    %100 = arith.mulf %95, %99 : vector<16x16x8xf32>
    %101 = arith.addf %94, %100 : vector<16x16x8xf32>
    %cst_45 = arith.constant 0.000000e+00 : f32
    %102 = vector.broadcast %cst_45 : f32 to vector<16x16x8xf32>
    %103 = arith.maximumf %101, %102 : vector<16x16x8xf32>
    %104 = vector.shape_cast %103 : vector<16x16x8xf32> to vector<256x8xf32>
    %105 = arith.truncf %104 : vector<256x8xf32> to vector<256x8xbf16>
    %c0_46 = arith.constant 0 : index
    %c0_47 = arith.constant 0 : index
    %106 = vector.load %arg6[%c0_46, %c0_47] : memref<8x8xbf16, #tpu.memory_space<vmem>>, vector<8x8xbf16>
    %cst_48 = arith.constant dense<0.000000e+00> : vector<256x8xf32>
    %107 = tpu.matmul %105, %106, %cst_48 {dimension_numbers = #tpu.dot_dimension_numbers<[1], [0], [0], [1], [0, 0, 1, 1], [], []>} : vector<256x8xbf16>, vector<8x8xbf16>, vector<256x8xf32> -> vector<256x8xf32>
    %c0_49 = arith.constant 0 : index
    %c0_50 = arith.constant 0 : index
    %108 = vector.load %arg7[%c0_49, %c0_50] : memref<1x8xf32, #tpu.memory_space<vmem>>, vector<1x8xf32>
    %109 = vector.broadcast %108 : vector<1x8xf32> to vector<256x8xf32>
    %110 = arith.addf %107, %109 : vector<256x8xf32>
    %111 = vector.shape_cast %110 : vector<256x8xf32> to vector<16x16x8xf32>
    %c0_51 = arith.constant 0 : index
    %c0_52 = arith.constant 0 : index
    %c0_53 = arith.constant 0 : index
    %112 = vector.load %arg8[%c0_51, %c0_52, %c0_53] : memref<3x3x8xf32, #tpu.memory_space<vmem>>, vector<3x3x8xf32>
    %c0_54 = arith.constant 0 : index
    %c0_55 = arith.constant 0 : index
    %113 = vector.load %arg9[%c0_54, %c0_55] : memref<1x8xf32, #tpu.memory_space<vmem>>, vector<1x8xf32>
    %cst_56 = arith.constant 0.000000e+00 : f32
    %114 = vector.broadcast %cst_56 : f32 to vector<1x18x8xf32>
    %c0_57 = arith.constant 0 : index
    %c0_58 = arith.constant 0 : index
    %c0_59 = arith.constant 0 : index
    %115 = vector.load %arg13[%c0_57, %c0_58, %c0_59] : memref<18x18x8xf32, #tpu.memory_space<vmem>>, vector<1x18x8xf32>
    tpu.vector_store %arg13[%c0_57, %c0_58, %c0_59], %114 {strides = array<i32>} : memref<18x18x8xf32, #tpu.memory_space<vmem>>, vector<1x18x8xf32>,
    %c17_60 = arith.constant 17 : index
    %c0_61 = arith.constant 0 : index
    %c0_62 = arith.constant 0 : index
    %116 = vector.load %arg13[%c17_60, %c0_61, %c0_62] : memref<18x18x8xf32, #tpu.memory_space<vmem>>, vector<1x18x8xf32>
    tpu.vector_store %arg13[%c17_60, %c0_61, %c0_62], %114 {strides = array<i32>} : memref<18x18x8xf32, #tpu.memory_space<vmem>>, vector<1x18x8xf32>,
    %cst_63 = arith.constant 0.000000e+00 : f32
    %117 = vector.broadcast %cst_63 : f32 to vector<16x1x8xf32>
    %c1_64 = arith.constant 1 : index
    %c0_65 = arith.constant 0 : index
    %c0_66 = arith.constant 0 : index
    %118 = vector.load %arg13[%c1_64, %c0_65, %c0_66] : memref<18x18x8xf32, #tpu.memory_space<vmem>>, vector<16x1x8xf32>
    tpu.vector_store %arg13[%c1_64, %c0_65, %c0_66], %117 {strides = array<i32>} : memref<18x18x8xf32, #tpu.memory_space<vmem>>, vector<16x1x8xf32>,
    %c1_67 = arith.constant 1 : index
    %c17_68 = arith.constant 17 : index
    %c0_69 = arith.constant 0 : index
    %119 = vector.load %arg13[%c1_67, %c17_68, %c0_69] : memref<18x18x8xf32, #tpu.memory_space<vmem>>, vector<16x1x8xf32>
    tpu.vector_store %arg13[%c1_67, %c17_68, %c0_69], %117 {strides = array<i32>} : memref<18x18x8xf32, #tpu.memory_space<vmem>>, vector<16x1x8xf32>,
    %c1_70 = arith.constant 1 : index
    %c1_71 = arith.constant 1 : index
    %c0_72 = arith.constant 0 : index
    %120 = vector.load %arg13[%c1_70, %c1_71, %c0_72] : memref<18x18x8xf32, #tpu.memory_space<vmem>>, vector<16x16x8xf32>
    tpu.vector_store %arg13[%c1_70, %c1_71, %c0_72], %111 {strides = array<i32>} : memref<18x18x8xf32, #tpu.memory_space<vmem>>, vector<16x16x8xf32>,
    %121 = vector.shape_cast %113 : vector<1x8xf32> to vector<1x1x8xf32>
    %122 = vector.broadcast %121 : vector<1x1x8xf32> to vector<16x16x8xf32>
    %c0_73 = arith.constant 0 : index
    %c0_74 = arith.constant 0 : index
    %c0_75 = arith.constant 0 : index
    %123 = vector.load %arg13[%c0_73, %c0_74, %c0_75] : memref<18x18x8xf32, #tpu.memory_space<vmem>>, vector<18x16x8xf32>
    %124 = vector.extract_strided_slice %123 {offsets = [0, 0, 0], sizes = [16, 16, 8], strides = [1, 1, 1]} : vector<18x16x8xf32> to vector<16x16x8xf32>
    %125 = vector.extract_strided_slice %112 {offsets = [0, 0, 0], sizes = [1, 1, 8], strides = [1, 1, 1]} : vector<3x3x8xf32> to vector<1x1x8xf32>
    %126 = vector.shape_cast %125 : vector<1x1x8xf32> to vector<8xf32>
    %127 = vector.shape_cast %126 : vector<8xf32> to vector<1x1x8xf32>
    %128 = vector.broadcast %127 : vector<1x1x8xf32> to vector<16x16x8xf32>
    %129 = arith.mulf %124, %128 : vector<16x16x8xf32>
    %130 = arith.addf %122, %129 : vector<16x16x8xf32>
    %131 = vector.extract_strided_slice %123 {offsets = [1, 0, 0], sizes = [16, 16, 8], strides = [1, 1, 1]} : vector<18x16x8xf32> to vector<16x16x8xf32>
    %132 = vector.extract_strided_slice %112 {offsets = [1, 0, 0], sizes = [1, 1, 8], strides = [1, 1, 1]} : vector<3x3x8xf32> to vector<1x1x8xf32>
    %133 = vector.shape_cast %132 : vector<1x1x8xf32> to vector<8xf32>
    %134 = vector.shape_cast %133 : vector<8xf32> to vector<1x1x8xf32>
    %135 = vector.broadcast %134 : vector<1x1x8xf32> to vector<16x16x8xf32>
    %136 = arith.mulf %131, %135 : vector<16x16x8xf32>
    %137 = arith.addf %130, %136 : vector<16x16x8xf32>
    %138 = vector.extract_strided_slice %123 {offsets = [2, 0, 0], sizes = [16, 16, 8], strides = [1, 1, 1]} : vector<18x16x8xf32> to vector<16x16x8xf32>
    %139 = vector.extract_strided_slice %112 {offsets = [2, 0, 0], sizes = [1, 1, 8], strides = [1, 1, 1]} : vector<3x3x8xf32> to vector<1x1x8xf32>
    %140 = vector.shape_cast %139 : vector<1x1x8xf32> to vector<8xf32>
    %141 = vector.shape_cast %140 : vector<8xf32> to vector<1x1x8xf32>
    %142 = vector.broadcast %141 : vector<1x1x8xf32> to vector<16x16x8xf32>
    %143 = arith.mulf %138, %142 : vector<16x16x8xf32>
    %144 = arith.addf %137, %143 : vector<16x16x8xf32>
    %c0_76 = arith.constant 0 : index
    %c1_77 = arith.constant 1 : index
    %c0_78 = arith.constant 0 : index
    %145 = vector.load %arg13[%c0_76, %c1_77, %c0_78] : memref<18x18x8xf32, #tpu.memory_space<vmem>>, vector<18x16x8xf32>
    %146 = vector.extract_strided_slice %145 {offsets = [0, 0, 0], sizes = [16, 16, 8], strides = [1, 1, 1]} : vector<18x16x8xf32> to vector<16x16x8xf32>
    %147 = vector.extract_strided_slice %112 {offsets = [0, 1, 0], sizes = [1, 1, 8], strides = [1, 1, 1]} : vector<3x3x8xf32> to vector<1x1x8xf32>
    %148 = vector.shape_cast %147 : vector<1x1x8xf32> to vector<8xf32>
    %149 = vector.shape_cast %148 : vector<8xf32> to vector<1x1x8xf32>
    %150 = vector.broadcast %149 : vector<1x1x8xf32> to vector<16x16x8xf32>
    %151 = arith.mulf %146, %150 : vector<16x16x8xf32>
    %152 = arith.addf %144, %151 : vector<16x16x8xf32>
    %153 = vector.extract_strided_slice %145 {offsets = [1, 0, 0], sizes = [16, 16, 8], strides = [1, 1, 1]} : vector<18x16x8xf32> to vector<16x16x8xf32>
    %154 = vector.extract_strided_slice %112 {offsets = [1, 1, 0], sizes = [1, 1, 8], strides = [1, 1, 1]} : vector<3x3x8xf32> to vector<1x1x8xf32>
    %155 = vector.shape_cast %154 : vector<1x1x8xf32> to vector<8xf32>
    %156 = vector.shape_cast %155 : vector<8xf32> to vector<1x1x8xf32>
    %157 = vector.broadcast %156 : vector<1x1x8xf32> to vector<16x16x8xf32>
    %158 = arith.mulf %153, %157 : vector<16x16x8xf32>
    %159 = arith.addf %152, %158 : vector<16x16x8xf32>
    %160 = vector.extract_strided_slice %145 {offsets = [2, 0, 0], sizes = [16, 16, 8], strides = [1, 1, 1]} : vector<18x16x8xf32> to vector<16x16x8xf32>
    %161 = vector.extract_strided_slice %112 {offsets = [2, 1, 0], sizes = [1, 1, 8], strides = [1, 1, 1]} : vector<3x3x8xf32> to vector<1x1x8xf32>
    %162 = vector.shape_cast %161 : vector<1x1x8xf32> to vector<8xf32>
    %163 = vector.shape_cast %162 : vector<8xf32> to vector<1x1x8xf32>
    %164 = vector.broadcast %163 : vector<1x1x8xf32> to vector<16x16x8xf32>
    %165 = arith.mulf %160, %164 : vector<16x16x8xf32>
    %166 = arith.addf %159, %165 : vector<16x16x8xf32>
    %c0_79 = arith.constant 0 : index
    %c2_80 = arith.constant 2 : index
    %c0_81 = arith.constant 0 : index
    %167 = vector.load %arg13[%c0_79, %c2_80, %c0_81] : memref<18x18x8xf32, #tpu.memory_space<vmem>>, vector<18x16x8xf32>
    %168 = vector.extract_strided_slice %167 {offsets = [0, 0, 0], sizes = [16, 16, 8], strides = [1, 1, 1]} : vector<18x16x8xf32> to vector<16x16x8xf32>
    %169 = vector.extract_strided_slice %112 {offsets = [0, 2, 0], sizes = [1, 1, 8], strides = [1, 1, 1]} : vector<3x3x8xf32> to vector<1x1x8xf32>
    %170 = vector.shape_cast %169 : vector<1x1x8xf32> to vector<8xf32>
    %171 = vector.shape_cast %170 : vector<8xf32> to vector<1x1x8xf32>
    %172 = vector.broadcast %171 : vector<1x1x8xf32> to vector<16x16x8xf32>
    %173 = arith.mulf %168, %172 : vector<16x16x8xf32>
    %174 = arith.addf %166, %173 : vector<16x16x8xf32>
    %175 = vector.extract_strided_slice %167 {offsets = [1, 0, 0], sizes = [16, 16, 8], strides = [1, 1, 1]} : vector<18x16x8xf32> to vector<16x16x8xf32>
    %176 = vector.extract_strided_slice %112 {offsets = [1, 2, 0], sizes = [1, 1, 8], strides = [1, 1, 1]} : vector<3x3x8xf32> to vector<1x1x8xf32>
    %177 = vector.shape_cast %176 : vector<1x1x8xf32> to vector<8xf32>
    %178 = vector.shape_cast %177 : vector<8xf32> to vector<1x1x8xf32>
    %179 = vector.broadcast %178 : vector<1x1x8xf32> to vector<16x16x8xf32>
    %180 = arith.mulf %175, %179 : vector<16x16x8xf32>
    %181 = arith.addf %174, %180 : vector<16x16x8xf32>
    %182 = vector.extract_strided_slice %167 {offsets = [2, 0, 0], sizes = [16, 16, 8], strides = [1, 1, 1]} : vector<18x16x8xf32> to vector<16x16x8xf32>
    %183 = vector.extract_strided_slice %112 {offsets = [2, 2, 0], sizes = [1, 1, 8], strides = [1, 1, 1]} : vector<3x3x8xf32> to vector<1x1x8xf32>
    %184 = vector.shape_cast %183 : vector<1x1x8xf32> to vector<8xf32>
    %185 = vector.shape_cast %184 : vector<8xf32> to vector<1x1x8xf32>
    %186 = vector.broadcast %185 : vector<1x1x8xf32> to vector<16x16x8xf32>
    %187 = arith.mulf %182, %186 : vector<16x16x8xf32>
    %188 = arith.addf %181, %187 : vector<16x16x8xf32>
    %189 = vector.shape_cast %188 : vector<16x16x8xf32> to vector<8x2x16x8xf32>
    %190 = vector.extract_strided_slice %189 {offsets = [0, 0, 0, 0], sizes = [8, 1, 16, 8], strides = [1, 1, 1, 1]} : vector<8x2x16x8xf32> to vector<8x1x16x8xf32>
    %191 = vector.shape_cast %190 : vector<8x1x16x8xf32> to vector<8x16x8xf32>
    %192 = vector.extract_strided_slice %189 {offsets = [0, 1, 0, 0], sizes = [8, 1, 16, 8], strides = [1, 1, 1, 1]} : vector<8x2x16x8xf32> to vector<8x1x16x8xf32>
    %193 = vector.shape_cast %192 : vector<8x1x16x8xf32> to vector<8x16x8xf32>
    %cst_82 = arith.constant -3.40282347E+38 : f32
    %194 = vector.broadcast %cst_82 : f32 to vector<1x16x8xf32>
    %c0_83 = arith.constant 0 : index
    %c0_84 = arith.constant 0 : index
    %c0_85 = arith.constant 0 : index
    %195 = vector.load %arg13[%c0_83, %c0_84, %c0_85] : memref<18x18x8xf32, #tpu.memory_space<vmem>>, vector<1x16x8xf32>
    tpu.vector_store %arg13[%c0_83, %c0_84, %c0_85], %194 {strides = array<i32>} : memref<18x18x8xf32, #tpu.memory_space<vmem>>, vector<1x16x8xf32>,
    %c1_86 = arith.constant 1 : index
    %c0_87 = arith.constant 0 : index
    %c0_88 = arith.constant 0 : index
    %196 = vector.load %arg13[%c1_86, %c0_87, %c0_88] : memref<18x18x8xf32, #tpu.memory_space<vmem>>, vector<8x16x8xf32>
    tpu.vector_store %arg13[%c1_86, %c0_87, %c0_88], %193 {strides = array<i32>} : memref<18x18x8xf32, #tpu.memory_space<vmem>>, vector<8x16x8xf32>,
    %c0_89 = arith.constant 0 : index
    %c0_90 = arith.constant 0 : index
    %c0_91 = arith.constant 0 : index
    %197 = vector.load %arg13[%c0_89, %c0_90, %c0_91] : memref<18x18x8xf32, #tpu.memory_space<vmem>>, vector<8x16x8xf32>
    %198 = arith.maximumf %191, %193 : vector<8x16x8xf32>
    %199 = arith.maximumf %198, %197 : vector<8x16x8xf32>
    %cst_92 = arith.constant -3.40282347E+38 : f32
    %200 = vector.broadcast %cst_92 : f32 to vector<8x1x8xf32>
    %c0_93 = arith.constant 0 : index
    %c0_94 = arith.constant 0 : index
    %c0_95 = arith.constant 0 : index
    %201 = vector.load %arg13[%c0_93, %c0_94, %c0_95] : memref<18x18x8xf32, #tpu.memory_space<vmem>>, vector<8x1x8xf32>
    tpu.vector_store %arg13[%c0_93, %c0_94, %c0_95], %200 {strides = array<i32>} : memref<18x18x8xf32, #tpu.memory_space<vmem>>, vector<8x1x8xf32>,
    %c0_96 = arith.constant 0 : index
    %c1_97 = arith.constant 1 : index
    %c0_98 = arith.constant 0 : index
    %202 = vector.load %arg13[%c0_96, %c1_97, %c0_98] : memref<18x18x8xf32, #tpu.memory_space<vmem>>, vector<8x16x8xf32>
    tpu.vector_store %arg13[%c0_96, %c1_97, %c0_98], %199 {strides = array<i32>} : memref<18x18x8xf32, #tpu.memory_space<vmem>>, vector<8x16x8xf32>,
    %c0_99 = arith.constant 0 : index
    %c0_100 = arith.constant 0 : index
    %c0_101 = arith.constant 0 : index
    %203 = tpu.strided_load %arg13[%c0_99, %c0_100, %c0_101] {strides = array<i32: 1, 2, 1>} : memref<18x18x8xf32, #tpu.memory_space<vmem>>, vector<8x8x8xf32>
    %c0_102 = arith.constant 0 : index
    %c1_103 = arith.constant 1 : index
    %c0_104 = arith.constant 0 : index
    %204 = tpu.strided_load %arg13[%c0_102, %c1_103, %c0_104] {strides = array<i32: 1, 2, 1>} : memref<18x18x8xf32, #tpu.memory_space<vmem>>, vector<8x8x8xf32>
    %205 = arith.maximumf %203, %204 : vector<8x8x8xf32>
    %c0_105 = arith.constant 0 : index
    %c2_106 = arith.constant 2 : index
    %c0_107 = arith.constant 0 : index
    %206 = tpu.strided_load %arg13[%c0_105, %c2_106, %c0_107] {strides = array<i32: 1, 2, 1>} : memref<18x18x8xf32, #tpu.memory_space<vmem>>, vector<8x8x8xf32>
    %207 = arith.maximumf %205, %206 : vector<8x8x8xf32>
    %208 = arith.addf %207, %12 : vector<8x8x8xf32>
    %c0_108 = arith.constant 0 : index
    %c0_109 = arith.constant 0 : index
    %c0_110 = arith.constant 0 : index
    %c0_111 = arith.constant 0 : index
    %209 = vector.load %arg12[%c0_108, %c0_109, %c0_110, %c0_111] : memref<1x8x8x8xf32, #tpu.memory_space<vmem>>, vector<1x8x8x8xf32>
    %210 = vector.shape_cast %209 : vector<1x8x8x8xf32> to vector<8x8x8xf32>
    %211 = vector.shape_cast %208 : vector<8x8x8xf32> to vector<1x8x8x8xf32>
    tpu.vector_store %arg12[%c0_108, %c0_109, %c0_110, %c0_111], %211 {strides = array<i32>} : memref<1x8x8x8xf32, #tpu.memory_space<vmem>>, vector<1x8x8x8xf32>,
    return
  }
  func.func @transform_0(%arg0: i32) -> (i32, i32, i32, i32) {
    %c0_i32 = arith.constant 0 : i32
    %c0_i32_0 = arith.constant 0 : i32
    %c0_i32_1 = arith.constant 0 : i32
    %c0_i32_2 = arith.constant 0 : i32
    return %arg0, %c0_i32, %c0_i32_0, %c0_i32_1 : i32, i32, i32, i32
  }
  func.func @transform_1(%arg0: i32) -> (i32, i32) {
    %c0_i32 = arith.constant 0 : i32
    %c0_i32_0 = arith.constant 0 : i32
    %c0_i32_1 = arith.constant 0 : i32
    return %c0_i32, %c0_i32_0 : i32, i32
  }
  func.func @transform_2(%arg0: i32) -> (i32, i32) {
    %c0_i32 = arith.constant 0 : i32
    %c0_i32_0 = arith.constant 0 : i32
    %c0_i32_1 = arith.constant 0 : i32
    return %c0_i32, %c0_i32_0 : i32, i32
  }
  func.func @transform_3(%arg0: i32) -> (i32, i32, i32) {
    %c0_i32 = arith.constant 0 : i32
    %c0_i32_0 = arith.constant 0 : i32
    %c0_i32_1 = arith.constant 0 : i32
    %c0_i32_2 = arith.constant 0 : i32
    return %c0_i32, %c0_i32_0, %c0_i32_1 : i32, i32, i32
  }
  func.func @transform_4(%arg0: i32) -> (i32, i32) {
    %c0_i32 = arith.constant 0 : i32
    %c0_i32_0 = arith.constant 0 : i32
    %c0_i32_1 = arith.constant 0 : i32
    return %c0_i32, %c0_i32_0 : i32, i32
  }
  func.func @transform_5(%arg0: i32) -> (i32, i32) {
    %c0_i32 = arith.constant 0 : i32
    %c0_i32_0 = arith.constant 0 : i32
    %c0_i32_1 = arith.constant 0 : i32
    return %c0_i32, %c0_i32_0 : i32, i32
  }
  func.func @transform_6(%arg0: i32) -> (i32, i32) {
    %c0_i32 = arith.constant 0 : i32
    %c0_i32_0 = arith.constant 0 : i32
    %c0_i32_1 = arith.constant 0 : i32
    return %c0_i32, %c0_i32_0 : i32, i32
  }
  func.func @transform_7(%arg0: i32) -> (i32, i32, i32) {
    %c0_i32 = arith.constant 0 : i32
    %c0_i32_0 = arith.constant 0 : i32
    %c0_i32_1 = arith.constant 0 : i32
    %c0_i32_2 = arith.constant 0 : i32
    return %c0_i32, %c0_i32_0, %c0_i32_1 : i32, i32, i32
  }
  func.func @transform_8(%arg0: i32) -> (i32, i32) {
    %c0_i32 = arith.constant 0 : i32
    %c0_i32_0 = arith.constant 0 : i32
    %c0_i32_1 = arith.constant 0 : i32
    return %c0_i32, %c0_i32_0 : i32, i32
  }
  func.func @transform_9(%arg0: i32) -> (i32, i32) {
    %c0_i32 = arith.constant 0 : i32
    %c0_i32_0 = arith.constant 0 : i32
    %c0_i32_1 = arith.constant 0 : i32
    return %c0_i32, %c0_i32_0 : i32, i32
  }
  func.func @transform_10(%arg0: i32) -> (i32, i32) {
    %c0_i32 = arith.constant 0 : i32
    %c0_i32_0 = arith.constant 0 : i32
    %c0_i32_1 = arith.constant 0 : i32
    return %c0_i32, %c0_i32_0 : i32, i32
  }
  func.func @transform_11(%arg0: i32) -> (i32, i32, i32, i32) {
    %c0_i32 = arith.constant 0 : i32
    %c0_i32_0 = arith.constant 0 : i32
    %c0_i32_1 = arith.constant 0 : i32
    %c0_i32_2 = arith.constant 0 : i32
    return %arg0, %c0_i32, %c0_i32_0, %c0_i32_1 : i32, i32, i32, i32
  }
}

</mosaic_0001>

<bundles_post_ra>
// kernel: eblock_pallas.1
= control target key start
LH: loop header
LB: loop body
LE: loop exit
PB: predicated region body
PF: predicated region fallthrough
CT: control target
= control target key end

     0   :  { %s3163_s17 = smov 0   ;;  %s5387_s0 = inlined_call_operand.vmem [shape: f32[2,16,16,4], index: 0, kind: input, shape index: {}]   ;;  %s5388_s1 = inlined_call_operand.vmem [shape: bf16[4,8], index: 1, kind: input, shape index: {}]   ;;  %s5389_s2 = inlined_call_operand.vmem [shape: f32[1,8], index: 2, kind: input, shape index: {}]   ;;  %s5390_s3 = inlined_call_operand.vmem [shape: f32[3,3,8], index: 3, kind: input, shape index: {}]   ;;  %s5391_s4 = inlined_call_operand.vmem [shape: f32[1,8], index: 4, kind: input, shape index: {}]   ;;  %s5392_s5 = inlined_call_operand.vmem [shape: bf16[8,8], index: 5, kind: input, shape index: {}]   ;;  %s5393_s6 = inlined_call_operand.vmem [shape: f32[1,8], index: 6, kind: input, shape index: {}]   ;;  %s5394_s7 = inlined_call_operand.vmem [shape: f32[3,3,8], index: 7, kind: input, shape index: {}]   ;;  %s5395_s8 = inlined_call_operand.vmem [shape: f32[1,8], index: 8, kind: input, shape index: {}]   ;;  %s5396_s9 = inlined_call_operand.vmem [shape: bf16[4,8], index: 9, kind: input, shape index: {}]   ;;  %s5397_s10 = inlined_call_operand.vmem [shape: f32[1,8], index: 10, kind: input, shape index: {}]   ;;  %s5398_s11 = inlined_call_operand.vmem [shape: f32[2,8,8,8], index: 11, kind: output, shape index: {}]  }
   0x1 LB: > { %s2895_s18 = sadd.s32 4294967295, %s3099_s17   ;;  %p2899_p0 = scmp.ge.s32.totalorder %s3099_s17, 1  ;;  %s3099_s17 = sphi %s3163_s17, %s21_s17  }
   0x2   : > { %p337_p1 = scmp.lt.s32.totalorder %s3099_s17, 3 }
   0x4   : > { %p338_p2 = pnand %p2899_p0, %p337_p1 }
   0x6   : > { %341 = sbr.rel (%p338_p2) target bundleno = 677 (0x2a5), region = 64 }
   0xb   : > { %v407_v0 = vld [vmem:[%s5396_s9] sm:$0x3]  ;;  %vm428_vm0 = vcmask 1041408   ;;  %p377_p3 = scmp.lt.s32.totalorder %s2895_s18, 1  ;;  %vm415_vm1 = vcmask 31744   ;;  %vm801_vm2 = vcmask 64512  }
   0xc   : > { %3076 = vmatprep.subr.msk.bf16.mxu1 %vm428_vm0, %v407_v0  ;;  %v430_v1 = vsel %vm428_vm0, %v407_v0, 0  ;;  %v577_v2 = vld [vmem:[%s5388_s1] sm:$0x3]  ;;  %3075 = vmatprep.subr.msk.bf16.mxu0 %vm428_vm0, %v407_v0  ;;  %vm811_vm3 = vcmask 57344   ;;  %vm804_vm4 = vcmask 58368   ;;  %vm1706_vm5 = vcmask 1043456  }
   0xd   : > { %3074 = vmatpush3.bf16.msra.mxu1 %v430_v1  ;;  %s5452_s18 = smov (!%p377_p3, %s2895_s18), 1  ;;  %2996 = vmatpush3.bf16.msra.mxu0 %v430_v1  ;;  %v634_v11 = vsel %vm428_vm0, %v577_v2, 0 }
   0xe   : > { %3077 = vmatprep.subr.msk.bf16.mxu1 %vm428_vm0, %v577_v2  ;;  %s2954_s23 = sshll.u32 %s5452_s18, 8  ;;  %s2955_s19 = sshll.u32 %s5452_s18, 6 }
   0xf   : > { %s3187_s26 = scalar_lea.vmem %s5387_s0, %s2954_s23  ;;  %s4678_s21 = scalar_lea.vmem %s5398_s11, %s2955_s19 }
  0x10   : > { %v2907_v3 = vld [vmem:[%s3187_s26 + $0x80] ss:$2 sm:$0xff]  ;;  %v499_v14 = vld [vmem:[%s3187_s26 + $0x10] sm:$0xff]  ;;  %v500_v15 = vld [vmem:[%s3187_s26 + $0x18] sm:$0xff] }
  0x11   : > { %v2908_v4 = vld [vmem:[%s3187_s26 + $0xa0] ss:$2 sm:$0xff]  ;;  %v531_v19 = vmax.f32 %v499_v14, 0.0  ;;  %v532_v20 = vmax.f32 %v500_v15, 0.0  ;;  %v503_v25 = vld [vmem:[%s3187_s26 + $0x30] sm:$0xff]  ;;  %v504_v26 = vld [vmem:[%s3187_s26 + $0x38] sm:$0xff] }
  0x12   : > { %v2909_v5 = vld [vmem:[%s3187_s26 + $0xc0] ss:$2 sm:$0xff]  ;;  %v405_v6 = vpack.c.bf16 %v2908_v4, %v2907_v3  ;;  %v535_v29 = vmax.f32 %v503_v25, 0.0  ;;  %v536_v30 = vmax.f32 %v504_v26, 0.0  ;;  %v507_v35 = vld [vmem:[%s3187_s26 + $0x50] sm:$0xff]  ;;  %v508_v36 = vld [vmem:[%s3187_s26 + $0x58] sm:$0xff] }
  0x13   : > { %v2910_v7 = vld [vmem:[%s3187_s26 + $0xe0] ss:$2 sm:$0xff]  ;;  %v562_v23 = vpack.c.bf16 %v532_v20, %v531_v19  ;;  %v539_v39 = vmax.f32 %v507_v35, 0.0  ;;  %v540_v40 = vmax.f32 %v508_v36, 0.0  ;;  %v511_v45 = vld [vmem:[%s3187_s26 + $0x70] sm:$0xff]  ;;  %v512_v46 = vld [vmem:[%s3187_s26 + $0x78] sm:$0xff] }
  0x14   : > { %v497_v8 = vld [vmem:[%s3187_s26] sm:$0xff]  ;;  %v498_v9 = vld [vmem:[%s3187_s26 + $0x8] sm:$0xff]  ;;  %v406_v10 = vpack.c.bf16 %v2910_v7, %v2909_v5  ;;  %3001 = vmatprep.mubr.msk.bf16.mxu1 %vm415_vm1, %v405_v6  ;;  %v564_v33 = vpack.c.bf16 %v536_v30, %v535_v29  ;;  %v543_v49 = vmax.f32 %v511_v45, 0.0  ;;  %v544_v50 = vmax.f32 %v512_v46, 0.0  ;;  %v515_v55 = vld [vmem:[%s3187_s26 + $0x90] sm:$0xff] }
  0x15   : > { %v529_v12 = vmax.f32 %v497_v8, 0.0  ;;  %v530_v13 = vmax.f32 %v498_v9, 0.0  ;;  %v501_v16 = vld [vmem:[%s3187_s26 + $0x20] sm:$0xff]  ;;  %v502_v17 = vld [vmem:[%s3187_s26 + $0x28] sm:$0xff]  ;;  %v566_v43 = vpack.c.bf16 %v540_v40, %v539_v39  ;;  %v516_v56 = vld [vmem:[%s3187_s26 + $0x98] sm:$0xff]  ;;  %v547_v59 = vmax.f32 %v515_v55, 0.0 }
  0x16   : > { %3002 = vmatmul.mubr.msk.bf16.vlgmr.msra.gmra.mxu1 %vm415_vm1, %v406_v10  ;;  %v533_v21 = vmax.f32 %v501_v16, 0.0  ;;  %v534_v22 = vmax.f32 %v502_v17, 0.0  ;;  %v505_v27 = vld [vmem:[%s3187_s26 + $0x40] sm:$0xff]  ;;  %v506_v28 = vld [vmem:[%s3187_s26 + $0x48] sm:$0xff]  ;;  %v568_v53 = vpack.c.bf16 %v544_v50, %v543_v49  ;;  %v548_v60 = vmax.f32 %v516_v56, 0.0  ;;  %v519_v1 = vld [vmem:[%s3187_s26 + $0xb0] sm:$0xff] }
  0x17   : > { %v561_v18 = vpack.c.bf16 %v530_v13, %v529_v12  ;;  %3006 = vmatpush3.bf16.msra.mxu1 %v634_v11  ;;  %v537_v31 = vmax.f32 %v505_v27, 0.0  ;;  %v538_v32 = vmax.f32 %v506_v28, 0.0  ;;  %v509_v37 = vld [vmem:[%s3187_s26 + $0x60] sm:$0xff]  ;;  %v510_v38 = vld [vmem:[%s3187_s26 + $0x68] sm:$0xff]  ;;  %v520_v2 = vld [vmem:[%s3187_s26 + $0xb8] sm:$0xff]  ;;  %v551_v5 = vmax.f32 %v519_v1, 0.0 }
  0x18   : > { %v563_v24 = vpack.c.bf16 %v534_v22, %v533_v21  ;;  %v541_v41 = vmax.f32 %v509_v37, 0.0  ;;  %v542_v42 = vmax.f32 %v510_v38, 0.0  ;;  %v513_v47 = vld [vmem:[%s3187_s26 + $0x80] sm:$0xff]  ;;  %v514_v48 = vld [vmem:[%s3187_s26 + $0x88] sm:$0xff]  ;;  %v570_v63 = vpack.c.bf16 %v548_v60, %v547_v59  ;;  %v523_v11 = vld [vmem:[%s3187_s26 + $0xd0] sm:$0xff] }
  0x19   : > { %3007 = vmatprep.mubr.msk.bf16.mxu1 %vm415_vm1, %v561_v18  ;;  %v565_v34 = vpack.c.bf16 %v538_v32, %v537_v31  ;;  %v545_v51 = vmax.f32 %v513_v47, 0.0  ;;  %v546_v52 = vmax.f32 %v514_v48, 0.0  ;;  %v517_v57 = vld [vmem:[%s3187_s26 + $0xa0] sm:$0xff]  ;;  %v518_v58 = vld [vmem:[%s3187_s26 + $0xa8] sm:$0xff]  ;;  %v552_v6 = vmax.f32 %v520_v2, 0.0  ;;  %v524_v12 = vld [vmem:[%s3187_s26 + $0xd8] sm:$0xff] }
  0x1a   : > { %v567_v44 = vpack.c.bf16 %v542_v42, %v541_v41  ;;  %v549_v61 = vmax.f32 %v517_v57, 0.0  ;;  %v550_v62 = vmax.f32 %v518_v58, 0.0  ;;  %v521_v3 = vld [vmem:[%s3187_s26 + $0xc0] sm:$0xff]  ;;  %v522_v4 = vld [vmem:[%s3187_s26 + $0xc8] sm:$0xff]  ;;  %v555_v15 = vmax.f32 %v523_v11, 0.0  ;;  %v527_v21 = vld [vmem:[%s3187_s26 + $0xf0] sm:$0xff] }
  0x1b   : > { %v569_v54 = vpack.c.bf16 %v546_v52, %v545_v51  ;;  %v553_v7 = vmax.f32 %v521_v3, 0.0  ;;  %v554_v8 = vmax.f32 %v522_v4, 0.0  ;;  %v572_v9 = vpack.c.bf16 %v552_v6, %v551_v5  ;;  %v525_v13 = vld [vmem:[%s3187_s26 + $0xe0] sm:$0xff]  ;;  %v526_v14 = vld [vmem:[%s3187_s26 + $0xe8] sm:$0xff]  ;;  %v528_v22 = vld [vmem:[%s3187_s26 + $0xf8] sm:$0xff] }
  0x1c   : > { %v571_v0 = vpack.c.bf16 %v550_v62, %v549_v61  ;;  %v556_v16 = vmax.f32 %v524_v12, 0.0  ;;  %v557_v17 = vmax.f32 %v525_v13, 0.0  ;;  %v558_v18 = vmax.f32 %v526_v14, 0.0  ;;  %v388_v32 = vld [vmem:[%s3187_s26] ss:$2 sm:$0xff] }
  0x1d   : > { %v573_v10 = vpack.c.bf16 %v554_v8, %v553_v7  ;;  %v5401_v26 = vmov 0.0   ;;  %v2905_v36 = vld [vmem:[%s3187_s26 + $0x40] ss:$2 sm:$0xff]  ;;  %v5399_v47 = vmov -3.4028235e+38   ;;  %v918_v49 = vlaneseq }
  0x1e   : > { %3008 = vmatmul.mubr.msk.bf16.vlgmr.msra.gmra.mxu1 %vm415_vm1, %v562_v23  ;;  %v574_v19 = vpack.c.bf16 %v556_v16, %v555_v15  ;;  %v575_v20 = vpack.c.bf16 %v558_v18, %v557_v17  ;;  %v559_v23 = vmax.f32 %v527_v21, 0.0  ;;  %814 = vst.msk [vmem:[#allocation2 + $0x48] sm:$0x1] %vm811_vm3, %v5401_v26  ;;  %812 = vst.msk [vmem:[#allocation2 + $0x18] sm:$0x1] %vm811_vm3, %v5401_v26 }
  0x1f   : > { %3011 = vmatprep.mubr.msk.bf16.mxu1 %vm415_vm1, %v563_v24  ;;  %v560_v24 = vmax.f32 %v528_v22, 0.0  ;;  %802 = vst.msk [vmem:[#allocation2] sm:$0xff] %vm801_vm2, %v5401_v26  ;;  %803 = vst.msk [vmem:[#allocation2 + $0x8] sm:$0xff] %vm801_vm2, %v5401_v26  ;;  %v2906_v37 = vld [vmem:[%s3187_s26 + $0x60] ss:$2 sm:$0xff]  ;;  %v919_v51 = vshrl.u32 %v918_v49, 7 }
  0x20   : > { %807 = vst.msk [vmem:[#allocation2 + $0x198] sm:$0xff] %vm801_vm2, %v5401_v26  ;;  %808 = vst.msk [vmem:[#allocation2 + $0x1a0] sm:$0xff] %vm801_vm2, %v5401_v26  ;;  %v404_v38 = vpack.c.bf16 %v2906_v37, %v2905_v36  ;;  %v1650_v39 = vld [vmem:[%s5392_s5] sm:$0xf]  ;;  %v798_v2 = vld [vmem:[%s5390_s3 + $0x4] sm:$0x7] }
  0x21   : > { %v576_v25 = vpack.c.bf16 %v560_v24, %v559_v23  ;;  %813 = vst.msk [vmem:[#allocation2 + $0x30] sm:$0x1] %vm811_vm3, %v5401_v26  ;;  %815 = vst.msk [vmem:[#allocation2 + $0x60] sm:$0x1] %vm811_vm3, %v5401_v26  ;;  %3078 = vmatprep.subr.msk.bf16.mxu0 %vm1706_vm5, %v1650_v39  ;;  %v1708_v40 = vsel %vm1706_vm5, %v1650_v39, 0  ;;  %v3398_v5 = vsub.s32 2, %v919_v51 }
  0x22   : > { %816 = vst.msk [vmem:[#allocation2 + $0x78] sm:$0x1] %vm811_vm3, %v5401_v26  ;;  %817 = vst.msk [vmem:[#allocation2 + $0x90] sm:$0x1] %vm811_vm3, %v5401_v26  ;;  %v3376_v56 = vld [vmem:[%s5389_s2] ss:$0 sm:$0xff] }
  0x23   : > { %818 = vst.msk [vmem:[#allocation2 + $0xa8] sm:$0x1] %vm811_vm3, %v5401_v26  ;;  %819 = vst.msk [vmem:[#allocation2 + $0xc0] sm:$0x1] %vm811_vm3, %v5401_v26  ;;  %v797_v57 = vld [vmem:[%s5390_s3] sm:$0x7]  ;;  %v3433_v24 = vrot.slane %v798_v2, %v3398_v5 }
  0x24   : > { %820 = vst.msk [vmem:[#allocation2 + $0xd8] sm:$0x1] %vm811_vm3, %v5401_v26  ;;  %821 = vst.msk [vmem:[#allocation2 + $0xf0] sm:$0x1] %vm811_vm3, %v5401_v26  ;;  %v799_v3 = vld [vmem:[%s5390_s3 + $0x8] sm:$0x7]  ;;  %v3427_v18 = vrot.slane %v797_v57, %v3398_v5 }
  0x25   : > { %822 = vst.msk [vmem:[#allocation2 + $0x108] sm:$0x1] %vm811_vm3, %v5401_v26  ;;  %823 = vst.msk [vmem:[#allocation2 + $0x120] sm:$0x1] %vm811_vm3, %v5401_v26  ;;  %v3403_v7 = vld [vmem:[%s5391_s4] ss:$0 sm:$0xff] }
  0x26   : > { %3012 = vmatmul.mubr.msk.bf16.gmra.mxu1 %vm415_vm1, %v564_v33  ;;  %824 = vst.msk [vmem:[#allocation2 + $0x138] sm:$0x1] %vm811_vm3, %v5401_v26  ;;  %825 = vst.msk [vmem:[#allocation2 + $0x150] sm:$0x1] %vm811_vm3, %v5401_v26  ;;  %v882_v27 = vld [vmem:[#allocation2] sm:$0xff]  ;;  %v883_v30 = vld [vmem:[#allocation2 + $0x8] sm:$0xff] }
  0x27   : > { %3015 = vmatprep.mubr.msk.bf16.mxu1 %vm415_vm1, %v565_v34  ;;  %826 = vst.msk [vmem:[#allocation2 + $0x168] sm:$0x1] %vm811_vm3, %v5401_v26  ;;  %827 = vst.msk [vmem:[#allocation2 + $0x180] sm:$0x1] %vm811_vm3, %v5401_v26  ;;  %v3320_v28 = vld [vmem:[#allocation2 + $0x1] sm:$0xff] }
  0x28   : > { %828 = vst.msk [vmem:[#allocation2 + $0x29] sm:$0x1] %vm811_vm3, %v5401_v26  ;;  %829 = vst.msk [vmem:[#allocation2 + $0x41] sm:$0x1] %vm811_vm3, %v5401_v26  ;;  %v3322_v29 = vld [vmem:[#allocation2 + $0x2] sm:$0xff] }
  0x29   : > { %830 = vst.msk [vmem:[#allocation2 + $0x59] sm:$0x1] %vm811_vm3, %v5401_v26  ;;  %831 = vst.msk [vmem:[#allocation2 + $0x71] sm:$0x1] %vm811_vm3, %v5401_v26  ;;  %v2904_v33 = vld [vmem:[%s3187_s26 + $0x20] ss:$2 sm:$0xff] }
  0x2a   : > { %832 = vst.msk [vmem:[#allocation2 + $0x89] sm:$0x1] %vm811_vm3, %v5401_v26  ;;  %833 = vst.msk [vmem:[#allocation2 + $0xa1] sm:$0x1] %vm811_vm3, %v5401_v26  ;;  %v403_v35 = vpack.c.bf16 %v2904_v33, %v388_v32  ;;  %v3446_v32 = vmul.f32 %v3427_v18, %v3322_v29 }
  0x2b   : > { %834 = vst.msk [vmem:[#allocation2 + $0xb9] sm:$0x1] %vm811_vm3, %v5401_v26  ;;  %835 = vst.msk [vmem:[#allocation2 + $0xd1] sm:$0x1] %vm811_vm3, %v5401_v26 }
  0x2c   : > { %836 = vst.msk [vmem:[#allocation2 + $0xe9] sm:$0x1] %vm811_vm3, %v5401_v26  ;;  %837 = vst.msk [vmem:[#allocation2 + $0x101] sm:$0x1] %vm811_vm3, %v5401_v26  ;;  %2997 = vmatprep.mubr.msk.bf16.mxu0 %vm415_vm1, %v403_v35 }
  0x2d   : > { %838 = vst.msk [vmem:[#allocation2 + $0x119] sm:$0x1] %vm811_vm3, %v5401_v26  ;;  %839 = vst.msk [vmem:[#allocation2 + $0x131] sm:$0x1] %vm811_vm3, %v5401_v26  ;;  %2998 = vmatmul.mubr.msk.bf16.vlgmr.msra.gmra.mxu0 %vm415_vm1, %v404_v38 }
  0x2e   : > { %3016 = vmatmul.mubr.msk.bf16.gmra.mxu1 %vm415_vm1, %v566_v43  ;;  %840 = vst.msk [vmem:[#allocation2 + $0x149] sm:$0x1] %vm811_vm3, %v5401_v26  ;;  %841 = vst.msk [vmem:[#allocation2 + $0x161] sm:$0x1] %vm811_vm3, %v5401_v26  ;;  %3040 = vmatpush3.bf16.msra.mxu0 %v1708_v40 }
  0x2f   : > { %3019 = vmatprep.mubr.msk.bf16.mxu1 %vm415_vm1, %v567_v44  ;;  %842 = vst.msk [vmem:[#allocation2 + $0x179] sm:$0x1] %vm811_vm3, %v5401_v26  ;;  %843 = vst.msk [vmem:[#allocation2 + $0x191] sm:$0x1] %vm811_vm3, %v5401_v26 }
  0x30   : > { %805 = vst.msk [vmem:[#allocation2 + $0x10] sm:$0x3] %vm804_vm4, %v5401_v26  ;;  %809 = vst.msk [vmem:[#allocation2 + $0x1a8] sm:$0x3] %vm804_vm4, %v5401_v26 }
  0x31   : > { %1875 = vst.msk [vmem:[#allocation2] sm:$0xff] %vm801_vm2, %v5401_v26  ;;  %5422 = vst [vmem:[#allocation16_spill] sm:$0xff] %v3398_v5 }
  0x36   : > { %3020 = vmatmul.mubr.msk.bf16.gmra.mxu1 %vm415_vm1, %v568_v53 }
  0x37   : > { %3023 = vmatprep.mubr.msk.bf16.mxu1 %vm415_vm1, %v569_v54  ;;  %v3326_v31 = vld [vmem:[#allocation2 + $0x9] sm:$0xff]  ;;  %v3369_v54 = vsub.s32 0, %v919_v51 }
  0x38   : > { %v3330_v34 = vld [vmem:[#allocation2 + $0xa] sm:$0xff]  ;;  %v3343_v41 = vld [vmem:[#allocation2] sm:$0xff] }
  0x39   : > { %1876 = vst.msk [vmem:[#allocation2 + $0x8] sm:$0xff] %vm801_vm2, %v5401_v26  ;;  %5409 = vst [vmem:[#allocation3_spill] sm:$0xff] %v3343_v41  ;;  %v3383_v60 = vrot.slane %v797_v57, %v3369_v54  ;;  %v3409_v11 = vrot.slane %v798_v2, %v3369_v54  ;;  %v3412_v12 = vrot.slane %v799_v3, %v3369_v54 }
  0x3a   : > { %1877 = vst.msk [vmem:[#allocation2 + $0x10] sm:$0x3] %vm804_vm4, %v5401_v26  ;;  %5419 = vst [vmem:[#allocation13_spill] sm:$0xff] %v3369_v54 }
  0x3b   : > { %v922_v4 = vmul.f32 %v3383_v60, %v882_v27  ;;  %v923_v8 = vmul.f32 %v3383_v60, %v883_v30 }
  0x3d   : > { %v954_v16 = vadd.f32 %v3403_v7, %v922_v4  ;;  %v955_v21 = vadd.f32 %v3403_v7, %v923_v8 }
  0x3e   : > { %3024 = vmatmul.mubr.msk.bf16.gmra.mxu1 %vm415_vm1, %v570_v63 }
  0x3f   : > { %3027 = vmatprep.mubr.msk.bf16.mxu1 %vm415_vm1, %v571_v0  ;;  %v3387_v0 = vsub.s32 1, %v919_v51 }
  0x40   : > { %v3345_v42 = vld [vmem:[#allocation2 + $0x8] sm:$0xff] }
  0x41   : > { %5410 = vst [vmem:[#allocation4_spill] sm:$0xff] %v3345_v42  ;;  %v3347_v43 = vld [vmem:[#allocation2 + $0x1] sm:$0xff]  ;;  %v3349_v44 = vld [vmem:[#allocation2 + $0x9] sm:$0xff]  ;;  %5421 = vst [vmem:[#allocation15_spill] sm:$0xff] %v3387_v0  ;;  %v3415_v13 = vrot.slane %v797_v57, %v3387_v0  ;;  %v3418_v14 = vrot.slane %v799_v3, %v3387_v0  ;;  %v3424_v17 = vrot.slane %v798_v2, %v3387_v0 }
  0x42   : > { %5411 = vst [vmem:[#allocation5_spill] sm:$0xff] %v3347_v43  ;;  %5412 = vst [vmem:[#allocation6_spill] sm:$0xff] %v3349_v44  ;;  %v3351_v45 = vld [vmem:[#allocation2 + $0x2] sm:$0xff]  ;;  %v3353_v46 = vld [vmem:[#allocation2 + $0xa] sm:$0xff] }
  0x43   : > { %5413 = vst [vmem:[#allocation7_spill] sm:$0xff] %v3351_v45  ;;  %5414 = vst [vmem:[#allocation8_spill] sm:$0xff] %v3353_v46  ;;  %v1162_v23 = vmul.f32 %v3415_v13, %v3320_v28  ;;  %v3442_v30 = vmul.f32 %v3415_v13, %v3326_v31  ;;  %v3450_v28 = vmul.f32 %v3427_v18, %v3330_v34 }
  0x44   : > { %2671 = vst.msk [vmem:[#allocation2] sm:$0xff] %vm801_vm2, %v5399_v47  ;;  %2672 = vst.msk [vmem:[#allocation2 + $0x8] sm:$0xff] %vm801_vm2, %v5399_v47 }
  0x46   : > { %3028 = vmatmul.mubr.msk.bf16.gmra.mxu1 %vm415_vm1, %v572_v9 }
  0x47   : > { %3031 = vmatprep.mubr.msk.bf16.mxu1 %vm415_vm1, %v573_v10 }
  0x4b   : > { %v3359_v48 = vld [vmem:[#allocation2] sm:$0xff] }
  0x4c   : > { %5415 = vst [vmem:[#allocation9_spill] sm:$0xff] %v3359_v48  ;;  %2737 = vst.msk [vmem:[#allocation2] sm:$0x1] %vm811_vm3, %v5399_v47 }
  0x4e   : > { %3032 = vmatmul.mubr.msk.bf16.gmra.mxu1 %vm415_vm1, %v574_v19 }
  0x4f   : > { %3035 = vmatprep.mubr.msk.bf16.mxu1 %vm415_vm1, %v575_v20 }
  0x56   : > { %3036 = vmatmul.mubr.msk.bf16.gmra.mxu1 %vm415_vm1, %v576_v25  ;;  %v3436_v25 = vrot.slane %v799_v3, %v3398_v5 }
  0xd6   : > { %v3363_v50 = vpop.f32.mrf.mxu1 }
  0xd7   : > { %5416 = vst [vmem:[#allocation10_spill] sm:$0xff] %v3363_v50 }
  0xd8   : > { %v3365_v52 = vpop.f32.mrf.mxu1 }
  0xd9   : > { %5417 = vst [vmem:[#allocation11_spill] sm:$0xff] %v3365_v52 }
  0xda   : > { %v3367_v53 = vpop.f32.mrf.mxu1 }
  0xdb   : > { %5418 = vst [vmem:[#allocation12_spill] sm:$0xff] %v3367_v53 }
  0xdc   : > { %v3371_v55 = vpop.f32.mrf.mxu1 }
  0xdd   : > { %5420 = vst [vmem:[#allocation14_spill] sm:$0xff] %v3371_v55 }
  0xde   : > { %v3009_v58 = vpop.f32.mrf.mxu1 }
  0xdf   : > { %v679_v59 = vadd.f32 %v3009_v58, %v3376_v56 }
  0xe0   : > { %v670_v61 = vpop.f32.mrf.mxu1 }
  0xe1   : > { %846 = vst.msk [vmem:[#allocation2 + $0x31] sm:$0xff] %vm801_vm2, %v679_v59  ;;  %v671_v62 = vadd.f32 %v3376_v56, %v670_v61 }
  0xe2   : > { %v3010_v63 = vpop.f32.mrf.mxu1 }
  0xe3   : > { %844 = vst.msk [vmem:[#allocation2 + $0x19] sm:$0xff] %vm801_vm2, %v671_v62  ;;  %v682_v1 = vadd.f32 %v3010_v63, %v3376_v56 }
  0xe4   : > { %v673_v6 = vpop.f32.mrf.mxu1 }
  0xe5   : > { %847 = vst.msk [vmem:[#allocation2 + $0x39] sm:$0xff] %vm801_vm2, %v682_v1  ;;  %v674_v9 = vadd.f32 %v3376_v56, %v673_v6 }
  0xe6   : > { %v3013_v10 = vpop.f32.mrf.mxu1 }
  0xe7   : > { %845 = vst.msk [vmem:[#allocation2 + $0x21] sm:$0xff] %vm801_vm2, %v674_v9  ;;  %v695_v15 = vadd.f32 %v3013_v10, %v3376_v56 }
  0xe8   : > { %v686_v19 = vpop.f32.mrf.mxu1  ;;  %v886_v20 = vld [vmem:[#allocation2 + $0x30] sm:$0xff] }
  0xe9   : > { %v1126_v22 = vld [vmem:[#allocation2 + $0x31] sm:$0xff]  ;;  %850 = vst.msk [vmem:[#allocation2 + $0x61] sm:$0xff] %vm801_vm2, %v695_v15  ;;  %v687_v27 = vadd.f32 %v3376_v56, %v686_v19  ;;  %v1058_v36 = vmul.f32 %v3412_v12, %v886_v20  ;;  %v992_v31 = vmul.f32 %v3409_v11, %v886_v20  ;;  %v926_v29 = vmul.f32 %v3383_v60, %v886_v20 }
  0xea   : > { %1882 = vst.msk [vmem:[#allocation2 + $0x30] sm:$0x1] %vm811_vm3, %v5401_v26  ;;  %v3014_v33 = vpop.f32.mrf.mxu1  ;;  %v884_v35 = vld [vmem:[#allocation2 + $0x18] sm:$0xff]  ;;  %v3456_v38 = vmul.f32 %v3418_v14, %v1126_v22  ;;  %v3466_v40 = vmul.f32 %v3424_v17, %v1126_v22  ;;  %v3469_v49 = vmul.f32 %v3415_v13, %v1126_v22 }
  0xeb   : > { %v1124_v37 = vld [vmem:[#allocation2 + $0x19] sm:$0xff]  ;;  %848 = vst.msk [vmem:[#allocation2 + $0x49] sm:$0xff] %vm801_vm2, %v687_v27  ;;  %v698_v34 = vadd.f32 %v3014_v33, %v3376_v56  ;;  %v990_v39 = vmul.f32 %v3409_v11, %v884_v35  ;;  %v924_v63 = vmul.f32 %v3383_v60, %v884_v35  ;;  %v3483_v1 = vadd.f32 %v3403_v7, %v926_v29 }
  0xec   : > { %1881 = vst.msk [vmem:[#allocation2 + $0x18] sm:$0x1] %vm811_vm3, %v5401_v26  ;;  %v689_v51 = vpop.f32.mrf.mxu1  ;;  %v3471_v57 = vld [vmem:[#allocation2 + $0x38] sm:$0xff]  ;;  %v3476_v59 = vmul.f32 %v3415_v13, %v1124_v37  ;;  %v1230_v61 = vmul.f32 %v3424_v17, %v1124_v37 }
  0xed   : > { %v3473_v58 = vld [vmem:[#allocation2 + $0x39] sm:$0xff]  ;;  %851 = vst.msk [vmem:[#allocation2 + $0x69] sm:$0xff] %vm801_vm2, %v698_v34  ;;  %v690_v2 = vadd.f32 %v3376_v56, %v689_v51  ;;  %v1022_v3 = vadd.f32 %v990_v39, %v954_v16  ;;  %v1059_v4 = vmul.f32 %v3412_v12, %v3471_v57  ;;  %v956_v22 = vadd.f32 %v3403_v7, %v924_v63 }
  0xee   : > { %v3479_v62 = vld [vmem:[#allocation2 + $0x32] sm:$0xff]  ;;  %v3491_v6 = vmul.f32 %v3418_v14, %v3473_v58  ;;  %v3493_v8 = vld [vmem:[#allocation2 + $0x3a] sm:$0xff]  ;;  %v3017_v9 = vpop.f32.mrf.mxu1  ;;  %v993_v27 = vmul.f32 %v3409_v11, %v3471_v57  ;;  %v1365_v34 = vld [vmem:[#allocation2 + $0x22] sm:$0xff]  ;;  %v927_v45 = vmul.f32 %v3383_v60, %v3471_v57 }
  0xef   : > { %v885_v10 = vld [vmem:[#allocation2 + $0x20] sm:$0xff]  ;;  %v3497_v20 = vmul.f32 %v3436_v25, %v3479_v62  ;;  %v3501_v16 = vmul.f32 %v3436_v25, %v3493_v8  ;;  %1898 = vst.msk [vmem:[#allocation2 + $0x41] sm:$0x1] %vm811_vm3, %v5401_v26  ;;  %v711_v33 = vadd.f32 %v3017_v9, %v3376_v56  ;;  %v1090_v37 = vadd.f32 %v1058_v36, %v1022_v3 }
  0xf0   : > { %v1125_v15 = vld [vmem:[#allocation2 + $0x21] sm:$0xff]  ;;  %849 = vst.msk [vmem:[#allocation2 + $0x51] sm:$0xff] %vm801_vm2, %v690_v2  ;;  %v991_v35 = vmul.f32 %v3409_v11, %v885_v10  ;;  %v702_v39 = vpop.f32.mrf.mxu1  ;;  %v3517_v63 = vmul.f32 %v3433_v24, %v1365_v34  ;;  %v925_v2 = vmul.f32 %v3383_v60, %v885_v10  ;;  %v1024_v50 = vadd.f32 %v992_v31, %v956_v22 }
  0xf1   : > { %v1364_v19 = vld [vmem:[#allocation2 + $0x1a] sm:$0xff]  ;;  %v3512_v29 = vmul.f32 %v3415_v13, %v1125_v15  ;;  %v1231_v51 = vmul.f32 %v3424_v17, %v1125_v15  ;;  %1897 = vst.msk [vmem:[#allocation2 + $0x29] sm:$0x1] %vm811_vm3, %v5401_v26  ;;  %v703_v36 = vadd.f32 %v3376_v56, %v702_v39  ;;  %v1194_v53 = vadd.f32 %v1162_v23, %v1090_v37 }
  0xf2   : > { %v1470_v47 = vmul.f32 %v3433_v24, %v1364_v19  ;;  %v3522_v9 = vld [vmem:[#allocation2 + $0x60] sm:$0xff]  ;;  %854 = vst.msk [vmem:[#allocation2 + $0x91] sm:$0xff] %vm801_vm2, %v711_v33  ;;  %v1023_v3 = vadd.f32 %v991_v35, %v955_v21  ;;  %v3528_v15 = vld [vmem:[#allocation2 + $0x48] sm:$0xff]  ;;  %v3018_v55 = vpop.f32.mrf.mxu1  ;;  %v957_v52 = vadd.f32 %v3403_v7, %v925_v2  ;;  %v3535_v10 = vmul.f32 %v3424_v17, %v3473_v58 }
  0xf3   : > { %1884 = vst.msk [vmem:[#allocation2 + $0x60] sm:$0x1] %vm811_vm3, %v5401_v26  ;;  %v3531_v48 = vld [vmem:[#allocation2 + $0x49] sm:$0xff]  ;;  %v3538_v33 = vmul.f32 %v3427_v18, %v1364_v19  ;;  %v3541_v21 = vmul.f32 %v3427_v18, %v1365_v34  ;;  %1883 = vst.msk [vmem:[#allocation2 + $0x48] sm:$0x1] %vm811_vm3, %v5401_v26  ;;  %v714_v23 = vadd.f32 %v3018_v55, %v3376_v56 }
  0xf4   : > { %852 = vst.msk [vmem:[#allocation2 + $0x79] sm:$0xff] %vm801_vm2, %v703_v36  ;;  %v1091_v31 = vadd.f32 %v1059_v4, %v1023_v3  ;;  %v1262_v22 = vadd.f32 %v1230_v61, %v1194_v53  ;;  %v1060_v35 = vmul.f32 %v3412_v12, %v3528_v15  ;;  %v705_v37 = vpop.f32.mrf.mxu1  ;;  %v1025_v39 = vadd.f32 %v993_v27, %v957_v52  ;;  %v3559_v36 = vld [vmem:[#allocation2 + $0x68] sm:$0xff] }
  0xf5   : > { %v1300_v19 = vmul.f32 %v3418_v14, %v3531_v48  ;;  %v3553_v34 = vmul.f32 %v3433_v24, %v3479_v62  ;;  %v3557_v2 = vmul.f32 %v3433_v24, %v3493_v8  ;;  %855 = vst.msk [vmem:[#allocation2 + $0x99] sm:$0xff] %vm801_vm2, %v714_v23  ;;  %v706_v53 = vadd.f32 %v3376_v56, %v705_v37  ;;  %v3565_v4 = vld [vmem:[#allocation2 + $0x6a] sm:$0xff] }
  0xf6   : > { %v1195_v55 = vadd.f32 %v3442_v30, %v1091_v31  ;;  %v1330_v52 = vadd.f32 %v3456_v38, %v1262_v22  ;;  %v1092_v61 = vadd.f32 %v1060_v35, %v1024_v50  ;;  %v3021_v26 = vpop.f32.mrf.mxu1  ;;  %v994_v23 = vmul.f32 %v3409_v11, %v3528_v15 }
  0xf7   : > { %v3567_v27 = vld [vmem:[#allocation2 + $0x50] sm:$0xff]  ;;  %v1062_v30 = vmul.f32 %v3412_v12, %v3522_v9  ;;  %v1063_v50 = vmul.f32 %v3412_v12, %v3559_v36  ;;  %v5423_v38 = vmov 0.0   ;;  %853 = vst.msk [vmem:[#allocation2 + $0x81] sm:$0xff] %vm801_vm2, %v706_v53  ;;  %v727_v31 = vadd.f32 %v3021_v26, %v3376_v56 }
  0xf8   : > { %v3569_v3 = vld [vmem:[#allocation2 + $0x4a] sm:$0xff]  ;;  %1900 = vst.msk [vmem:[#allocation2 + $0x71] sm:$0x1] %vm811_vm3, %v5423_v38  ;;  %v1263_v22 = vadd.f32 %v1231_v51, %v1195_v55  ;;  %v1434_v35 = vadd.f32 %v3446_v32, %v1330_v52  ;;  %v1061_v57 = vmul.f32 %v3412_v12, %v3567_v27  ;;  %v3588_v37 = vld [vmem:[#allocation2 + $0x52] sm:$0xff]  ;;  %v718_v5 = vpop.f32.mrf.mxu1  ;;  %v1196_v44 = vadd.f32 %v3476_v59, %v1092_v61 }
  0xf9   : > { %v3571_v46 = vld [vmem:[#allocation2 + $0x51] sm:$0xff]  ;;  %v1540_v0 = vmul.f32 %v3436_v25, %v3569_v3  ;;  %v3597_v26 = vmul.f32 %v3436_v25, %v3588_v37  ;;  %1899 = vst.msk [vmem:[#allocation2 + $0x59] sm:$0x1] %vm811_vm3, %v5423_v38  ;;  %v719_v51 = vadd.f32 %v3376_v56, %v718_v5  ;;  %v959_v42 = vadd.f32 %v3403_v7, %v927_v45 }
  0xfa   : > { %v1301_v43 = vmul.f32 %v3418_v14, %v3571_v46  ;;  %v3601_v32 = vld [vmem:[#allocation2 + $0x90] sm:$0xff]  ;;  %858 = vst.msk [vmem:[#allocation2 + $0xc1] sm:$0xff] %vm801_vm2, %v727_v31  ;;  %v1331_v59 = vadd.f32 %v3491_v6, %v1263_v22  ;;  %v1502_v53 = vadd.f32 %v1470_v47, %v1434_v35  ;;  %v1093_v55 = vadd.f32 %v1061_v57, %v1025_v39  ;;  %v3022_v52 = vpop.f32.mrf.mxu1 }
  0xfb   : > { %1886 = vst.msk [vmem:[#allocation2 + $0x90] sm:$0x1] %vm811_vm3, %v5423_v38  ;;  %v1264_v61 = vadd.f32 %v3466_v40, %v1196_v44  ;;  %v995_v41 = vmul.f32 %v3409_v11, %v3567_v27  ;;  %v1026_v54 = vadd.f32 %v994_v23, %v3483_v1  ;;  %v3613_v31 = vld [vmem:[#allocation2 + $0x78] sm:$0xff]  ;;  %v730_v47 = vadd.f32 %v3022_v52, %v3376_v56 }
  0xfc   : > { %856 = vst.msk [vmem:[#allocation2 + $0xa9] sm:$0xff] %vm801_vm2, %v719_v51  ;;  %v1435_v5 = vadd.f32 %v3450_v28, %v1331_v59  ;;  %v1570_v6 = vadd.f32 %v3497_v20, %v1502_v53  ;;  %v1197_v39 = vadd.f32 %v3512_v29, %v1093_v55  ;;  %v721_v44 = vpop.f32.mrf.mxu1  ;;  %v1167_v1 = vmul.f32 %v3415_v13, %v3473_v58  ;;  %v3628_v29 = vld [vmem:[#allocation2 + $0x61] sm:$0xff] }
  0xfd   : > { %1885 = vst.msk [vmem:[#allocation2 + $0x78] sm:$0x1] %vm811_vm3, %v5423_v38  ;;  %v1332_v45 = vadd.f32 %v1300_v19, %v1264_v61  ;;  %v1027_v40 = vadd.f32 %v995_v41, %v959_v42  ;;  %v1094_v22 = vadd.f32 %v1062_v30, %v1026_v54  ;;  %v722_v23 = vadd.f32 %v3376_v56, %v721_v44  ;;  %v3630_v57 = vld [vmem:[#allocation2 + $0x9a] sm:$0xff]  ;;  %v3633_v54 = vld [vmem:[#allocation2 + $0x69] sm:$0xff] }
  0xfe   : > { %859 = vst.msk [vmem:[#allocation2 + $0xc9] sm:$0xff] %vm801_vm2, %v730_v47  ;;  %v1503_v28 = vadd.f32 %v3517_v63, %v1435_v5  ;;  %v1602_v35 = vmax.f32 %v1570_v6, 0.0  ;;  %v1265_v20 = vadd.f32 %v3535_v10, %v1197_v39  ;;  %v3025_v51 = vpop.f32.mrf.mxu1  ;;  %v1234_v19 = vmul.f32 %v3424_v17, %v3531_v48 }
  0xff   : > { %v1436_v41 = vadd.f32 %v3538_v33, %v1332_v45  ;;  %v1095_v42 = vadd.f32 %v1063_v50, %v1027_v40  ;;  %v1198_v58 = vadd.f32 %v3469_v49, %v1094_v22  ;;  %1902 = vst.msk [vmem:[#allocation2 + $0xa1] sm:$0x1] %vm811_vm3, %v5423_v38  ;;  %v743_v63 = vadd.f32 %v3025_v51, %v3376_v56  ;;  %v3645_v50 = vld [vmem:[#allocation2 + $0x82] sm:$0xff] }
 0x100   : > { %857 = vst.msk [vmem:[#allocation2 + $0xb1] sm:$0xff] %vm801_vm2, %v722_v23  ;;  %v1571_v10 = vadd.f32 %v3501_v16, %v1503_v28  ;;  %v1333_v30 = vadd.f32 %v1301_v43, %v1265_v20  ;;  %v1235_v33 = vmul.f32 %v3424_v17, %v3571_v46  ;;  %v734_v59 = vpop.f32.mrf.mxu1  ;;  %v1302_v52 = vmul.f32 %v3418_v14, %v3628_v29  ;;  %v3661_v45 = vld [vmem:[#allocation2 + $0x62] sm:$0xff] }
 0x101   : > { %v1504_v49 = vadd.f32 %v3553_v34, %v1436_v41  ;;  %v1199_v53 = vadd.f32 %v1167_v1, %v1095_v42  ;;  %v1266_v55 = vadd.f32 %v1234_v19, %v1198_v58  ;;  %1901 = vst.msk [vmem:[#allocation2 + $0x89] sm:$0x1] %vm811_vm3, %v5423_v38  ;;  %v3652_v61 = vld [vmem:[#allocation2 + $0xc0] sm:$0xff]  ;;  %v735_v43 = vadd.f32 %v3376_v56, %v734_v59 }
 0x102   : > { %862 = vst.msk [vmem:[#allocation2 + $0xf1] sm:$0xff] %vm801_vm2, %v743_v63  ;;  %v1603_v16 = vmax.f32 %v1571_v10, 0.0  ;;  %v1437_v47 = vadd.f32 %v3541_v21, %v1333_v30  ;;  %v1303_v34 = vmul.f32 %v3418_v14, %v3633_v54  ;;  %v3026_v5 = vpop.f32.mrf.mxu1  ;;  %v1406_v40 = vmul.f32 %v3427_v18, %v3479_v62 }
 0x103   : > { %1888 = vst.msk [vmem:[#allocation2 + $0xc0] sm:$0x1] %vm811_vm3, %v5423_v38  ;;  %v1572_v6 = vadd.f32 %v1540_v0, %v1504_v49  ;;  %v1267_v39 = vadd.f32 %v1235_v33, %v1199_v53  ;;  %v1334_v44 = vadd.f32 %v1302_v52, %v1266_v55  ;;  %v3665_v22 = vld [vmem:[#allocation2 + $0xa8] sm:$0xff]  ;;  %v746_v21 = vadd.f32 %v3026_v5, %v3376_v56  ;;  %v3694_v49 = vld [vmem:[#allocation2 + $0x80] sm:$0xff] }
 0x104   : > { %860 = vst.msk [vmem:[#allocation2 + $0xd9] sm:$0xff] %vm801_vm2, %v735_v43  ;;  %v1634_v1 = vpack.c.bf16 %v1603_v16, %v1602_v35  ;;  %v1505_v23 = vadd.f32 %v3557_v2, %v1437_v47  ;;  %v1407_v28 = vmul.f32 %v3427_v18, %v3493_v8  ;;  %v737_v0 = vpop.f32.mrf.mxu1  ;;  %v1474_v62 = vmul.f32 %v3433_v24, %v3569_v3 }
 0x105   : > { %1887 = vst.msk [vmem:[#allocation2 + $0xa8] sm:$0x1] %vm811_vm3, %v5423_v38  ;;  %v1604_v20 = vmax.f32 %v1572_v6, 0.0  ;;  %v1335_v51 = vadd.f32 %v1303_v34, %v1267_v39  ;;  %v1438_v41 = vadd.f32 %v1406_v40, %v1334_v44  ;;  %v738_v42 = vadd.f32 %v3376_v56, %v737_v0  ;;  %v3684_v58 = vld [vmem:[#allocation2 + $0xca] sm:$0xff]  ;;  %v3714_v40 = vld [vmem:[#allocation2 + $0x79] sm:$0xff] }
 0x106   : > { %863 = vst.msk [vmem:[#allocation2 + $0xf9] sm:$0xff] %vm801_vm2, %v746_v21  ;;  %3041 = vmatprep.mubr.msk.bf16.mxu0 %vm801_vm2, %v1634_v1  ;;  %v1573_v2 = vadd.f32 %v3597_v26, %v1505_v23  ;;  %v1475_v8 = vmul.f32 %v3433_v24, %v3588_v37  ;;  %v1542_v35 = vmul.f32 %v3436_v25, %v3661_v45  ;;  %v3029_v19 = vpop.f32.mrf.mxu1  ;;  %v3718_v21 = vld [vmem:[#allocation2 + $0x198] sm:$0xff] }
 0x107   : > { %v1439_v63 = vadd.f32 %v1407_v28, %v1335_v51  ;;  %v1506_v10 = vadd.f32 %v1474_v62, %v1438_v41  ;;  %v1543_v30 = vmul.f32 %v3436_v25, %v3565_v4  ;;  %v928_v33 = vmul.f32 %v3383_v60, %v3528_v15  ;;  %1904 = vst.msk [vmem:[#allocation2 + $0xd1] sm:$0x1] %vm811_vm3, %v5423_v38  ;;  %v3700_v52 = vld [vmem:[#allocation2 + $0xb2] sm:$0xff] }
 0x108   : > { %861 = vst.msk [vmem:[#allocation2 + $0xe1] sm:$0xff] %vm801_vm2, %v738_v42  ;;  %v759_v26 = vadd.f32 %v3029_v19, %v3376_v56  ;;  %v1605_v59 = vmax.f32 %v1573_v2, 0.0  ;;  %v929_v53 = vmul.f32 %v3383_v60, %v3567_v27  ;;  %v996_v55 = vmul.f32 %v3409_v11, %v3522_v9  ;;  %v750_v43 = vpop.f32.mrf.mxu1  ;;  %v3726_v41 = vld [vmem:[#allocation2 + $0x199] sm:$0xff]  ;;  %v3733_v2 = vld [vmem:[#allocation2 + $0x1a1] sm:$0xff] }
 0x109   : > { %v1507_v15 = vadd.f32 %v1475_v8, %v1439_v63  ;;  %v1574_v16 = vadd.f32 %v1542_v35, %v1506_v10  ;;  %v960_v47 = vadd.f32 %v3403_v7, %v928_v33  ;;  %v997_v34 = vmul.f32 %v3409_v11, %v3559_v36  ;;  %1903 = vst.msk [vmem:[#allocation2 + $0xb9] sm:$0x1] %vm811_vm3, %v5423_v38  ;;  %v3707_v5 = vld [vmem:[#allocation2 + $0xf0] sm:$0xff]  ;;  %v3735_v8 = vld [vmem:[#allocation2 + $0x19a] sm:$0xff]  ;;  %v3737_v35 = vld [vmem:[#allocation2 + $0x1a2] sm:$0xff] }
 0x10a   : > { %866 = vst.msk [vmem:[#allocation2 + $0x121] sm:$0xff] %vm801_vm2, %v759_v26  ;;  %v751_v27 = vadd.f32 %v3376_v56, %v750_v43  ;;  %v1635_v6 = vpack.c.bf16 %v1605_v59, %v1604_v20  ;;  %v961_v39 = vadd.f32 %v3403_v7, %v929_v53  ;;  %v1064_v44 = vmul.f32 %v3412_v12, %v3613_v31  ;;  %v3030_v1 = vpop.f32.mrf.mxu1  ;;  %v3724_v20 = vld [vmem:[#allocation2 + $0x1a0] sm:$0xff] }
 0x10b   : > { %1890 = vst.msk [vmem:[#allocation2 + $0xf0] sm:$0x1] %vm811_vm3, %v5423_v38  ;;  %v1575_v23 = vadd.f32 %v1543_v30, %v1507_v15  ;;  %v1028_v28 = vadd.f32 %v996_v55, %v960_v47  ;;  %v1065_v0 = vmul.f32 %v3412_v12, %v3694_v49  ;;  %v3722_v51 = vld [vmem:[#allocation2 + $0xd8] sm:$0xff]  ;;  %5424 = vst [vmem:[#allocation17_spill] sm:$0xff] %v3726_v41  ;;  %v1606_v63 = vmax.f32 %v1574_v16, 0.0  ;;  %v3739_v33 = vld [vmem:[#allocation2 + $0x81] sm:$0xff] }
 0x10c   : > { %864 = vst.msk [vmem:[#allocation2 + $0x109] sm:$0xff] %vm801_vm2, %v751_v27  ;;  %v762_v62 = vadd.f32 %v3030_v1, %v3376_v56  ;;  %3042 = vmatmul.mubr.msk.bf16.vlgmr.msra.gmra.mxu0 %vm801_vm2, %v1635_v6  ;;  %v1029_v42 = vadd.f32 %v997_v34, %v961_v39  ;;  %5425 = vst [vmem:[#allocation18_spill] sm:$0xff] %v3733_v2  ;;  %v753_v19 = vpop.f32.mrf.mxu1  ;;  %v1168_v26 = vmul.f32 %v3415_v13, %v3531_v48 }
 0x10d   : > { %1889 = vst.msk [vmem:[#allocation2 + $0xd8] sm:$0x1] %vm811_vm3, %v5423_v38  ;;  %5426 = vst [vmem:[#allocation19_spill] sm:$0xff] %v3735_v8  ;;  %v1607_v10 = vmax.f32 %v1575_v23, 0.0  ;;  %v1096_v30 = vadd.f32 %v1064_v44, %v1028_v28  ;;  %v754_v59 = vadd.f32 %v3376_v56, %v753_v19  ;;  %v1169_v55 = vmul.f32 %v3415_v13, %v3571_v46  ;;  %v3755_v43 = vld [vmem:[#allocation2 + $0xfa] sm:$0xff] }
 0x10e   : > { %5427 = vst [vmem:[#allocation20_spill] sm:$0xff] %v3737_v35  ;;  %1878 = vst.msk [vmem:[#allocation2 + $0x198] sm:$0xff] %vm801_vm2, %v5423_v38  ;;  %v1097_v53 = vadd.f32 %v1065_v0, %v1029_v42  ;;  %v1236_v48 = vmul.f32 %v3424_v17, %v3628_v29  ;;  %v3033_v16 = vpop.f32.mrf.mxu1  ;;  %v1237_v34 = vmul.f32 %v3424_v17, %v3633_v54  ;;  %v3772_v0 = vld [vmem:[#allocation2 + $0x7a] sm:$0xff] }
 0x10f   : > { %1879 = vst.msk [vmem:[#allocation2 + $0x1a0] sm:$0xff] %vm801_vm2, %v5423_v38  ;;  %867 = vst.msk [vmem:[#allocation2 + $0x129] sm:$0xff] %vm801_vm2, %v762_v62  ;;  %v1636_v15 = vpack.c.bf16 %v1607_v10, %v1606_v63  ;;  %v1200_v47 = vadd.f32 %v1168_v26, %v1096_v30  ;;  %v1304_v27 = vmul.f32 %v3418_v14, %v3714_v40  ;;  %v3769_v1 = vld [vmem:[#allocation2 + $0xe2] sm:$0xff] }
 0x110   : > { %1880 = vst.msk [vmem:[#allocation2 + $0x1a8] sm:$0x3] %vm804_vm4, %v5423_v38  ;;  %v775_v46 = vadd.f32 %v3033_v16, %v3376_v56  ;;  %v1201_v6 = vadd.f32 %v1169_v55, %v1097_v53  ;;  %v1305_v39 = vmul.f32 %v3418_v14, %v3739_v33  ;;  %v1408_v44 = vmul.f32 %v3427_v18, %v3569_v3  ;;  %v766_v23 = vpop.f32.mrf.mxu1  ;;  %v3794_v53 = vld [vmem:[#allocation2 + $0x98] sm:$0xff] }
 0x111   : > { %1906 = vst.msk [vmem:[#allocation2 + $0x101] sm:$0x1] %vm811_vm3, %v5423_v38  ;;  %3045 = vmatprep.mubr.msk.bf16.mxu0 %vm801_vm2, %v1636_v15  ;;  %v1268_v28 = vadd.f32 %v1236_v48, %v1200_v47  ;;  %v1409_v62 = vmul.f32 %v3427_v18, %v3588_v37  ;;  %v1476_v42 = vmul.f32 %v3433_v24, %v3661_v45  ;;  %1905 = vst.msk [vmem:[#allocation2 + $0xe9] sm:$0x1] %vm811_vm3, %v5423_v38  ;;  %v3782_v3 = vld [vmem:[#allocation2 + $0x120] sm:$0xff] }
 0x112   : > { %865 = vst.msk [vmem:[#allocation2 + $0x111] sm:$0xff] %vm801_vm2, %v754_v59  ;;  %v930_v19 = vmul.f32 %v3383_v60, %v3522_v9  ;;  %870 = vst.msk [vmem:[#allocation2 + $0x151] sm:$0xff] %vm801_vm2, %v775_v46  ;;  %v767_v63 = vadd.f32 %v3376_v56, %v766_v23  ;;  %v1269_v10 = vadd.f32 %v1237_v34, %v1201_v6  ;;  %v3034_v9 = vpop.f32.mrf.mxu1 }
 0x113   : > { %v931_v30 = vmul.f32 %v3383_v60, %v3559_v36  ;;  %v998_v37 = vmul.f32 %v3409_v11, %v3613_v31  ;;  %1892 = vst.msk [vmem:[#allocation2 + $0x120] sm:$0x1] %vm811_vm3, %v5423_v38  ;;  %v1336_v26 = vadd.f32 %v1304_v27, %v1268_v28  ;;  %v1477_v59 = vmul.f32 %v3433_v24, %v3565_v4  ;;  %v3799_v15 = vld [vmem:[#allocation2 + $0x108] sm:$0xff] }
 0x114   : > { %v962_v55 = vadd.f32 %v3403_v7, %v930_v19  ;;  %v999_v48 = vmul.f32 %v3409_v11, %v3694_v49  ;;  %868 = vst.msk [vmem:[#allocation2 + $0x139] sm:$0xff] %vm801_vm2, %v767_v63  ;;  %v778_v36 = vadd.f32 %v3034_v9, %v3376_v56  ;;  %v1337_v16 = vadd.f32 %v1305_v39, %v1269_v10  ;;  %v769_v6 = vpop.f32.mrf.mxu1 }
 0x115   : > { %v1544_v47 = vmul.f32 %v3436_v25, %v3772_v0  ;;  %v963_v34 = vadd.f32 %v3403_v7, %v931_v30  ;;  %1891 = vst.msk [vmem:[#allocation2 + $0x108] sm:$0x1] %vm811_vm3, %v5423_v38  ;;  %v1440_v27 = vadd.f32 %v1408_v44, %v1336_v26  ;;  %v1545_v46 = vmul.f32 %v3436_v25, %v3645_v50  ;;  %v3816_v30 = vld [vmem:[#allocation2 + $0x91] sm:$0xff]  ;;  %v3818_v44 = vld [vmem:[#allocation2 + $0x99] sm:$0xff] }
 0x116   : > { %v1030_v23 = vadd.f32 %v998_v37, %v962_v55  ;;  %v1066_v28 = vmul.f32 %v3412_v12, %v3601_v32  ;;  %871 = vst.msk [vmem:[#allocation2 + $0x159] sm:$0xff] %vm801_vm2, %v778_v36  ;;  %v1441_v39 = vadd.f32 %v1409_v62, %v1337_v16  ;;  %v770_v19 = vadd.f32 %v3376_v56, %v769_v6  ;;  %v3820_v9 = vld [vmem:[#allocation2 + $0x12a] sm:$0xff]  ;;  %v3037_v36 = vpop.f32.mrf.mxu1 }
 0x117   : > { %v1031_v63 = vadd.f32 %v999_v48, %v963_v34  ;;  %v1067_v10 = vmul.f32 %v3412_v12, %v3794_v53  ;;  %v1508_v26 = vadd.f32 %v1476_v42, %v1440_v27  ;;  %v1170_v55 = vmul.f32 %v3415_v13, %v3628_v29  ;;  %1908 = vst.msk [vmem:[#allocation2 + $0x131] sm:$0x1] %vm811_vm3, %v5423_v38 }
 0x118   : > { %v1098_v37 = vadd.f32 %v1066_v28, %v1030_v23  ;;  %v1171_v62 = vmul.f32 %v3415_v13, %v3633_v54  ;;  %v1509_v48 = vadd.f32 %v1477_v59, %v1441_v39  ;;  %869 = vst.msk [vmem:[#allocation2 + $0x141] sm:$0xff] %vm801_vm2, %v770_v19  ;;  %v1238_v34 = vmul.f32 %v3424_v17, %v3714_v40  ;;  %v782_v59 = vpop.f32.mrf.mxu1 }
 0x119   : > { %v1099_v16 = vadd.f32 %v1067_v10, %v1031_v63  ;;  %v1239_v42 = vmul.f32 %v3424_v17, %v3739_v33  ;;  %v3833_v27 = vld [vmem:[#allocation2 + $0x112] sm:$0xff]  ;;  %v1576_v29 = vadd.f32 %v1544_v47, %v1508_v26  ;;  %v1306_v54 = vmul.f32 %v3418_v14, %v3816_v30 }
 0x11a   : > { %v1202_v6 = vadd.f32 %v1170_v55, %v1098_v37  ;;  %v1307_v23 = vmul.f32 %v3418_v14, %v3818_v44  ;;  %1907 = vst.msk [vmem:[#allocation2 + $0x119] sm:$0x1] %vm811_vm3, %v5423_v38  ;;  %v3841_v28 = vld [vmem:[#allocation2 + $0x150] sm:$0xff]  ;;  %v1577_v39 = vadd.f32 %v1545_v46, %v1509_v48  ;;  %v1410_v63 = vmul.f32 %v3427_v18, %v3661_v45  ;;  %v3038_v35 = vpop.f32.mrf.mxu1 }
 0x11b   : > { %v1203_v19 = vadd.f32 %v1171_v62, %v1099_v16  ;;  %v1411_v47 = vmul.f32 %v3427_v18, %v3565_v4  ;;  %1894 = vst.msk [vmem:[#allocation2 + $0x150] sm:$0x1] %vm811_vm3, %v5423_v38  ;;  %v1608_v10 = vmax.f32 %v1576_v29, 0.0  ;;  %v1478_v37 = vmul.f32 %v3433_v24, %v3772_v0  ;;  %v3852_v8 = vld [vmem:[#allocation2 + $0x138] sm:$0xff]  ;;  %v3856_v4 = vld [vmem:[#allocation2 + $0xb0] sm:$0xff] }
 0x11c   : > { %v1270_v26 = vadd.f32 %v1238_v34, %v1202_v6  ;;  %v791_v55 = vadd.f32 %v3037_v36, %v3376_v56  ;;  %v1609_v46 = vmax.f32 %v1577_v39, 0.0  ;;  %v783_v45 = vadd.f32 %v3376_v56, %v782_v59  ;;  %1893 = vst.msk [vmem:[#allocation2 + $0x138] sm:$0x1] %vm811_vm3, %v5423_v38  ;;  %v3860_v34 = vld [vmem:[#allocation2 + $0x92] sm:$0xff] }
 0x11d   : > { %v1271_v62 = vadd.f32 %v1239_v42, %v1203_v19  ;;  %v794_v48 = vadd.f32 %v3038_v35, %v3376_v56  ;;  %v932_v36 = vmul.f32 %v3383_v60, %v3613_v31  ;;  %v933_v42 = vmul.f32 %v3383_v60, %v3694_v49  ;;  %v3875_v39 = vld [vmem:[#allocation2 + $0x15a] sm:$0xff] }
 0x11e   : > { %v1338_v16 = vadd.f32 %v1306_v54, %v1270_v26  ;;  %874 = vst.msk [vmem:[#allocation2 + $0x181] sm:$0xff] %vm801_vm2, %v791_v55  ;;  %v1000_v29 = vmul.f32 %v3409_v11, %v3601_v32  ;;  %v1637_v35 = vpack.c.bf16 %v1609_v46, %v1608_v10  ;;  %872 = vst.msk [vmem:[#allocation2 + $0x169] sm:$0xff] %vm801_vm2, %v783_v45 }
 0x11f   : > { %v1339_v6 = vadd.f32 %v1307_v23, %v1271_v62  ;;  %875 = vst.msk [vmem:[#allocation2 + $0x189] sm:$0xff] %vm801_vm2, %v794_v48  ;;  %v1001_v54 = vmul.f32 %v3409_v11, %v3794_v53  ;;  %v1068_v59 = vmul.f32 %v3412_v12, %v3665_v22  ;;  %v964_v49 = vadd.f32 %v3403_v7, %v932_v36  ;;  %v3894_v36 = vld [vmem:[#allocation2 + $0xb1] sm:$0xff] }
 0x120   : > { %v1442_v31 = vadd.f32 %v1410_v63, %v1338_v16  ;;  %v965_v19 = vadd.f32 %v3403_v7, %v933_v42  ;;  %v1069_v23 = vmul.f32 %v3412_v12, %v3856_v4  ;;  %1910 = vst.msk [vmem:[#allocation2 + $0x161] sm:$0x1] %vm811_vm3, %v5423_v38  ;;  %3046 = vmatmul.mubr.msk.bf16.gmra.mxu0 %vm801_vm2, %v1637_v35  ;;  %v3888_v63 = vld [vmem:[#allocation2 + $0x142] sm:$0xff] }
 0x121   : > { %v1443_v10 = vadd.f32 %v1411_v47, %v1339_v6  ;;  %v1479_v26 = vmul.f32 %v3433_v24, %v3645_v50  ;;  %v1546_v55 = vmul.f32 %v3436_v25, %v3860_v34  ;;  %v1547_v62 = vmul.f32 %v3436_v25, %v3630_v57  ;;  %v3892_v16 = vld [vmem:[#allocation2 + $0xa9] sm:$0xff]  ;;  %1909 = vst.msk [vmem:[#allocation2 + $0x149] sm:$0x1] %vm811_vm3, %v5423_v38 }
 0x122   : > { %v1510_v46 = vadd.f32 %v1478_v37, %v1442_v31  ;;  %v1032_v45 = vadd.f32 %v1000_v29, %v964_v49  ;;  %v1033_v48 = vadd.f32 %v1001_v54, %v965_v19  ;;  %v1172_v42 = vmul.f32 %v3415_v13, %v3714_v40  ;;  %v785_v49 = vpop.f32.mrf.mxu1 }
 0x123   : > { %v1511_v47 = vadd.f32 %v1479_v26, %v1443_v10  ;;  %v1173_v35 = vmul.f32 %v3415_v13, %v3739_v33  ;;  %v1240_v37 = vmul.f32 %v3424_v17, %v3816_v30  ;;  %v1241_v31 = vmul.f32 %v3424_v17, %v3818_v44 }
 0x124   : > { %v1578_v6 = vadd.f32 %v1546_v55, %v1510_v46  ;;  %v1100_v29 = vadd.f32 %v1068_v59, %v1032_v45  ;;  %v1101_v54 = vadd.f32 %v1069_v23, %v1033_v48  ;;  %v1308_v10 = vmul.f32 %v3418_v14, %v3892_v16  ;;  %v3920_v45 = vld [vmem:[#allocation2 + $0xaa] sm:$0xff] }
 0x125   : > { %v1579_v19 = vadd.f32 %v1547_v62, %v1511_v47  ;;  %v1309_v40 = vmul.f32 %v3418_v14, %v3894_v36  ;;  %v1412_v33 = vmul.f32 %v3427_v18, %v3772_v0  ;;  %v3912_v26 = vld [vmem:[#allocation2 + $0x180] sm:$0xff]  ;;  %v1413_v23 = vmul.f32 %v3427_v18, %v3645_v50  ;;  %v3916_v46 = vld [vmem:[#allocation2 + $0x168] sm:$0xff] }
 0x126   : > { %v1610_v2 = vmax.f32 %v1578_v6, 0.0  ;;  %v1204_v55 = vadd.f32 %v1172_v42, %v1100_v29  ;;  %v1205_v59 = vadd.f32 %v1173_v35, %v1101_v54  ;;  %1896 = vst.msk [vmem:[#allocation2 + $0x180] sm:$0x1] %vm811_vm3, %v5423_v38  ;;  %v786_v48 = vadd.f32 %v3376_v56, %v785_v49  ;;  %1895 = vst.msk [vmem:[#allocation2 + $0x168] sm:$0x1] %vm811_vm3, %v5423_v38  ;;  %v3929_v50 = vld [vmem:[#allocation2 + $0x18a] sm:$0xff] }
 0x127   : > { %v1611_v62 = vmax.f32 %v1579_v19, 0.0  ;;  %v934_v0 = vmul.f32 %v3383_v60, %v3601_v32  ;;  %v935_v47 = vmul.f32 %v3383_v60, %v3794_v53  ;;  %v3931_v6 = vld [vmem:[#allocation2 + $0xc8] sm:$0xff]  ;;  %v1002_v29 = vmul.f32 %v3409_v11, %v3665_v22  ;;  %1912 = vst.msk [vmem:[#allocation2 + $0x191] sm:$0x1] %vm811_vm3, %v5423_v38 }
 0x128   : > { %v1272_v42 = vadd.f32 %v1240_v37, %v1204_v55  ;;  %v1273_v35 = vadd.f32 %v1241_v31, %v1205_v59  ;;  %v1003_v56 = vmul.f32 %v3409_v11, %v3856_v4  ;;  %v1480_v53 = vmul.f32 %v3433_v24, %v3860_v34  ;;  %873 = vst.msk [vmem:[#allocation2 + $0x171] sm:$0xff] %vm801_vm2, %v786_v48 }
 0x129   : > { %v1638_v32 = vpack.c.bf16 %v1611_v62, %v1610_v2  ;;  %v966_v37 = vadd.f32 %v3403_v7, %v934_v0  ;;  %v967_v54 = vadd.f32 %v3403_v7, %v935_v47  ;;  %v1481_v19 = vmul.f32 %v3433_v24, %v3630_v57  ;;  %v3953_v0 = vld [vmem:[#allocation2 + $0xc1] sm:$0xff] }
 0x12a   : > { %v1340_v31 = vadd.f32 %v1308_v10, %v1272_v42  ;;  %v1341_v49 = vadd.f32 %v1309_v40, %v1273_v35  ;;  %v1548_v55 = vmul.f32 %v3436_v25, %v3920_v45  ;;  %v1070_v62 = vmul.f32 %v3412_v12, %v3652_v61  ;;  %v3957_v42 = vld [vmem:[#allocation2 + $0xc9] sm:$0xff] }
 0x12b   : > { %3049 = vmatprep.mubr.msk.bf16.mxu0 %vm801_vm2, %v1638_v32  ;;  %v1034_v2 = vadd.f32 %v1002_v29, %v966_v37  ;;  %v1035_v59 = vadd.f32 %v1003_v56, %v967_v54  ;;  %v1071_v48 = vmul.f32 %v3412_v12, %v3931_v6  ;;  %v1549_v47 = vmul.f32 %v3436_v25, %v3700_v52 }
 0x12c   : > { %v1444_v10 = vadd.f32 %v1412_v33, %v1340_v31  ;;  %v1445_v40 = vadd.f32 %v1413_v23, %v1341_v49  ;;  %v1174_v35 = vmul.f32 %v3415_v13, %v3816_v30  ;;  %v1175_v32 = vmul.f32 %v3415_v13, %v3818_v44 }
 0x12d   : > { %v1102_v29 = vadd.f32 %v1070_v62, %v1034_v2  ;;  %v1103_v56 = vadd.f32 %v1071_v48, %v1035_v59  ;;  %v1242_v37 = vmul.f32 %v3424_v17, %v3892_v16  ;;  %v1243_v33 = vmul.f32 %v3424_v17, %v3894_v36 }
 0x12e   : > { %v1512_v54 = vadd.f32 %v1480_v53, %v1444_v10  ;;  %v1513_v41 = vadd.f32 %v1481_v19, %v1445_v40  ;;  %v1310_v23 = vmul.f32 %v3418_v14, %v3953_v0  ;;  %v1311_v30 = vmul.f32 %v3418_v14, %v3957_v42  ;;  %v3977_v10 = vld [vmem:[#allocation2 + $0xe0] sm:$0xff] }
 0x12f   : > { %v1206_v31 = vadd.f32 %v1174_v35, %v1102_v29  ;;  %v1207_v49 = vadd.f32 %v1175_v32, %v1103_v56  ;;  %v1414_v2 = vmul.f32 %v3427_v18, %v3860_v34  ;;  %v1415_v53 = vmul.f32 %v3427_v18, %v3630_v57  ;;  %v3983_v29 = vld [vmem:[#allocation2 + $0x172] sm:$0xff]  ;;  %v3990_v56 = vld [vmem:[#allocation2 + $0xc2] sm:$0xff] }
 0x130   : > { %v1580_v44 = vadd.f32 %v1548_v55, %v1512_v54  ;;  %v1581_v59 = vadd.f32 %v1549_v47, %v1513_v41  ;;  %v936_v19 = vmul.f32 %v3383_v60, %v3665_v22  ;;  %v937_v40 = vmul.f32 %v3383_v60, %v3856_v4  ;;  %1911 = vst.msk [vmem:[#allocation2 + $0x179] sm:$0x1] %vm811_vm3, %v5423_v38 }
 0x131   : > { %v1274_v62 = vadd.f32 %v1242_v37, %v1206_v31  ;;  %v1275_v48 = vadd.f32 %v1243_v33, %v1207_v49  ;;  %v1004_v35 = vmul.f32 %v3409_v11, %v3652_v61  ;;  %v1005_v57 = vmul.f32 %v3409_v11, %v3931_v6 }
 0x132   : > { %v1612_v34 = vmax.f32 %v1580_v44, 0.0  ;;  %v1613_v41 = vmax.f32 %v1581_v59, 0.0  ;;  %v968_v55 = vadd.f32 %v3403_v7, %v936_v19  ;;  %v969_v4 = vadd.f32 %v3403_v7, %v937_v40 }
 0x133   : > { %v1342_v22 = vadd.f32 %v1310_v23, %v1274_v62  ;;  %v1343_v47 = vadd.f32 %v1311_v30, %v1275_v48  ;;  %v1072_v32 = vmul.f32 %v3412_v12, %v3722_v51  ;;  %v1482_v54 = vmul.f32 %v3433_v24, %v3920_v45  ;;  %v4001_v30 = vld [vmem:[#allocation2 + $0xd9] sm:$0xff]  ;;  %v4008_v48 = vld [vmem:[#allocation2 + $0xe1] sm:$0xff] }
 0x134   : > { %v1639_v37 = vpack.c.bf16 %v1613_v41, %v1612_v34  ;;  %v1036_v33 = vadd.f32 %v1004_v35, %v968_v55  ;;  %v1073_v31 = vmul.f32 %v3412_v12, %v3977_v10  ;;  %v1483_v38 = vmul.f32 %v3433_v24, %v3700_v52 }
 0x135   : > { %v1446_v49 = vadd.f32 %v1414_v2, %v1342_v22  ;;  %v1447_v44 = vadd.f32 %v1415_v53, %v1343_v47  ;;  %v1037_v23 = vadd.f32 %v1005_v57, %v969_v4  ;;  %v1550_v59 = vmul.f32 %v3436_v25, %v3990_v56 }
 0x136   : > { %3050 = vmatmul.mubr.msk.bf16.gmra.mxu0 %vm801_vm2, %v1639_v37  ;;  %v1551_v19 = vmul.f32 %v3436_v25, %v3684_v58  ;;  %v1104_v62 = vadd.f32 %v1072_v32, %v1036_v33  ;;  %v1176_v2 = vmul.f32 %v3415_v13, %v3892_v16  ;;  %v1177_v34 = vmul.f32 %v3415_v13, %v3894_v36 }
 0x137   : > { %v1514_v53 = vadd.f32 %v1482_v54, %v1446_v49  ;;  %v1515_v40 = vadd.f32 %v1483_v38, %v1447_v44  ;;  %v1105_v35 = vadd.f32 %v1073_v31, %v1037_v23  ;;  %v1244_v55 = vmul.f32 %v3424_v17, %v3953_v0 }
 0x138   : > { %v1208_v41 = vadd.f32 %v1176_v2, %v1104_v62  ;;  %v1245_v57 = vmul.f32 %v3424_v17, %v3957_v42  ;;  %v1312_v22 = vmul.f32 %v3418_v14, %v4001_v30  ;;  %v1313_v16 = vmul.f32 %v3418_v14, %v4008_v48 }
 0x139   : > { %v1582_v47 = vadd.f32 %v1550_v59, %v1514_v53  ;;  %v1583_v4 = vadd.f32 %v1551_v19, %v1515_v40  ;;  %v1209_v32 = vadd.f32 %v1177_v34, %v1105_v35  ;;  %v1416_v36 = vmul.f32 %v3427_v18, %v3920_v45  ;;  %v4030_v59 = vld [vmem:[#allocation2 + $0xda] sm:$0xff] }
 0x13a   : > { %v1276_v37 = vadd.f32 %v1244_v55, %v1208_v41  ;;  %v1417_v54 = vmul.f32 %v3427_v18, %v3700_v52  ;;  %v938_v33 = vmul.f32 %v3383_v60, %v3652_v61  ;;  %v939_v38 = vmul.f32 %v3383_v60, %v3931_v6  ;;  %v4032_v19 = vld [vmem:[#allocation2 + $0xf8] sm:$0xff]  ;;  %v4044_v6 = vld [vmem:[%s5391_s4] ss:$0 sm:$0xff] }
 0x13b   : > { %v1614_v31 = vmax.f32 %v1582_v47, 0.0  ;;  %v1615_v49 = vmax.f32 %v1583_v4, 0.0  ;;  %v1277_v44 = vadd.f32 %v1245_v57, %v1209_v32  ;;  %v1006_v45 = vmul.f32 %v3409_v11, %v3722_v51  ;;  %v4056_v4 = vld [vmem:[#allocation2 + $0xf1] sm:$0xff] }
 0x13c   : > { %v1344_v23 = vadd.f32 %v1312_v22, %v1276_v37  ;;  %v970_v62 = vadd.f32 %v3403_v7, %v938_v33  ;;  %v1007_v52 = vmul.f32 %v3409_v11, %v3977_v10  ;;  %v1484_v53 = vmul.f32 %v3433_v24, %v3990_v56 }
 0x13d   : > { %v1640_v61 = vpack.c.bf16 %v1615_v49, %v1614_v31  ;;  %v1345_v2 = vadd.f32 %v1313_v16, %v1277_v44  ;;  %v971_v40 = vadd.f32 %v4044_v6, %v939_v38  ;;  %v1485_v7 = vmul.f32 %v3433_v24, %v3684_v58 }
 0x13e   : > { %v1448_v35 = vadd.f32 %v1416_v36, %v1344_v23  ;;  %v1038_v34 = vadd.f32 %v1006_v45, %v970_v62  ;;  %v1074_v41 = vmul.f32 %v3412_v12, %v3707_v5  ;;  %v1552_v57 = vmul.f32 %v3436_v25, %v4030_v59  ;;  %v4060_v36 = vld [vmem:[#allocation2 + $0xf9] sm:$0xff] }
 0x13f   : > { %3053 = vmatprep.mubr.msk.bf16.mxu0 %vm801_vm2, %v1640_v61  ;;  %v1449_v55 = vadd.f32 %v1417_v54, %v1345_v2  ;;  %v1039_v22 = vadd.f32 %v1007_v52, %v971_v40  ;;  %v1075_v47 = vmul.f32 %v3412_v12, %v4032_v19  ;;  %v1553_v16 = vmul.f32 %v3436_v25, %v3769_v1 }
 0x140   : > { %v1516_v32 = vadd.f32 %v1484_v53, %v1448_v35  ;;  %v1106_v37 = vadd.f32 %v1074_v41, %v1038_v34  ;;  %v1178_v33 = vmul.f32 %v3415_v13, %v3953_v0  ;;  %v1179_v49 = vmul.f32 %v3415_v13, %v3957_v42  ;;  %v4078_v35 = vld [vmem:[#allocation2 + $0x110] sm:$0xff] }
 0x141   : > { %v1517_v54 = vadd.f32 %v1485_v7, %v1449_v55  ;;  %v1107_v31 = vadd.f32 %v1075_v47, %v1039_v22  ;;  %v1246_v44 = vmul.f32 %v3424_v17, %v4001_v30  ;;  %v1247_v62 = vmul.f32 %v3424_v17, %v4008_v48 }
 0x142   : > { %v1584_v38 = vadd.f32 %v1552_v57, %v1516_v32  ;;  %v1210_v23 = vadd.f32 %v1178_v33, %v1106_v37  ;;  %v1314_v45 = vmul.f32 %v3418_v14, %v4056_v4  ;;  %v1315_v0 = vmul.f32 %v3418_v14, %v4060_v36 }
 0x143   : > { %v1585_v52 = vadd.f32 %v1553_v16, %v1517_v54  ;;  %v1211_v61 = vadd.f32 %v1179_v49, %v1107_v31  ;;  %v1418_v2 = vmul.f32 %v3427_v18, %v3990_v56  ;;  %v1419_v40 = vmul.f32 %v3427_v18, %v3684_v58  ;;  %v4086_v56 = vld [vmem:[#allocation2 + $0xf2] sm:$0xff] }
 0x144   : > { %v1616_v42 = vmax.f32 %v1584_v38, 0.0  ;;  %v1278_v53 = vadd.f32 %v1246_v44, %v1210_v23  ;;  %v940_v7 = vmul.f32 %v3383_v60, %v3722_v51  ;;  %v941_v55 = vmul.f32 %v3383_v60, %v3977_v10 }
 0x145   : > { %v1617_v34 = vmax.f32 %v1585_v52, 0.0  ;;  %v1279_v41 = vadd.f32 %v1247_v62, %v1211_v61  ;;  %v1008_v57 = vmul.f32 %v3409_v11, %v3707_v5  ;;  %v1009_v58 = vmul.f32 %v3409_v11, %v4032_v19  ;;  %v4107_v52 = vld [vmem:[#allocation2 + $0x111] sm:$0xff] }
 0x146   : > { %v1346_v22 = vadd.f32 %v1314_v45, %v1278_v53  ;;  %v972_v47 = vadd.f32 %v4044_v6, %v940_v7  ;;  %v1076_v32 = vmul.f32 %v3412_v12, %v3799_v15  ;;  %v973_v37 = vadd.f32 %v4044_v6, %v941_v55  ;;  %v4105_v45 = vld [vmem:[#allocation2 + $0x109] sm:$0xff] }
 0x147   : > { %v1641_v51 = vpack.c.bf16 %v1617_v34, %v1616_v42  ;;  %v1347_v16 = vadd.f32 %v1315_v0, %v1279_v41  ;;  %v1077_v10 = vmul.f32 %v3412_v12, %v4078_v35  ;;  %v1486_v54 = vmul.f32 %v3433_v24, %v4030_v59 }
 0x148   : > { %v1450_v33 = vadd.f32 %v1418_v2, %v1346_v22  ;;  %v1487_v31 = vmul.f32 %v3433_v24, %v3769_v1  ;;  %v1040_v49 = vadd.f32 %v1008_v57, %v972_v47  ;;  %v1554_v38 = vmul.f32 %v3436_v25, %v4086_v56 }
 0x149   : > { %3054 = vmatmul.mubr.msk.bf16.gmra.mxu0 %vm801_vm2, %v1641_v51  ;;  %v1451_v44 = vadd.f32 %v1419_v40, %v1347_v16  ;;  %v1555_v23 = vmul.f32 %v3436_v25, %v3755_v43  ;;  %v1041_v62 = vadd.f32 %v1009_v58, %v973_v37  ;;  %v1180_v2 = vmul.f32 %v3415_v13, %v4001_v30 }
 0x14a   : > { %v1518_v61 = vadd.f32 %v1486_v54, %v1450_v33  ;;  %v1108_v0 = vadd.f32 %v1076_v32, %v1040_v49  ;;  %v1181_v42 = vmul.f32 %v3415_v13, %v4008_v48  ;;  %v1248_v7 = vmul.f32 %v3424_v17, %v4056_v4  ;;  %v4129_v54 = vld [vmem:[#allocation2 + $0x128] sm:$0xff] }
 0x14b   : > { %v1519_v53 = vadd.f32 %v1487_v31, %v1451_v44  ;;  %v1109_v40 = vadd.f32 %v1077_v10, %v1041_v62  ;;  %v1249_v34 = vmul.f32 %v3424_v17, %v4060_v36  ;;  %v1316_v57 = vmul.f32 %v3418_v14, %v4105_v45 }
 0x14c   : > { %v1586_v41 = vadd.f32 %v1554_v38, %v1518_v61  ;;  %v1212_v55 = vadd.f32 %v1180_v2, %v1108_v0  ;;  %v1317_v22 = vmul.f32 %v3418_v14, %v4107_v52  ;;  %v1420_v48 = vmul.f32 %v3427_v18, %v4030_v59 }
 0x14d   : > { %v1587_v30 = vadd.f32 %v1555_v23, %v1519_v53  ;;  %v1213_v47 = vadd.f32 %v1181_v42, %v1109_v40  ;;  %v1421_v58 = vmul.f32 %v3427_v18, %v3769_v1  ;;  %v942_v16 = vmul.f32 %v3383_v60, %v3707_v5  ;;  %v4135_v1 = vld [vmem:[#allocation2 + $0x10a] sm:$0xff]  ;;  %v4147_v40 = vld [vmem:[#allocation2 + $0x121] sm:$0xff] }
 0x14e   : > { %v1618_v32 = vmax.f32 %v1586_v41, 0.0  ;;  %v1280_v51 = vadd.f32 %v1248_v7, %v1212_v55  ;;  %v943_v37 = vmul.f32 %v3383_v60, %v4032_v19  ;;  %v1010_v31 = vmul.f32 %v3409_v11, %v3799_v15  ;;  %v4154_v55 = vld [vmem:[#allocation2 + $0x129] sm:$0xff] }
 0x14f   : > { %v1619_v10 = vmax.f32 %v1587_v30, 0.0  ;;  %v1281_v33 = vadd.f32 %v1249_v34, %v1213_v47  ;;  %v1011_v59 = vmul.f32 %v3409_v11, %v4078_v35  ;;  %v1488_v44 = vmul.f32 %v3433_v24, %v4086_v56 }
 0x150   : > { %v1348_v49 = vadd.f32 %v1316_v57, %v1280_v51  ;;  %v974_v5 = vadd.f32 %v4044_v6, %v942_v16  ;;  %v975_v19 = vadd.f32 %v4044_v6, %v943_v37  ;;  %v1489_v62 = vmul.f32 %v3433_v24, %v3755_v43 }
 0x151   : > { %v1642_v38 = vpack.c.bf16 %v1619_v10, %v1618_v32  ;;  %v1349_v23 = vadd.f32 %v1317_v22, %v1281_v33  ;;  %v1078_v61 = vmul.f32 %v3412_v12, %v3782_v3  ;;  %v1079_v53 = vmul.f32 %v3412_v12, %v4129_v54 }
 0x152   : > { %v1452_v0 = vadd.f32 %v1420_v48, %v1348_v49  ;;  %v1042_v2 = vadd.f32 %v1010_v31, %v974_v5  ;;  %v1043_v42 = vadd.f32 %v1011_v59, %v975_v19  ;;  %v1556_v34 = vmul.f32 %v3436_v25, %v4135_v1 }
 0x153   : > { %3057 = vmatprep.mubr.msk.bf16.mxu0 %vm801_vm2, %v1642_v38  ;;  %v1453_v7 = vadd.f32 %v1421_v58, %v1349_v23  ;;  %v1557_v41 = vmul.f32 %v3436_v25, %v3833_v27  ;;  %v1182_v57 = vmul.f32 %v3415_v13, %v4056_v4  ;;  %v1183_v48 = vmul.f32 %v3415_v13, %v4060_v36  ;;  %v4174_v38 = vld [vmem:[#allocation2 + $0x140] sm:$0xff] }
 0x154   : > { %v1520_v22 = vadd.f32 %v1488_v44, %v1452_v0  ;;  %v1110_v30 = vadd.f32 %v1078_v61, %v1042_v2  ;;  %v1111_v47 = vadd.f32 %v1079_v53, %v1043_v42  ;;  %v1250_v58 = vmul.f32 %v3424_v17, %v4105_v45 }
 0x155   : > { %v1521_v32 = vadd.f32 %v1489_v62, %v1453_v7  ;;  %v1251_v51 = vmul.f32 %v3424_v17, %v4107_v52  ;;  %v1318_v16 = vmul.f32 %v3418_v14, %v4147_v40  ;;  %v1319_v4 = vmul.f32 %v3418_v14, %v4154_v55 }
 0x156   : > { %v1588_v37 = vadd.f32 %v1556_v34, %v1520_v22  ;;  %v1214_v10 = vadd.f32 %v1182_v57, %v1110_v30  ;;  %v1215_v33 = vadd.f32 %v1183_v48, %v1111_v47  ;;  %v1422_v36 = vmul.f32 %v3427_v18, %v4086_v56  ;;  %v4194_v48 = vld [vmem:[#allocation2 + $0x139] sm:$0xff] }
 0x157   : > { %v1589_v31 = vadd.f32 %v1557_v41, %v1521_v32  ;;  %v1423_v59 = vmul.f32 %v3427_v18, %v3755_v43  ;;  %v944_v49 = vmul.f32 %v3383_v60, %v3799_v15  ;;  %v945_v23 = vmul.f32 %v3383_v60, %v4078_v35  ;;  %v4183_v15 = vld [vmem:[#allocation2 + $0x122] sm:$0xff] }
 0x158   : > { %v1620_v44 = vmax.f32 %v1588_v37, 0.0  ;;  %v1282_v5 = vadd.f32 %v1250_v58, %v1214_v10  ;;  %v1283_v19 = vadd.f32 %v1251_v51, %v1215_v33  ;;  %v1012_v56 = vmul.f32 %v3409_v11, %v3782_v3 }
 0x159   : > { %v1621_v62 = vmax.f32 %v1589_v31, 0.0  ;;  %v976_v61 = vadd.f32 %v4044_v6, %v944_v49  ;;  %v1013_v43 = vmul.f32 %v3409_v11, %v4129_v54  ;;  %v977_v42 = vadd.f32 %v4044_v6, %v945_v23 }
 0x15a   : > { %v1350_v0 = vadd.f32 %v1318_v16, %v1282_v5  ;;  %v1351_v2 = vadd.f32 %v1319_v4, %v1283_v19  ;;  %v1080_v53 = vmul.f32 %v3412_v12, %v3852_v8  ;;  %v1490_v35 = vmul.f32 %v3433_v24, %v4135_v1  ;;  %v4201_v16 = vld [vmem:[#allocation2 + $0x141] sm:$0xff] }
 0x15b   : > { %v1643_v7 = vpack.c.bf16 %v1621_v62, %v1620_v44  ;;  %v1044_v34 = vadd.f32 %v1012_v56, %v976_v61  ;;  %v1081_v41 = vmul.f32 %v3412_v12, %v4174_v38  ;;  %v1491_v30 = vmul.f32 %v3433_v24, %v3833_v27 }
 0x15c   : > { %v1454_v57 = vadd.f32 %v1422_v36, %v1350_v0  ;;  %v1455_v22 = vadd.f32 %v1423_v59, %v1351_v2  ;;  %v1045_v47 = vadd.f32 %v1013_v43, %v977_v42  ;;  %v1558_v32 = vmul.f32 %v3436_v25, %v4183_v15 }
 0x15d   : > { %3058 = vmatmul.mubr.msk.bf16.gmra.mxu0 %vm801_vm2, %v1643_v7  ;;  %v1559_v58 = vmul.f32 %v3436_v25, %v3820_v9  ;;  %v1112_v51 = vadd.f32 %v1080_v53, %v1044_v34  ;;  %v1184_v37 = vmul.f32 %v3415_v13, %v4105_v45  ;;  %v1185_v31 = vmul.f32 %v3415_v13, %v4107_v52  ;;  %v4223_v7 = vld [vmem:[#allocation2 + $0x13a] sm:$0xff] }
 0x15e   : > { %v1522_v10 = vadd.f32 %v1490_v35, %v1454_v57  ;;  %v1523_v33 = vadd.f32 %v1491_v30, %v1455_v22  ;;  %v1113_v4 = vadd.f32 %v1081_v41, %v1045_v47  ;;  %v1252_v59 = vmul.f32 %v3424_v17, %v4147_v40  ;;  %v4225_v35 = vld [vmem:[#allocation2 + $0x158] sm:$0xff] }
 0x15f   : > { %v1216_v36 = vadd.f32 %v1184_v37, %v1112_v51  ;;  %v1253_v49 = vmul.f32 %v3424_v17, %v4154_v55  ;;  %v1320_v44 = vmul.f32 %v3418_v14, %v4194_v48  ;;  %v1321_v45 = vmul.f32 %v3418_v14, %v4201_v16 }
 0x160   : > { %v1590_v5 = vadd.f32 %v1558_v32, %v1522_v10  ;;  %v1591_v19 = vadd.f32 %v1559_v58, %v1523_v33  ;;  %v1217_v23 = vadd.f32 %v1185_v31, %v1113_v4  ;;  %v1424_v52 = vmul.f32 %v3427_v18, %v4135_v1  ;;  %v4244_v33 = vld [vmem:[#allocation2 + $0x151] sm:$0xff] }
 0x161   : > { %v1284_v62 = vadd.f32 %v1252_v59, %v1216_v36  ;;  %v1425_v61 = vmul.f32 %v3427_v18, %v3833_v27  ;;  %v946_v56 = vmul.f32 %v3383_v60, %v3782_v3  ;;  %v947_v42 = vmul.f32 %v3383_v60, %v4129_v54  ;;  %v4248_v59 = vld [vmem:[#allocation2 + $0x159] sm:$0xff] }
 0x162   : > { %v1622_v43 = vmax.f32 %v1590_v5, 0.0  ;;  %v1623_v0 = vmax.f32 %v1591_v19, 0.0  ;;  %v1285_v2 = vadd.f32 %v1253_v49, %v1217_v23  ;;  %v1014_v1 = vmul.f32 %v3409_v11, %v3852_v8 }
 0x163   : > { %v1352_v53 = vadd.f32 %v1320_v44, %v1284_v62  ;;  %v978_v34 = vadd.f32 %v4044_v6, %v946_v56  ;;  %v1015_v27 = vmul.f32 %v3409_v11, %v4174_v38  ;;  %v1492_v57 = vmul.f32 %v3433_v24, %v4183_v15 }
 0x164   : > { %v1644_v3 = vpack.c.bf16 %v1623_v0, %v1622_v43  ;;  %v1353_v41 = vadd.f32 %v1321_v45, %v1285_v2  ;;  %v979_v54 = vadd.f32 %v4044_v6, %v947_v42  ;;  %v1493_v30 = vmul.f32 %v3433_v24, %v3820_v9 }
 0x165   : > { %v1456_v22 = vadd.f32 %v1424_v52, %v1352_v53  ;;  %v1046_v47 = vadd.f32 %v1014_v1, %v978_v34  ;;  %v1082_v32 = vmul.f32 %v3412_v12, %v3841_v28  ;;  %v1560_v51 = vmul.f32 %v3436_v25, %v4223_v7  ;;  %v4266_v53 = vld [vmem:[#allocation2 + $0x170] sm:$0xff] }
 0x166   : > { %3061 = vmatprep.mubr.msk.bf16.mxu0 %vm801_vm2, %v1644_v3  ;;  %v1457_v58 = vadd.f32 %v1425_v61, %v1353_v41  ;;  %v1047_v37 = vadd.f32 %v1015_v27, %v979_v54  ;;  %v1083_v10 = vmul.f32 %v3412_v12, %v4225_v35  ;;  %v1561_v31 = vmul.f32 %v3436_v25, %v3888_v63 }
 0x167   : > { %v1524_v4 = vadd.f32 %v1492_v57, %v1456_v22  ;;  %v1114_v36 = vadd.f32 %v1082_v32, %v1046_v47  ;;  %v1186_v49 = vmul.f32 %v3415_v13, %v4147_v40  ;;  %v1187_v19 = vmul.f32 %v3415_v13, %v4154_v55 }
 0x168   : > { %v1525_v44 = vadd.f32 %v1493_v30, %v1457_v58  ;;  %v1115_v5 = vadd.f32 %v1083_v10, %v1047_v37  ;;  %v1254_v23 = vmul.f32 %v3424_v17, %v4194_v48  ;;  %v1255_v52 = vmul.f32 %v3424_v17, %v4201_v16 }
 0x169   : > { %v1592_v45 = vadd.f32 %v1560_v51, %v1524_v4  ;;  %v1218_v62 = vadd.f32 %v1186_v49, %v1114_v36  ;;  %v1322_v61 = vmul.f32 %v3418_v14, %v4244_v33  ;;  %v1323_v40 = vmul.f32 %v3418_v14, %v4248_v59  ;;  %v4293_v49 = vld [vmem:[#allocation2 + $0x169] sm:$0xff] }
 0x16a   : > { %v1593_v56 = vadd.f32 %v1561_v31, %v1525_v44  ;;  %v1219_v43 = vadd.f32 %v1187_v19, %v1115_v5  ;;  %v1426_v0 = vmul.f32 %v3427_v18, %v4183_v15  ;;  %v1427_v42 = vmul.f32 %v3427_v18, %v3820_v9  ;;  %v4274_v15 = vld [vmem:[#allocation2 + $0x152] sm:$0xff] }
 0x16b   : > { %v1624_v55 = vmax.f32 %v1592_v45, 0.0  ;;  %v1286_v2 = vadd.f32 %v1254_v23, %v1218_v62  ;;  %v948_v34 = vmul.f32 %v3383_v60, %v3852_v8  ;;  %v949_v3 = vmul.f32 %v3383_v60, %v4174_v38  ;;  %v4295_v44 = vld [vmem:[#allocation2 + $0x171] sm:$0xff] }
 0x16c   : > { %v1625_v1 = vmax.f32 %v1593_v56, 0.0  ;;  %v1287_v27 = vadd.f32 %v1255_v52, %v1219_v43  ;;  %v1016_v41 = vmul.f32 %v3409_v11, %v3841_v28  ;;  %v1017_v9 = vmul.f32 %v3409_v11, %v4225_v35 }
 0x16d   : > { %v1354_v57 = vadd.f32 %v1322_v61, %v1286_v2  ;;  %v980_v54 = vadd.f32 %v4044_v6, %v948_v34  ;;  %v1084_v22 = vmul.f32 %v3412_v12, %v3916_v46  ;;  %v981_v47 = vadd.f32 %v4044_v6, %v949_v3 }
 0x16e   : > { %v1645_v8 = vpack.c.bf16 %v1625_v1, %v1624_v55  ;;  %v1355_v30 = vadd.f32 %v1323_v40, %v1287_v27  ;;  %v1085_v38 = vmul.f32 %v3412_v12, %v4266_v53  ;;  %v1494_v58 = vmul.f32 %v3433_v24, %v4223_v7 }
 0x16f   : > { %v1458_v32 = vadd.f32 %v1426_v0, %v1354_v57  ;;  %v1495_v51 = vmul.f32 %v3433_v24, %v3888_v63  ;;  %v1048_v37 = vadd.f32 %v1016_v41, %v980_v54  ;;  %v1562_v4 = vmul.f32 %v3436_v25, %v4274_v15  ;;  %v915_v54 = vld [vmem:[#allocation2 + $0x188] sm:$0xff] }
 0x170   : > { %3062 = vmatmul.mubr.msk.bf16.gmra.mxu0 %vm801_vm2, %v1645_v8  ;;  %v1459_v10 = vadd.f32 %v1427_v42, %v1355_v30  ;;  %v1563_v31 = vmul.f32 %v3436_v25, %v3875_v39  ;;  %v1049_v36 = vadd.f32 %v1017_v9, %v981_v47  ;;  %v1188_v23 = vmul.f32 %v3415_v13, %v4194_v48  ;;  %v4321_v8 = vld [vmem:[#allocation2 + $0x16a] sm:$0xff] }
 0x171   : > { %v1526_v5 = vadd.f32 %v1494_v58, %v1458_v32  ;;  %v1116_v19 = vadd.f32 %v1084_v22, %v1048_v37  ;;  %v1189_v45 = vmul.f32 %v3415_v13, %v4201_v16  ;;  %v1256_v61 = vmul.f32 %v3424_v17, %v4244_v33 }
 0x172   : > { %v1527_v62 = vadd.f32 %v1495_v51, %v1459_v10  ;;  %v1117_v52 = vadd.f32 %v1085_v38, %v1049_v36  ;;  %v1257_v56 = vmul.f32 %v3424_v17, %v4248_v59  ;;  %v1324_v0 = vmul.f32 %v3418_v14, %v4293_v49 }
 0x173   : > { %v1594_v43 = vadd.f32 %v1562_v4, %v1526_v5  ;;  %v1220_v40 = vadd.f32 %v1188_v23, %v1116_v19  ;;  %v1325_v55 = vmul.f32 %v3418_v14, %v4295_v44  ;;  %v1428_v16 = vmul.f32 %v3427_v18, %v4223_v7  ;;  %v1154_v4 = vld [vmem:[#allocation2 + $0x181] sm:$0xff]  ;;  %v1155_v19 = vld [vmem:[#allocation2 + $0x189] sm:$0xff] }
 0x174   : > { %v1595_v48 = vadd.f32 %v1563_v31, %v1527_v62  ;;  %v1221_v2 = vadd.f32 %v1189_v45, %v1117_v52  ;;  %v1429_v42 = vmul.f32 %v3427_v18, %v3888_v63  ;;  %v950_v27 = vmul.f32 %v3383_v60, %v3841_v28 }
 0x175   : > { %v1626_v34 = vmax.f32 %v1594_v43, 0.0  ;;  %v1288_v1 = vadd.f32 %v1256_v61, %v1220_v40  ;;  %v951_v3 = vmul.f32 %v3383_v60, %v4225_v35  ;;  %v1018_v9 = vmul.f32 %v3409_v11, %v3916_v46 }
 0x176   : > { %v1627_v41 = vmax.f32 %v1595_v48, 0.0  ;;  %v1289_v57 = vadd.f32 %v1257_v56, %v1221_v2  ;;  %v1019_v7 = vmul.f32 %v3409_v11, %v4266_v53  ;;  %v1496_v63 = vmul.f32 %v3433_v24, %v4274_v15 }
 0x177   : > { %v1356_v22 = vadd.f32 %v1324_v0, %v1288_v1  ;;  %v982_v28 = vadd.f32 %v4044_v6, %v950_v27  ;;  %v983_v30 = vadd.f32 %v4044_v6, %v951_v3  ;;  %v1497_v38 = vmul.f32 %v3433_v24, %v3875_v39 }
 0x178   : > { %v1646_v35 = vpack.c.bf16 %v1627_v41, %v1626_v34  ;;  %v1357_v47 = vadd.f32 %v1325_v55, %v1289_v57  ;;  %v1086_v32 = vmul.f32 %v3412_v12, %v3912_v26  ;;  %v1087_v10 = vmul.f32 %v3412_v12, %v915_v54 }
 0x179   : > { %v1460_v58 = vadd.f32 %v1428_v16, %v1356_v22  ;;  %v1050_v51 = vadd.f32 %v1018_v9, %v982_v28  ;;  %v1051_v37 = vadd.f32 %v1019_v7, %v983_v30  ;;  %v1564_v36 = vmul.f32 %v3436_v25, %v4321_v8 }
 0x17a   : > { %3065 = vmatprep.mubr.msk.bf16.mxu0 %vm801_vm2, %v1646_v35  ;;  %v1461_v31 = vadd.f32 %v1429_v42, %v1357_v47  ;;  %v1565_v5 = vmul.f32 %v3436_v25, %v3983_v29  ;;  %v1190_v23 = vmul.f32 %v3415_v13, %v4244_v33  ;;  %v1191_v61 = vmul.f32 %v3415_v13, %v4248_v59 }
 0x17b   : > { %v1528_v45 = vadd.f32 %v1496_v63, %v1460_v58  ;;  %v1118_v62 = vadd.f32 %v1086_v32, %v1050_v51  ;;  %v1119_v52 = vadd.f32 %v1087_v10, %v1051_v37  ;;  %v1258_v43 = vmul.f32 %v3424_v17, %v4293_v49 }
 0x17c   : > { %v1529_v56 = vadd.f32 %v1497_v38, %v1461_v31  ;;  %v1259_v40 = vmul.f32 %v3424_v17, %v4295_v44  ;;  %v1326_v0 = vmul.f32 %v3418_v14, %v1154_v4  ;;  %v1327_v33 = vmul.f32 %v3418_v14, %v1155_v19 }
 0x17d   : > { %v1596_v55 = vadd.f32 %v1564_v36, %v1528_v45  ;;  %v1222_v48 = vadd.f32 %v1190_v23, %v1118_v62  ;;  %v1223_v2 = vadd.f32 %v1191_v61, %v1119_v52  ;;  %v1430_v42 = vmul.f32 %v3427_v18, %v4274_v15  ;;  %v5428_v36 = vld [vmem:[#allocation17_spill] sm:$0xff]  ;;  %v5429_v52 = vld [vmem:[#allocation18_spill] sm:$0xff] }
 0x17e   : > { %v1597_v16 = vadd.f32 %v1565_v5, %v1529_v56  ;;  %v1431_v59 = vmul.f32 %v3427_v18, %v3875_v39  ;;  %v952_v34 = vmul.f32 %v3383_v60, %v3916_v46  ;;  %v953_v41 = vmul.f32 %v3383_v60, %v4266_v53  ;;  %v1394_v39 = vld [vmem:[#allocation2 + $0x182] sm:$0xff] }
 0x17f   : > { %v1628_v1 = vmax.f32 %v1596_v55, 0.0  ;;  %v1290_v27 = vadd.f32 %v1258_v43, %v1222_v48  ;;  %v1291_v3 = vadd.f32 %v1259_v40, %v1223_v2  ;;  %v1020_v7 = vmul.f32 %v3409_v11, %v3912_v26  ;;  %v5430_v48 = vld [vmem:[#allocation19_spill] sm:$0xff] }
 0x180   : > { %v1629_v57 = vmax.f32 %v1597_v16, 0.0  ;;  %v984_v9 = vadd.f32 %v4044_v6, %v952_v34  ;;  %v1021_v15 = vmul.f32 %v3409_v11, %v915_v54  ;;  %v985_v28 = vadd.f32 %v4044_v6, %v953_v41  ;;  %v5431_v16 = vld [vmem:[#allocation20_spill] sm:$0xff] }
 0x181   : > { %v1358_v22 = vadd.f32 %v1326_v0, %v1290_v27  ;;  %v1359_v63 = vadd.f32 %v1327_v33, %v1291_v3  ;;  %v1088_v46 = vmul.f32 %v3412_v12, %v3718_v21  ;;  %v1498_v60 = vmul.f32 %v3433_v24, %v4321_v8  ;;  %v4395_v3 = vpop.f32.mrf.mxu0 }
 0x182   : > { %v1647_v30 = vpack.c.bf16 %v1629_v57, %v1628_v1  ;;  %v1052_v53 = vadd.f32 %v1020_v7, %v984_v9  ;;  %v1089_v35 = vmul.f32 %v3412_v12, %v3724_v20  ;;  %v1499_v11 = vmul.f32 %v3433_v24, %v3983_v29 }
 0x183   : > { %v1462_v47 = vadd.f32 %v1430_v42, %v1358_v22  ;;  %v1463_v26 = vadd.f32 %v1431_v59, %v1359_v63  ;;  %v1053_v54 = vadd.f32 %v1021_v15, %v985_v28  ;;  %v1566_v6 = vmul.f32 %v3436_v25, %v1394_v39  ;;  %v4397_v41 = vpop.f32.mrf.mxu0  ;;  %v1871_v63 = vld [vmem:[%s5394_s7] sm:$0x7] }
 0x184   : > { %3066 = vmatmul.mubr.msk.bf16.gmra.mxu0 %vm801_vm2, %v1647_v30  ;;  %v1567_v21 = vmul.f32 %v3436_v25, %v3929_v50  ;;  %v1120_v38 = vadd.f32 %v1088_v46, %v1052_v53  ;;  %v1192_v32 = vmul.f32 %v3415_v13, %v4293_v49  ;;  %v1193_v20 = vmul.f32 %v3415_v13, %v4295_v44  ;;  %v5432_v30 = vld [vmem:[#allocation13_spill] sm:$0xff] }
 0x185   : > { %v1530_v58 = vadd.f32 %v1498_v60, %v1462_v47  ;;  %v1531_v51 = vadd.f32 %v1499_v11, %v1463_v26  ;;  %v1121_v12 = vadd.f32 %v1089_v35, %v1053_v54  ;;  %v1260_v10 = vmul.f32 %v3424_v17, %v1154_v4  ;;  %v4399_v57 = vpop.f32.mrf.mxu0  ;;  %v1872_v53 = vld [vmem:[%s5394_s7 + $0x4] sm:$0x7]  ;;  %v5433_v35 = vld [vmem:[#allocation3_spill] sm:$0xff]  ;;  %v4430_v26 = vld [vmem:[%s5395_s8] ss:$0 sm:$0xff] }
 0x186   : > { %v1224_v37 = vadd.f32 %v1192_v32, %v1120_v38  ;;  %v1261_v31 = vmul.f32 %v3424_v17, %v1155_v19  ;;  %v1328_v5 = vmul.f32 %v3418_v14, %v5428_v36  ;;  %v1329_v49 = vmul.f32 %v3418_v14, %v5429_v52 }
 0x187   : > { %v1598_v23 = vadd.f32 %v1566_v6, %v1530_v58  ;;  %v1599_v45 = vadd.f32 %v1567_v21, %v1531_v51  ;;  %v1225_v62 = vadd.f32 %v1193_v20, %v1121_v12  ;;  %v1432_v13 = vmul.f32 %v3427_v18, %v4321_v8  ;;  %v4401_v9 = vpop.f32.mrf.mxu0  ;;  %v1873_v6 = vld [vmem:[%s5394_s7 + $0x8] sm:$0x7]  ;;  %v5434_v51 = vld [vmem:[#allocation4_spill] sm:$0xff] }
 0x188   : > { %v1292_v61 = vadd.f32 %v1260_v10, %v1224_v37  ;;  %v1433_v17 = vmul.f32 %v3427_v18, %v3983_v29  ;;  %v1500_v55 = vmul.f32 %v3433_v24, %v1394_v39  ;;  %v1568_v2 = vmul.f32 %v3436_v25, %v5430_v48 }
 0x189   : > { %v1630_v56 = vmax.f32 %v1598_v23, 0.0  ;;  %v1631_v43 = vmax.f32 %v1599_v45, 0.0  ;;  %v1293_v40 = vadd.f32 %v1261_v31, %v1225_v62  ;;  %v1501_v33 = vmul.f32 %v3433_v24, %v3929_v50  ;;  %v4406_v24 = vld [vmem:[%s5393_s6] ss:$0 sm:$0xff]  ;;  %v5435_v31 = vld [vmem:[#allocation15_spill] sm:$0xff] }
 0x18a   : > { %v1360_v0 = vadd.f32 %v1328_v5, %v1292_v61  ;;  %v1569_v8 = vmul.f32 %v3436_v25, %v5431_v16  ;;  %v4419_v60 = vrot.slane %v1871_v63, %v5432_v30  ;;  %v4433_v54 = vrot.slane %v1872_v53, %v5432_v30  ;;  %v5436_v61 = vld [vmem:[#allocation5_spill] sm:$0xff] }
 0x18b   : > { %v1648_v44 = vpack.c.bf16 %v1631_v43, %v1630_v56  ;;  %v1361_v4 = vadd.f32 %v1329_v49, %v1293_v40  ;;  %v4441_v32 = vrot.slane %v1873_v6, %v5432_v30  ;;  %v4446_v36 = vrot.slane %v1871_v63, %v5435_v31  ;;  %v5439_v30 = vld [vmem:[#allocation7_spill] sm:$0xff] }
 0x18c   : > { %v1464_v19 = vadd.f32 %v1432_v13, %v1360_v0  ;;  %v1991_v47 = vmul.f32 %v4419_v60, %v5433_v35  ;;  %v1992_v12 = vmul.f32 %v4419_v60, %v5434_v51  ;;  %v4462_v48 = vrot.slane %v1872_v53, %v5435_v31 }
 0x18d   : > { %3069 = vmatprep.mubr.msk.bf16.mxu0 %vm801_vm2, %v1648_v44  ;;  %v1465_v14 = vadd.f32 %v1433_v17, %v1361_v4  ;;  %v2231_v56 = vmul.f32 %v4446_v36, %v5436_v61 }
 0x18e   : > { %v1532_v42 = vadd.f32 %v1500_v55, %v1464_v19  ;;  %v2023_v21 = vadd.f32 %v4430_v26, %v1991_v47  ;;  %v2024_v62 = vadd.f32 %v4430_v26, %v1992_v12 }
 0x18f   : > { %v1533_v59 = vadd.f32 %v1501_v33, %v1465_v14  ;;  %v4467_v33 = vrot.slane %v1873_v6, %v5435_v31 }
 0x190   : > { %v1600_v34 = vadd.f32 %v1568_v2, %v1532_v42  ;;  %v5437_v42 = vld [vmem:[#allocation6_spill] sm:$0xff] }
 0x191   : > { %v1601_v1 = vadd.f32 %v1569_v8, %v1533_v59  ;;  %v2232_v59 = vmul.f32 %v4446_v36, %v5437_v42 }
 0x192   : > { %v1632_v18 = vmax.f32 %v1600_v34, 0.0 }
 0x193   : > { %v1633_v29 = vmax.f32 %v1601_v1, 0.0 }
 0x195   : > { %v1649_v27 = vpack.c.bf16 %v1633_v29, %v1632_v18 }
 0x197   : > { %3070 = vmatmul.mubr.msk.bf16.gmra.mxu0 %vm801_vm2, %v1649_v27 }
 0x1cc   : > { %v3043_v25 = vpop.f32.mrf.mxu0 }
 0x1cd   : > { %v1753_v50 = vadd.f32 %v3043_v25, %v4406_v24 }
 0x1ce   : > { %v1744_v7 = vpop.f32.mrf.mxu0 }
 0x1cf   : > { %1915 = vst.msk [vmem:[#allocation2 + $0x31] sm:$0xff] %vm801_vm2, %v1753_v50  ;;  %v1745_v15 = vadd.f32 %v4406_v24, %v1744_v7  ;;  %v5438_v50 = vld [vmem:[#allocation16_spill] sm:$0xff] }
 0x1d0   : > { %v3044_v22 = vpop.f32.mrf.mxu0  ;;  %v4480_v7 = vrot.slane %v1871_v63, %v5438_v50 }
 0x1d1   : > { %1913 = vst.msk [vmem:[#allocation2 + $0x19] sm:$0xff] %vm801_vm2, %v1745_v15  ;;  %v1756_v39 = vadd.f32 %v3044_v22, %v4406_v24 }
 0x1d2   : > { %v1747_v28 = vpop.f32.mrf.mxu0  ;;  %v2471_v35 = vmul.f32 %v4480_v7, %v5439_v30 }
 0x1d3   : > { %1916 = vst.msk [vmem:[#allocation2 + $0x39] sm:$0xff] %vm801_vm2, %v1756_v39  ;;  %v1748_v46 = vadd.f32 %v4406_v24, %v1747_v28 }
 0x1d5   : > { %1914 = vst.msk [vmem:[#allocation2 + $0x21] sm:$0xff] %vm801_vm2, %v1748_v46 }
 0x1d6   : > { %v1955_v58 = vld [vmem:[#allocation2 + $0x30] sm:$0xff] }
 0x1d7   : > { %v2127_v5 = vmul.f32 %v4441_v32, %v1955_v58  ;;  %v4473_v34 = vld [vmem:[#allocation2 + $0x31] sm:$0xff]  ;;  %v2061_v18 = vmul.f32 %v4433_v54, %v1955_v58 }
 0x1d8   : > { %v1953_v11 = vld [vmem:[#allocation2 + $0x18] sm:$0xff]  ;;  %v2367_v15 = vmul.f32 %v4467_v33, %v4473_v34 }
 0x1d9   : > { %v2059_v38 = vmul.f32 %v4433_v54, %v1953_v11  ;;  %v1993_v13 = vmul.f32 %v4419_v60, %v1953_v11  ;;  %v2193_v17 = vld [vmem:[#allocation2 + $0x19] sm:$0xff] }
 0x1da   : > { %v1956_v44 = vld [vmem:[#allocation2 + $0x38] sm:$0xff]  ;;  %v2299_v8 = vmul.f32 %v4462_v48, %v2193_v17  ;;  %v2233_v47 = vmul.f32 %v4446_v36, %v2193_v17 }
 0x1db   : > { %v2091_v20 = vadd.f32 %v2059_v38, %v2023_v21  ;;  %v2128_v14 = vmul.f32 %v4441_v32, %v1956_v44  ;;  %v2025_v16 = vadd.f32 %v4430_v26, %v1993_v13  ;;  %v1995_v38 = vmul.f32 %v4419_v60, %v1955_v58  ;;  %v4502_v31 = vld [vmem:[#allocation2 + $0x39] sm:$0xff] }
 0x1dc   : > { %v1954_v37 = vld [vmem:[#allocation2 + $0x20] sm:$0xff]  ;;  %v5440_v58 = vld [vmem:[#allocation8_spill] sm:$0xff] }
 0x1dd   : > { %v2060_v52 = vmul.f32 %v4433_v54, %v1954_v37  ;;  %v2159_v43 = vadd.f32 %v2127_v5, %v2091_v20  ;;  %v1994_v25 = vmul.f32 %v4419_v60, %v1954_v37  ;;  %v2093_v22 = vadd.f32 %v2061_v18, %v2025_v16  ;;  %v2194_v39 = vld [vmem:[#allocation2 + $0x21] sm:$0xff]  ;;  %v4517_v13 = vld [vmem:[#allocation2 + $0x32] sm:$0xff] }
 0x1de   : > { %v2300_v51 = vmul.f32 %v4462_v48, %v2194_v39  ;;  %v4495_v20 = vrot.slane %v1872_v53, %v5438_v50  ;;  %v4498_v37 = vrot.slane %v1873_v6, %v5438_v50  ;;  %v2234_v42 = vmul.f32 %v4446_v36, %v2194_v39 }
 0x1df   : > { %v2092_v19 = vadd.f32 %v2060_v52, %v2024_v62  ;;  %v2263_v2 = vadd.f32 %v2231_v56, %v2159_v43  ;;  %v2026_v63 = vadd.f32 %v4430_v26, %v1994_v25  ;;  %v1996_v62 = vmul.f32 %v4419_v60, %v1956_v44 }
 0x1e0   : > { %v3047_v10 = vpop.f32.mrf.mxu0  ;;  %v2062_v52 = vmul.f32 %v4433_v54, %v1956_v44  ;;  %v2541_v25 = vmul.f32 %v4495_v20, %v4517_v13 }
 0x1e1   : > { %v1769_v23 = vadd.f32 %v3047_v10, %v4406_v24  ;;  %v2160_v1 = vadd.f32 %v2128_v14, %v2092_v19  ;;  %v2331_v29 = vadd.f32 %v2299_v8, %v2263_v2  ;;  %v2301_v10 = vmul.f32 %v4462_v48, %v4473_v34 }
 0x1e2   : > { %v1760_v45 = vpop.f32.mrf.mxu0  ;;  %v2302_v19 = vmul.f32 %v4462_v48, %v4502_v31  ;;  %v2028_v8 = vadd.f32 %v4430_v26, %v1996_v62 }
 0x1e3   : > { %v1761_v49 = vadd.f32 %v4406_v24, %v1760_v45  ;;  %1919 = vst.msk [vmem:[#allocation2 + $0x61] sm:$0xff] %vm801_vm2, %v1769_v23  ;;  %v2264_v46 = vadd.f32 %v2232_v59, %v2160_v1  ;;  %v2399_v11 = vadd.f32 %v2367_v15, %v2331_v29  ;;  %v2472_v45 = vmul.f32 %v4480_v7, %v5440_v58 }
 0x1e4   : > { %v3048_v40 = vpop.f32.mrf.mxu0 }
 0x1e5   : > { %1917 = vst.msk [vmem:[#allocation2 + $0x49] sm:$0xff] %vm801_vm2, %v1761_v49  ;;  %v1772_v0 = vadd.f32 %v3048_v40, %v4406_v24  ;;  %v2332_v53 = vadd.f32 %v2300_v51, %v2264_v46  ;;  %v2433_v49 = vld [vmem:[#allocation2 + $0x1a] sm:$0xff]  ;;  %v2503_v61 = vadd.f32 %v2471_v35, %v2399_v11  ;;  %v2027_v40 = vadd.f32 %v4430_v26, %v1995_v38  ;;  %v2434_v11 = vld [vmem:[#allocation2 + $0x22] sm:$0xff] }
 0x1e6   : > { %v1763_v4 = vpop.f32.mrf.mxu0  ;;  %v2539_v2 = vmul.f32 %v4495_v20, %v2433_v49  ;;  %v2607_v46 = vmul.f32 %v4498_v37, %v4517_v13 }
 0x1e7   : > { %1920 = vst.msk [vmem:[#allocation2 + $0x69] sm:$0xff] %vm801_vm2, %v1772_v0  ;;  %v1764_v55 = vadd.f32 %v4406_v24, %v1763_v4  ;;  %v2368_v0 = vmul.f32 %v4467_v33, %v4502_v31  ;;  %v2094_v4 = vadd.f32 %v2062_v52, %v2026_v63 }
 0x1e8   : > { %v2571_v50 = vadd.f32 %v2539_v2, %v2503_v61 }
 0x1e9   : > { %1918 = vst.msk [vmem:[#allocation2 + $0x51] sm:$0xff] %vm801_vm2, %v1764_v55  ;;  %v2473_v55 = vmul.f32 %v4480_v7, %v2433_v49  ;;  %v2400_v59 = vadd.f32 %v2368_v0, %v2332_v53  ;;  %v4548_v53 = vld [vmem:[#allocation2 + $0x3a] sm:$0xff] }
 0x1ea   : > { %v4525_v14 = vld [vmem:[#allocation2 + $0x60] sm:$0xff]  ;;  %v2639_v49 = vadd.f32 %v2607_v46, %v2571_v50  ;;  %v2542_v2 = vmul.f32 %v4495_v20, %v4548_v53 }
 0x1eb   : > { %v2131_v30 = vmul.f32 %v4441_v32, %v4525_v14 }
 0x1ec   : > { %v4476_v27 = vld [vmem:[#allocation2 + $0x48] sm:$0xff] }
 0x1ed   : > { %v2129_v28 = vmul.f32 %v4441_v32, %v4476_v27  ;;  %v4492_v12 = vld [vmem:[#allocation2 + $0x49] sm:$0xff]  ;;  %v2063_v6 = vmul.f32 %v4433_v54, %v4476_v27 }
 0x1ee   : > { %v2369_v43 = vmul.f32 %v4467_v33, %v4492_v12  ;;  %v2303_v46 = vmul.f32 %v4462_v48, %v4492_v12 }
 0x1ef   : > { %v2161_v21 = vadd.f32 %v2129_v28, %v2093_v22  ;;  %v2095_v15 = vadd.f32 %v2063_v6, %v2027_v40  ;;  %v4550_v6 = vld [vmem:[#allocation2 + $0x68] sm:$0xff]  ;;  %v2540_v40 = vmul.f32 %v4495_v20, %v2434_v11 }
 0x1f0   : > { %v4504_v23 = vld [vmem:[#allocation2 + $0x50] sm:$0xff] }
 0x1f1   : > { %v2265_v5 = vadd.f32 %v2233_v47, %v2161_v21  ;;  %v2130_v44 = vmul.f32 %v4441_v32, %v4504_v23  ;;  %v4529_v18 = vld [vmem:[#allocation2 + $0x4a] sm:$0xff]  ;;  %v2064_v39 = vmul.f32 %v4433_v54, %v4504_v23  ;;  %v2163_v61 = vadd.f32 %v2131_v30, %v2095_v15 }
 0x1f2   : > { %v4533_v28 = vld [vmem:[#allocation2 + $0x51] sm:$0xff]  ;;  %v2609_v38 = vmul.f32 %v4498_v37, %v4529_v18  ;;  %v2236_v30 = vmul.f32 %v4446_v36, %v4502_v31 }
 0x1f3   : > { %v2333_v56 = vadd.f32 %v2301_v10, %v2265_v5  ;;  %v2162_v1 = vadd.f32 %v2130_v44, %v2094_v4  ;;  %v2504_v10 = vadd.f32 %v2472_v45, %v2400_v59  ;;  %v2370_v58 = vmul.f32 %v4467_v33, %v4533_v28  ;;  %v2690_v59 = vld [vmem:[#allocation2 + $0x8] sm:$0xff] }
 0x1f4   : > { %v2096_v0 = vadd.f32 %v2064_v39, %v2028_v8  ;;  %v2235_v44 = vmul.f32 %v4446_v36, %v4473_v34  ;;  %v2132_v8 = vmul.f32 %v4441_v32, %v4550_v6 }
 0x1f5   : > { %v2401_v16 = vadd.f32 %v2369_v43, %v2333_v56  ;;  %v2266_v35 = vadd.f32 %v2234_v42, %v2162_v1  ;;  %v2474_v43 = vmul.f32 %v4480_v7, %v2434_v11  ;;  %v5441_v1 = vld [vmem:[#allocation9_spill] sm:$0xff] }
 0x1f6   : > { %v3051_v17 = vpop.f32.mrf.mxu0  ;;  %v2267_v34 = vadd.f32 %v2235_v44, %v2163_v61  ;;  %v2237_v61 = vmul.f32 %v4446_v36, %v4492_v12 }
 0x1f7   : > { %v2505_v22 = vadd.f32 %v2473_v55, %v2401_v16  ;;  %v1785_v63 = vadd.f32 %v3051_v17, %v4406_v24  ;;  %v2334_v5 = vadd.f32 %v2302_v19, %v2266_v35  ;;  %v1997_v17 = vmul.f32 %v4419_v60, %v4476_v27  ;;  %v4562_v19 = vld [vmem:[#allocation2 + $0x52] sm:$0xff]  ;;  %v4581_v35 = vld [vmem:[#allocation2 + $0x61] sm:$0xff] }
 0x1f8   : > { %v1776_v29 = vpop.f32.mrf.mxu0  ;;  %v2572_v16 = vadd.f32 %v2540_v40, %v2504_v10  ;;  %v2608_v27 = vmul.f32 %v4498_v37, %v4548_v53  ;;  %v2610_v15 = vmul.f32 %v4498_v37, %v4562_v19  ;;  %v2371_v31 = vmul.f32 %v4467_v33, %v4581_v35 }
 0x1f9   : > { %v2573_v21 = vadd.f32 %v2541_v25, %v2505_v22  ;;  %v1777_v51 = vadd.f32 %v4406_v24, %v1776_v29  ;;  %1923 = vst.msk [vmem:[#allocation2 + $0x91] sm:$0xff] %vm801_vm2, %v1785_v63  ;;  %v2402_v4 = vadd.f32 %v2370_v58, %v2334_v5  ;;  %v2164_v25 = vadd.f32 %v2132_v8, %v2096_v0 }
 0x1fa   : > { %v3052_v47 = vpop.f32.mrf.mxu0  ;;  %v2029_v22 = vadd.f32 %v4430_v26, %v1997_v17  ;;  %v2640_v39 = vadd.f32 %v2608_v27, %v2572_v16  ;;  %v1998_v63 = vmul.f32 %v4419_v60, %v4504_v23  ;;  %v1999_v23 = vmul.f32 %v4419_v60, %v4525_v14  ;;  %v4632_v27 = vld [vmem:[#allocation2 + $0x62] sm:$0xff] }
 0x1fb   : > { %v1788_v62 = vadd.f32 %v3052_v47, %v4406_v24  ;;  %v2641_v56 = vadd.f32 %v2609_v38, %v2573_v21  ;;  %1921 = vst.msk [vmem:[#allocation2 + $0x79] sm:$0xff] %vm801_vm2, %v1777_v51  ;;  %v2506_v42 = vadd.f32 %v2474_v43, %v2402_v4  ;;  %v2065_v21 = vmul.f32 %v4433_v54, %v4525_v14  ;;  %v4609_v4 = vld [vmem:[%s5397_s10] ss:$0 sm:$0xff] }
 0x1fc   : > { %v1779_v52 = vpop.f32.mrf.mxu0  ;;  %v2335_v38 = vadd.f32 %v2303_v46, %v2267_v34  ;;  %v2268_v51 = vadd.f32 %v2236_v30, %v2164_v25  ;;  %v5442_v40 = vmov -3.4028235e+38   ;;  %v2030_v44 = vadd.f32 %v4430_v26, %v1998_v63 }
 0x1fd   : > { %v1780_v45 = vadd.f32 %v4406_v24, %v1779_v52  ;;  %1924 = vst.msk [vmem:[#allocation2 + $0x99] sm:$0xff] %vm801_vm2, %v1788_v62  ;;  %v2705_v55 = vmax.f32 %v2639_v49, %v2641_v56  ;;  %2673 = vst.msk [vmem:[#allocation2 + $0x18] sm:$0xff] %vm801_vm2, %v2641_v56  ;;  %v2574_v50 = vadd.f32 %v2542_v2, %v2506_v42 }
 0x1fe   : > { %v2097_v5 = vadd.f32 %v2065_v21, %v2029_v22  ;;  %v2304_v62 = vmul.f32 %v4462_v48, %v4533_v28  ;;  %v2403_v56 = vadd.f32 %v2371_v31, %v2335_v38  ;;  %v467_v12 = vadd.f32 %v4609_v4, %v4397_v41 }
 0x1ff   : > { %1922 = vst.msk [vmem:[#allocation2 + $0x81] sm:$0xff] %vm801_vm2, %v1780_v45  ;;  %v2721_v29 = vmax.f32 %v2705_v55, %v5441_v1  ;;  %v2642_v47 = vadd.f32 %v2610_v15, %v2574_v50  ;;  %v4602_v45 = vld [vmem:[#allocation2 + $0x69] sm:$0xff]  ;;  %v2475_v55 = vmul.f32 %v4480_v7, %v4517_v13  ;;  %v2305_v2 = vmul.f32 %v4462_v48, %v4581_v35 }
 0x200   : > { %v2336_v17 = vadd.f32 %v2304_v62, %v2268_v51  ;;  %v2476_v42 = vmul.f32 %v4480_v7, %v4548_v53  ;;  %v2066_v34 = vmul.f32 %v4433_v54, %v4550_v6  ;;  %v2372_v41 = vmul.f32 %v4467_v33, %v4602_v45  ;;  %v4651_v51 = vld [vmem:[#allocation2 + $0x90] sm:$0xff] }
 0x201   : > { %2745 = vst.msk [vmem:[#allocation2 + $0x1] sm:$0xff] %vm801_vm2, %v2721_v29  ;;  %v2706_v10 = vmax.f32 %v2640_v39, %v2642_v47  ;;  %2674 = vst.msk [vmem:[#allocation2 + $0x20] sm:$0xff] %vm801_vm2, %v2642_v47  ;;  %v2031_v13 = vadd.f32 %v4430_v26, %v1999_v23  ;;  %v2507_v29 = vadd.f32 %v2475_v55, %v2403_v56 }
 0x202   : > { %v4583_v11 = vld [vmem:[#allocation2 + $0x78] sm:$0xff]  ;;  %v2404_v53 = vadd.f32 %v2372_v41, %v2336_v17  ;;  %v2098_v22 = vadd.f32 %v2066_v34, %v2030_v44  ;;  %v2306_v46 = vmul.f32 %v4462_v48, %v4602_v45  ;;  %v2477_v30 = vmul.f32 %v4480_v7, %v4529_v18 }
 0x203   : > { %v2133_v58 = vmul.f32 %v4441_v32, %v4583_v11  ;;  %v2722_v52 = vmax.f32 %v2706_v10, %v2690_v59  ;;  %v4613_v14 = vld [vmem:[#allocation2 + $0x79] sm:$0xff]  ;;  %v2000_v59 = vmul.f32 %v4419_v60, %v4550_v6  ;;  %v2067_v15 = vmul.f32 %v4433_v54, %v4583_v11 }
 0x204   : > { %v4596_v49 = vld [vmem:[#allocation2 + $0x18] sm:$0xff]  ;;  %v2373_v50 = vmul.f32 %v4467_v33, %v4613_v14  ;;  %v2543_v39 = vmul.f32 %v4495_v20, %v4529_v18  ;;  %v2545_v38 = vmul.f32 %v4495_v20, %v4632_v27  ;;  %v2238_v63 = vmul.f32 %v4446_v36, %v4533_v28 }
 0x205   : > { %v2165_v43 = vadd.f32 %v2133_v58, %v2097_v5  ;;  %2738 = vst.msk [vmem:[#allocation2 + $0x18] sm:$0x1] %vm811_vm3, %v5442_v40  ;;  %v2032_v21 = vadd.f32 %v4430_v26, %v2000_v59  ;;  %v2611_v58 = vmul.f32 %v4498_v37, %v4632_v27  ;;  %v2478_v18 = vmul.f32 %v4480_v7, %v4562_v19 }
 0x206   : > { %2746 = vst.msk [vmem:[#allocation2 + $0x9] sm:$0xff] %vm801_vm2, %v2722_v52  ;;  %v4621_v8 = vld [vmem:[#allocation2 + $0x80] sm:$0xff]  ;;  %v2575_v62 = vadd.f32 %v2543_v39, %v2507_v29  ;;  %v2099_v44 = vadd.f32 %v2067_v15, %v2031_v13  ;;  %v4681_v39 = vld [vmem:[#allocation2 + $0x98] sm:$0xff] }
 0x207   : > { %v2269_v16 = vadd.f32 %v2237_v61, %v2165_v43  ;;  %v2134_v6 = vmul.f32 %v4441_v32, %v4621_v8  ;;  %v4653_v31 = vld [vmem:[#allocation2 + $0x7a] sm:$0xff]  ;;  %v2508_v43 = vadd.f32 %v2476_v42, %v2404_v53  ;;  %v2068_v59 = vmul.f32 %v4433_v54, %v4621_v8 }
 0x208   : > { %v4659_v56 = vld [vmem:[#allocation2 + $0x81] sm:$0xff]  ;;  %v2613_v34 = vmul.f32 %v4498_v37, %v4653_v31  ;;  %v2544_v53 = vmul.f32 %v4495_v20, %v4562_v19  ;;  %v2643_v15 = vadd.f32 %v2611_v58, %v2575_v62 }
 0x209   : > { %v3055_v0 = vpop.f32.mrf.mxu0  ;;  %v2337_v25 = vadd.f32 %v2305_v2, %v2269_v16  ;;  %v2166_v10 = vadd.f32 %v2134_v6, %v2098_v22  ;;  %v2135_v2 = vmul.f32 %v4441_v32, %v4651_v51  ;;  %v2374_v42 = vmul.f32 %v4467_v33, %v4659_v56 }
 0x20a   : > { %v1801_v13 = vadd.f32 %v3055_v0, %v4406_v24  ;;  %v2100_v19 = vadd.f32 %v2068_v59, %v2032_v21  ;;  %v2576_v58 = vadd.f32 %v2544_v53, %v2508_v43  ;;  %v2001_v21 = vmul.f32 %v4419_v60, %v4583_v11  ;;  %v5444_v53 = vld [vmem:[#allocation14_spill] sm:$0xff] }
 0x20b   : > { %v1792_v1 = vpop.f32.mrf.mxu0  ;;  %v2405_v47 = vadd.f32 %v2373_v50, %v2337_v25  ;;  %v2270_v17 = vadd.f32 %v2238_v63, %v2166_v10  ;;  %v4671_v50 = vld [vmem:[#allocation2 + $0x6a] sm:$0xff]  ;;  %v2307_v11 = vmul.f32 %v4462_v48, %v4613_v14 }
 0x20c   : > { %v1793_v6 = vadd.f32 %v4406_v24, %v1792_v1  ;;  %1927 = vst.msk [vmem:[#allocation2 + $0xc1] sm:$0xff] %vm801_vm2, %v1801_v13  ;;  %v2546_v10 = vmul.f32 %v4495_v20, %v4671_v50  ;;  %v5443_v13 = vld [vmem:[#allocation11_spill] sm:$0xff] }
 0x20d   : > { %v3056_v5 = vpop.f32.mrf.mxu0  ;;  %v2761_v52 = vld [vmem:[#allocation2] ss:$2 sm:$0xff]  ;;  %v2777_v23 = vld [vmem:[#allocation2 + $0x1] ss:$2 sm:$0xff]  ;;  %v2509_v61 = vadd.f32 %v2477_v30, %v2405_v47  ;;  %v2338_v29 = vadd.f32 %v2306_v46, %v2270_v17  ;;  %v2167_v30 = vadd.f32 %v2135_v2, %v2099_v44  ;;  %v2203_v2 = vld [vmem:[#allocation2 + $0x91] sm:$0xff] }
 0x20e   : > { %v2792_v28 = vmax.f32 %v2761_v52, %v2777_v23  ;;  %v2801_v55 = vld [vmem:[#allocation2 + $0x2] ss:$2 sm:$0xff]  ;;  %v1804_v47 = vadd.f32 %v3056_v5, %v4406_v24  ;;  %1925 = vst.msk [vmem:[#allocation2 + $0xa9] sm:$0xff] %vm801_vm2, %v1793_v6  ;;  %v2136_v5 = vmul.f32 %v4441_v32, %v4681_v39 }
 0x20f   : > { %v2577_v16 = vadd.f32 %v2545_v38, %v2509_v61  ;;  %v1795_v25 = vpop.f32.mrf.mxu0  ;;  %v2406_v0 = vadd.f32 %v2374_v42, %v2338_v29  ;;  %v4685_v38 = vld [vmem:[#allocation2 + $0x82] sm:$0xff] }
 0x210   : > { %v2816_v41 = vmax.f32 %v2792_v28, %v2801_v55  ;;  %v1796_v1 = vadd.f32 %v4406_v24, %v1795_v25  ;;  %v2692_v52 = vld [vmem:[#allocation2 + $0x20] sm:$0xff]  ;;  %1928 = vst.msk [vmem:[#allocation2 + $0xc9] sm:$0xff] %vm801_vm2, %v1804_v47  ;;  %v2614_v43 = vmul.f32 %v4498_v37, %v4685_v38  ;;  %v2168_v28 = vadd.f32 %v2136_v5, %v2100_v19  ;;  %v1985_v55 = vld [vmem:[#allocation2 + $0x198] sm:$0xff] }
 0x211   : > { %v2645_v22 = vadd.f32 %v2613_v34, %v2577_v16  ;;  %v2510_v62 = vadd.f32 %v2478_v18, %v2406_v0  ;;  %v2033_v16 = vadd.f32 %v4430_v26, %v2001_v21  ;;  %v2002_v34 = vmul.f32 %v4419_v60, %v4621_v8  ;;  %v4758_v21 = vld [vmem:[#allocation2 + $0x92] sm:$0xff] }
 0x212   : > { %v2824_v46 = vadd.f32 %v2816_v41, %v467_v12  ;;  %v2239_v12 = vmul.f32 %v4446_v36, %v4581_v35  ;;  %1926 = vst.msk [vmem:[#allocation2 + $0xb1] sm:$0xff] %vm801_vm2, %v1796_v1  ;;  %v2612_v35 = vmul.f32 %v4498_v37, %v4671_v50  ;;  %v4722_v25 = vadd.f32 %v4609_v4, %v5443_v13 }
 0x213   : > { %v2707_v63 = vmax.f32 %v2643_v15, %v2645_v22  ;;  %2675 = vst.msk [vmem:[#allocation2 + $0x30] sm:$0xff] %vm801_vm2, %v2645_v22  ;;  %v2578_v18 = vadd.f32 %v2546_v10, %v2510_v62  ;;  %v2069_v15 = vmul.f32 %v4433_v54, %v4651_v51  ;;  %v4733_v6 = vmul.f32 %v4441_v32, %v1985_v55 }
 0x214   : > { %2832 = vst.msk [vmem:[%s4678_s21] sm:$0xff] %vm801_vm2, %v2824_v46  ;;  %v2271_v61 = vadd.f32 %v2239_v12, %v2167_v30  ;;  %v2644_v44 = vadd.f32 %v2612_v35, %v2576_v58  ;;  %v4737_v46 = vadd.f32 %v4609_v4, %v4401_v9  ;;  %v2375_v30 = vmul.f32 %v4467_v33, %v2203_v2  ;;  %v4750_v58 = vld [vmem:[#allocation2 + $0x99] sm:$0xff] }
 0x215   : > { %v2723_v23 = vmax.f32 %v2707_v63, %v4596_v49  ;;  %v2646_v17 = vadd.f32 %v2614_v43, %v2578_v18  ;;  %v2240_v49 = vmul.f32 %v4446_v36, %v4602_v45  ;;  %v4716_v29 = vld [vmem:[#allocation2 + $0xa8] sm:$0xff]  ;;  %v4726_v45 = vadd.f32 %v4609_v4, %v5444_v53 }
 0x216   : > { %v2339_v59 = vadd.f32 %v2307_v11, %v2271_v61  ;;  %v2003_v47 = vmul.f32 %v4419_v60, %v4651_v51  ;;  %v2308_v19 = vmul.f32 %v4462_v48, %v4659_v56  ;;  %v2101_v63 = vadd.f32 %v2069_v15, %v2033_v16 }
 0x217   : > { %2747 = vst.msk [vmem:[#allocation2 + $0x19] sm:$0xff] %vm801_vm2, %v2723_v23  ;;  %v2708_v41 = vmax.f32 %v2644_v44, %v2646_v17  ;;  %2676 = vst.msk [vmem:[#allocation2 + $0x38] sm:$0xff] %vm801_vm2, %v2646_v17  ;;  %v2272_v22 = vadd.f32 %v2240_v49, %v2168_v28  ;;  %v2137_v1 = vmul.f32 %v4441_v32, %v4716_v29 }
 0x218   : > { %v2479_v12 = vmul.f32 %v4480_v7, %v4632_v27  ;;  %v2407_v10 = vadd.f32 %v2375_v30, %v2339_v59  ;;  %v2004_v9 = vmul.f32 %v4419_v60, %v4681_v39  ;;  %v2034_v62 = vadd.f32 %v4430_v26, %v2002_v34  ;;  %v4780_v59 = vld [vmem:[#allocation2 + $0xc0] sm:$0xff] }
 0x219   : > { %v2724_v0 = vmax.f32 %v2708_v41, %v2692_v52  ;;  %v2480_v51 = vmul.f32 %v4480_v7, %v4671_v50  ;;  %v2241_v52 = vmul.f32 %v4446_v36, %v4613_v14  ;;  %v2340_v5 = vadd.f32 %v2308_v19, %v2272_v22  ;;  %v4768_v50 = vld [vmem:[#allocation2 + $0xa9] sm:$0xff] }
 0x21a   : > { %v4718_v42 = vld [vmem:[#allocation2 + $0x30] sm:$0xff]  ;;  %v2169_v27 = vadd.f32 %v2137_v1, %v2101_v63  ;;  %v4761_v35 = vmul.f32 %v4446_v36, %v2203_v2  ;;  %v2309_v61 = vmul.f32 %v4462_v48, %v2203_v2  ;;  %v2070_v18 = vmul.f32 %v4433_v54, %v4681_v39 }
 0x21b   : > { %2739 = vst.msk [vmem:[#allocation2 + $0x30] sm:$0x1] %vm811_vm3, %v5442_v40  ;;  %v2071_v43 = vmul.f32 %v4433_v54, %v4716_v29  ;;  %v4770_v28 = vld [vmem:[#allocation2 + $0xb0] sm:$0xff]  ;;  %v2035_v14 = vadd.f32 %v4430_v26, %v2003_v47  ;;  %v2310_v44 = vmul.f32 %v4462_v48, %v4750_v58  ;;  %v2376_v11 = vmul.f32 %v4467_v33, %v4750_v58 }
 0x21c   : > { %2748 = vst.msk [vmem:[#allocation2 + $0x21] sm:$0xff] %vm801_vm2, %v2724_v0  ;;  %v2273_v17 = vadd.f32 %v2241_v52, %v2169_v27  ;;  %v2511_v55 = vadd.f32 %v2479_v12, %v2407_v10  ;;  %v2036_v49 = vadd.f32 %v4430_v26, %v2004_v9  ;;  %v2549_v39 = vmul.f32 %v4495_v20, %v4758_v21  ;;  %v4802_v27 = vld [vmem:[#allocation2 + $0xaa] sm:$0xff] }
 0x21d   : > { %v3059_v8 = vpop.f32.mrf.mxu0  ;;  %v2102_v2 = vadd.f32 %v2070_v18, %v2034_v62  ;;  %v2408_v16 = vadd.f32 %v2376_v11, %v2340_v5  ;;  %v2377_v41 = vmul.f32 %v4467_v33, %v4768_v50  ;;  %v2138_v13 = vmul.f32 %v4441_v32, %v4770_v28  ;;  %v4800_v5 = vld [vmem:[#allocation2 + $0xb1] sm:$0xff] }
 0x21e   : > { %v2341_v34 = vadd.f32 %v2309_v61, %v2273_v17  ;;  %v2615_v15 = vmul.f32 %v4498_v37, %v4758_v21  ;;  %v2242_v22 = vmul.f32 %v4446_v36, %v4659_v56  ;;  %v2547_v30 = vmul.f32 %v4495_v20, %v4653_v31 }
 0x21f   : > { %v1808_v23 = vpop.f32.mrf.mxu0  ;;  %v2103_v0 = vadd.f32 %v2071_v43, %v2035_v14  ;;  %v2481_v47 = vmul.f32 %v4480_v7, %v4653_v31  ;;  %v2482_v19 = vmul.f32 %v4480_v7, %v4685_v38  ;;  %v2170_v10 = vadd.f32 %v2138_v13, %v2102_v2  ;;  %v4808_v13 = vld [vmem:[#allocation2 + $0x9a] sm:$0xff] }
 0x220   : > { %v2409_v12 = vadd.f32 %v2377_v41, %v2341_v34  ;;  %v2579_v9 = vadd.f32 %v2547_v30, %v2511_v55  ;;  %v2139_v52 = vmul.f32 %v4441_v32, %v4780_v59  ;;  %v2072_v56 = vmul.f32 %v4433_v54, %v4770_v28  ;;  %v1986_v41 = vld [vmem:[#allocation2 + $0x1a0] sm:$0xff] }
 0x221   : > { %v3060_v53 = vpop.f32.mrf.mxu0  ;;  %v2512_v31 = vadd.f32 %v2480_v51, %v2408_v16  ;;  %v2274_v43 = vadd.f32 %v2242_v22, %v2170_v10  ;;  %v1817_v14 = vadd.f32 %v3059_v8, %v4406_v24  ;;  %v2005_v55 = vmul.f32 %v4419_v60, %v4716_v29 }
 0x222   : > { %v2513_v18 = vadd.f32 %v2481_v47, %v2409_v12  ;;  %v2171_v2 = vadd.f32 %v2139_v52, %v2103_v0  ;;  %v1809_v34 = vadd.f32 %v4406_v24, %v1808_v23  ;;  %v2378_v16 = vmul.f32 %v4467_v33, %v4800_v5 }
 0x223   : > { %v2763_v63 = vld [vmem:[#allocation2 + $0x18] ss:$2 sm:$0xff]  ;;  %v2779_v1 = vld [vmem:[#allocation2 + $0x19] ss:$2 sm:$0xff]  ;;  %v1811_v11 = vpop.f32.mrf.mxu0  ;;  %v2342_v51 = vadd.f32 %v2310_v44, %v2274_v43  ;;  %v2617_v8 = vmul.f32 %v4498_v37, %v4802_v27  ;;  %1931 = vst.msk [vmem:[#allocation2 + $0xf1] sm:$0xff] %vm801_vm2, %v1817_v14  ;;  %v2104_v22 = vadd.f32 %v2072_v56, %v2036_v49  ;;  %v1820_v23 = vadd.f32 %v3060_v53, %v4406_v24 }
 0x224   : > { %v2793_v62 = vmax.f32 %v2763_v63, %v2779_v1  ;;  %v2803_v61 = vld [vmem:[#allocation2 + $0x1a] ss:$2 sm:$0xff]  ;;  %v2581_v30 = vadd.f32 %v2549_v39, %v2513_v18  ;;  %1929 = vst.msk [vmem:[#allocation2 + $0xd9] sm:$0xff] %vm801_vm2, %v1809_v34  ;;  %v1812_v39 = vadd.f32 %v4406_v24, %v1811_v11  ;;  %v2548_v44 = vmul.f32 %v4495_v20, %v4685_v38  ;;  %v4833_v53 = vld [vmem:[#allocation2 + $0xb2] sm:$0xff] }
 0x225   : > { %v4810_v63 = vld [vmem:[#allocation2 + $0xc8] sm:$0xff]  ;;  %v2647_v0 = vadd.f32 %v2615_v15, %v2579_v9  ;;  %v2410_v47 = vadd.f32 %v2378_v16, %v2342_v51  ;;  %v4824_v12 = vmul.f32 %v4441_v32, %v1986_v41  ;;  %v2550_v10 = vmul.f32 %v4495_v20, %v4808_v13  ;;  %1932 = vst.msk [vmem:[#allocation2 + $0xf9] sm:$0xff] %vm801_vm2, %v1820_v23  ;;  %v2225_v15 = vld [vmem:[#allocation2 + $0x199] sm:$0xff] }
 0x226   : > { %v2817_v17 = vmax.f32 %v2793_v62, %v2803_v61  ;;  %v2649_v1 = vadd.f32 %v2617_v8, %v2581_v30  ;;  %v2140_v49 = vmul.f32 %v4441_v32, %v4810_v63  ;;  %1930 = vst.msk [vmem:[#allocation2 + $0xe1] sm:$0xff] %vm801_vm2, %v1812_v39  ;;  %v2465_v9 = vld [vmem:[#allocation2 + $0x19a] sm:$0xff]  ;;  %v2580_v62 = vadd.f32 %v2548_v44, %v2512_v31 }
 0x227   : > { %v2514_v52 = vadd.f32 %v2482_v19, %v2410_v47  ;;  %v2037_v18 = vadd.f32 %v4430_v26, %v2005_v55  ;;  %v2311_v43 = vmul.f32 %v4462_v48, %v4768_v50  ;;  %v2694_v11 = vld [vmem:[#allocation2 + $0x38] sm:$0xff]  ;;  %v2207_v34 = vld [vmem:[#allocation2 + $0xc1] sm:$0xff]  ;;  %v2618_v19 = vmul.f32 %v4498_v37, %v4833_v53 }
 0x228   : > { %v2825_v29 = vadd.f32 %v2817_v17, %v4737_v46  ;;  %v2275_v46 = vadd.f32 %v4761_v35, %v2171_v2  ;;  %v2709_v56 = vmax.f32 %v2647_v0, %v2649_v1  ;;  %2677 = vst.msk [vmem:[#allocation2 + $0x48] sm:$0xff] %vm801_vm2, %v2649_v1  ;;  %v2616_v35 = vmul.f32 %v4498_v37, %v4808_v13  ;;  %v2226_v2 = vld [vmem:[#allocation2 + $0x1a1] sm:$0xff] }
 0x229   : > { %v2172_v14 = vadd.f32 %v2140_v49, %v2104_v22  ;;  %v2582_v31 = vadd.f32 %v2550_v10, %v2514_v52  ;;  %v4850_v55 = vmul.f32 %v4467_v33, %v2225_v15  ;;  %v4853_v51 = vmul.f32 %v4498_v37, %v2465_v9  ;;  %v2208_v15 = vld [vmem:[#allocation2 + $0xc9] sm:$0xff] }
 0x22a   : > { %2833 = vst.msk [vmem:[%s4678_s21 + $0x8] sm:$0xff] %vm801_vm2, %v2825_v29  ;;  %v2725_v41 = vmax.f32 %v2709_v56, %v4718_v42  ;;  %v2244_v16 = vmul.f32 %v4446_v36, %v4750_v58  ;;  %v2343_v8 = vadd.f32 %v2311_v43, %v2275_v46  ;;  %v2648_v29 = vadd.f32 %v2616_v35, %v2580_v62 }
 0x22b   : > { %5445 = vst [vmem:[#allocation17_spill] sm:$0xff] %v4853_v51  ;;  %v2073_v22 = vmul.f32 %v4433_v54, %v4780_v59  ;;  %v2006_v42 = vmul.f32 %v4419_v60, %v4770_v28  ;;  %v2650_v23 = vadd.f32 %v2618_v19, %v2582_v31  ;;  %v4866_v39 = vmul.f32 %v4467_v33, %v2226_v2  ;;  %v4896_v43 = vld [vmem:[#allocation2 + $0xd9] sm:$0xff] }
 0x22c   : > { %2749 = vst.msk [vmem:[#allocation2 + $0x31] sm:$0xff] %vm801_vm2, %v2725_v41  ;;  %v4870_v58 = vadd.f32 %v4395_v3, %v4609_v4  ;;  %v2379_v44 = vmul.f32 %v4467_v33, %v2207_v34  ;;  %v2276_v0 = vadd.f32 %v2244_v16, %v2172_v14  ;;  %v2007_v28 = vmul.f32 %v4419_v60, %v4780_v59  ;;  %v4912_v41 = vld [vmem:[#allocation2 + $0xc2] sm:$0xff] }
 0x22d   : > { %5446 = vst [vmem:[#allocation18_spill] sm:$0xff] %v4866_v39  ;;  %v2710_v47 = vmax.f32 %v2648_v29, %v2650_v23  ;;  %2678 = vst.msk [vmem:[#allocation2 + $0x50] sm:$0xff] %vm801_vm2, %v2650_v23  ;;  %v2105_v1 = vadd.f32 %v2073_v22, %v2037_v18  ;;  %v2483_v46 = vmul.f32 %v4480_v7, %v4758_v21 }
 0x22e   : > { %v2411_v49 = vadd.f32 %v2379_v44, %v2343_v8  ;;  %v2008_v3 = vmul.f32 %v4419_v60, %v4810_v63  ;;  %v2038_v59 = vadd.f32 %v4430_v26, %v2006_v42  ;;  %v2245_v52 = vmul.f32 %v4446_v36, %v4768_v50  ;;  %v4919_v42 = vld [vmem:[#allocation2 + $0xca] sm:$0xff] }
 0x22f   : > { %v2726_v9 = vmax.f32 %v2710_v47, %v2694_v11  ;;  %v4887_v56 = vld [vmem:[#allocation2 + $0x48] sm:$0xff]  ;;  %v2484_v21 = vmul.f32 %v4480_v7, %v4808_v13  ;;  %v2039_v14 = vadd.f32 %v4430_v26, %v2007_v28  ;;  %v2313_v50 = vmul.f32 %v4462_v48, %v2207_v34 }
 0x230   : > { %v3063_v38 = vpop.f32.mrf.mxu0  ;;  %2740 = vst.msk [vmem:[#allocation2 + $0x48] sm:$0x1] %vm811_vm3, %v5442_v40  ;;  %v2074_v11 = vmul.f32 %v4433_v54, %v4810_v63  ;;  %v2040_v2 = vadd.f32 %v4430_v26, %v2008_v3  ;;  %v4909_v31 = vmul.f32 %v4446_v36, %v2208_v15  ;;  %v2380_v19 = vmul.f32 %v4467_v33, %v2208_v15  ;;  %v1971_v63 = vld [vmem:[#allocation2 + $0xf0] sm:$0xff] }
 0x231   : > { %v1833_v61 = vadd.f32 %v3063_v38, %v4406_v24  ;;  %v2312_v38 = vmul.f32 %v4462_v48, %v4800_v5  ;;  %2750 = vst.msk [vmem:[#allocation2 + $0x39] sm:$0xff] %vm801_vm2, %v2726_v9  ;;  %v2381_v29 = vmul.f32 %v4467_v33, %v4896_v43  ;;  %v2551_v28 = vmul.f32 %v4495_v20, %v4802_v27 }
 0x232   : > { %v1824_v17 = vpop.f32.mrf.mxu0  ;;  %v2106_v22 = vadd.f32 %v2074_v11, %v2038_v59  ;;  %v2553_v47 = vmul.f32 %v4495_v20, %v4912_v41  ;;  %v2143_v3 = vmul.f32 %v4441_v32, %v1971_v63 }
 0x233   : > { %1935 = vst.msk [vmem:[#allocation2 + $0x121] sm:$0xff] %vm801_vm2, %v1833_v61  ;;  %v1825_v30 = vadd.f32 %v4406_v24, %v1824_v17  ;;  %v4862_v24 = vld [vmem:[#allocation2 + $0xd8] sm:$0xff]  ;;  %v4892_v61 = vmul.f32 %v4446_v36, %v2207_v34  ;;  %v2344_v35 = vadd.f32 %v2312_v38, %v2276_v0  ;;  %v4905_v17 = vld [vmem:[#allocation2 + $0xe0] sm:$0xff]  ;;  %v2314_v34 = vmul.f32 %v4462_v48, %v2208_v15 }
 0x234   : > { %v2141_v10 = vmul.f32 %v4441_v32, %v4862_v24  ;;  %v2075_v18 = vmul.f32 %v4433_v54, %v4862_v24  ;;  %v4914_v16 = vpop.f32.mrf.mxu0  ;;  %v2142_v0 = vmul.f32 %v4441_v32, %v4905_v17  ;;  %v4934_v15 = vld [vmem:[#allocation2 + $0xda] sm:$0xff]  ;;  %v2009_v11 = vmul.f32 %v4419_v60, %v4862_v24 }
 0x235   : > { %1933 = vst.msk [vmem:[#allocation2 + $0x109] sm:$0xff] %vm801_vm2, %v1825_v30  ;;  %v2515_v30 = vadd.f32 %v2483_v46, %v2411_v49  ;;  %v2412_v23 = vadd.f32 %v2380_v19, %v2344_v35  ;;  %v2076_v46 = vmul.f32 %v4433_v54, %v4905_v17  ;;  %v2246_v49 = vmul.f32 %v4446_v36, %v4800_v5  ;;  %v4948_v19 = vld [vmem:[#allocation2 + $0xf8] sm:$0xff] }
 0x236   : > { %v2173_v62 = vadd.f32 %v2141_v10, %v2105_v1  ;;  %v2107_v44 = vadd.f32 %v2075_v18, %v2039_v14  ;;  %v2485_v10 = vmul.f32 %v4480_v7, %v4802_v27  ;;  %v2174_v38 = vadd.f32 %v2142_v0, %v2106_v22  ;;  %v4936_v9 = vpop.f32.mrf.mxu0  ;;  %v4944_v18 = vld [vmem:[#allocation2 + $0xe1] sm:$0xff] }
 0x237   : > { %v2583_v59 = vadd.f32 %v2551_v28, %v2515_v30  ;;  %v2619_v27 = vmul.f32 %v4498_v37, %v4912_v41  ;;  %v2516_v5 = vadd.f32 %v2484_v21, %v2412_v23  ;;  %v2621_v0 = vmul.f32 %v4498_v37, %v4934_v15 }
 0x238   : > { %v2277_v13 = vadd.f32 %v2245_v52, %v2173_v62  ;;  %v2554_v62 = vmul.f32 %v4495_v20, %v4919_v42  ;;  %v2620_v52 = vmul.f32 %v4498_v37, %v4919_v42  ;;  %v2765_v14 = vld [vmem:[#allocation2 + $0x30] ss:$2 sm:$0xff]  ;;  %v2278_v30 = vadd.f32 %v2246_v49, %v2174_v38 }
 0x239   : > { %v2552_v28 = vmul.f32 %v4495_v20, %v4833_v53  ;;  %v2382_v23 = vmul.f32 %v4467_v33, %v4944_v18  ;;  %v4957_v49 = vld [vmem:[#allocation2 + $0xf1] sm:$0xff] }
 0x23a   : > { %v2345_v8 = vadd.f32 %v2313_v50, %v2277_v13  ;;  %v2781_v50 = vld [vmem:[#allocation2 + $0x31] ss:$2 sm:$0xff]  ;;  %v2175_v13 = vadd.f32 %v2143_v3, %v2107_v44  ;;  %v2346_v21 = vadd.f32 %v2314_v34, %v2278_v30  ;;  %v2011_v3 = vmul.f32 %v4419_v60, %v1971_v63 }
 0x23b   : > { %v2584_v38 = vadd.f32 %v2552_v28, %v2516_v5  ;;  %v2041_v34 = vadd.f32 %v4430_v26, %v2009_v11  ;;  %v2317_v5 = vmul.f32 %v4462_v48, %v4957_v49  ;;  %v2383_v11 = vmul.f32 %v4467_v33, %v4957_v49 }
 0x23c   : > { %v2413_v1 = vadd.f32 %v2381_v29, %v2345_v8  ;;  %v2794_v8 = vmax.f32 %v2765_v14, %v2781_v50  ;;  %v2108_v29 = vadd.f32 %v2076_v46, %v2040_v2  ;;  %v2144_v2 = vmul.f32 %v4441_v32, %v4948_v19  ;;  %v4964_v14 = vld [vmem:[#allocation2 + $0x108] sm:$0xff] }
 0x23d   : > { %v2486_v46 = vmul.f32 %v4480_v7, %v4833_v53  ;;  %v2279_v50 = vadd.f32 %v4892_v61, %v2175_v13  ;;  %v2077_v53 = vmul.f32 %v4433_v54, %v1971_v63  ;;  %v2315_v61 = vmul.f32 %v4462_v48, %v4896_v43 }
 0x23e   : > { %v2517_v35 = vadd.f32 %v2485_v10, %v2413_v1  ;;  %v2805_v1 = vld [vmem:[#allocation2 + $0x32] ss:$2 sm:$0xff]  ;;  %v2651_v10 = vadd.f32 %v2619_v27, %v2583_v59  ;;  %v2176_v30 = vadd.f32 %v2144_v2, %v2108_v29  ;;  %v2079_v63 = vmul.f32 %v4433_v54, %v4964_v14 }
 0x23f   : > { %v2818_v44 = vmax.f32 %v2794_v8, %v2805_v1  ;;  %v4968_v8 = vld [vmem:[#allocation2 + $0xe2] sm:$0xff]  ;;  %v2652_v2 = vadd.f32 %v2620_v52, %v2584_v38  ;;  %v2316_v52 = vmul.f32 %v4462_v48, %v4944_v18 }
 0x240   : > { %v2585_v22 = vadd.f32 %v2553_v47, %v2517_v35  ;;  %v2414_v35 = vadd.f32 %v2382_v23, %v2346_v21  ;;  %v2622_v21 = vmul.f32 %v4498_v37, %v4968_v8  ;;  %v2109_v23 = vadd.f32 %v2077_v53, %v2041_v34  ;;  %v4997_v34 = vld [vmem:[%s5393_s6] ss:$0 sm:$0xff] }
 0x241   : > { %v2826_v27 = vadd.f32 %v2818_v44, %v4870_v58  ;;  %v2043_v58 = vadd.f32 %v4430_v26, %v2011_v3  ;;  %v2249_v44 = vmul.f32 %v4446_v36, %v4896_v43  ;;  %v2347_v26 = vadd.f32 %v2315_v61, %v2279_v50  ;;  %v2212_v50 = vld [vmem:[#allocation2 + $0xf9] sm:$0xff] }
 0x242   : > { %v2653_v47 = vadd.f32 %v2621_v0, %v2585_v22  ;;  %v2518_v22 = vadd.f32 %v2486_v46, %v2414_v35  ;;  %v2696_v0 = vld [vmem:[#allocation2 + $0x50] sm:$0xff]  ;;  %v2280_v3 = vadd.f32 %v4909_v31, %v2176_v30  ;;  %v1836_v35 = vadd.f32 %v4997_v34, %v4914_v16 }
 0x243   : > { %2834 = vst.msk [vmem:[%s4678_s21 + $0x10] sm:$0xff] %vm801_vm2, %v2826_v27  ;;  %v2012_v31 = vmul.f32 %v4419_v60, %v4948_v19  ;;  %v1828_v38 = vadd.f32 %v4997_v34, %v4936_v9 }
 0x244   : > { %v3067_v24 = vpop.f32.mrf.mxu0  ;;  %v2711_v1 = vmax.f32 %v2651_v10, %v2653_v47  ;;  %2679 = vst.msk [vmem:[#allocation2 + $0x60] sm:$0xff] %vm801_vm2, %v2653_v47  ;;  %v2586_v29 = vadd.f32 %v2554_v62, %v2518_v22  ;;  %v2145_v10 = vmul.f32 %v4441_v32, %v4964_v14  ;;  %v2111_v62 = vadd.f32 %v2079_v63, %v2043_v58 }
 0x245   : > { %v1849_v27 = vadd.f32 %v4997_v34, %v3067_v24  ;;  %1936 = vst.msk [vmem:[#allocation2 + $0x129] sm:$0xff] %vm801_vm2, %v1836_v35  ;;  %v2415_v58 = vadd.f32 %v2383_v11, %v2347_v26  ;;  %v2348_v61 = vadd.f32 %v2316_v52, %v2280_v3  ;;  %1934 = vst.msk [vmem:[#allocation2 + $0x111] sm:$0xff] %vm801_vm2, %v1828_v38 }
 0x246   : > { %v1840_v59 = vpop.f32.mrf.mxu0  ;;  %v2727_v13 = vmax.f32 %v2711_v1, %v4887_v56  ;;  %v4992_v56 = vld [vmem:[#allocation2 + $0x120] sm:$0xff]  ;;  %v2654_v47 = vadd.f32 %v2622_v21, %v2586_v29  ;;  %v2177_v46 = vadd.f32 %v2145_v10, %v2109_v23  ;;  %v5027_v29 = vld [vmem:[#allocation2 + $0x109] sm:$0xff]  ;;  %v2488_v21 = vmul.f32 %v4480_v7, %v4919_v42  ;;  %v2451_v23 = vld [vmem:[#allocation2 + $0xf2] sm:$0xff] }
 0x247   : > { %v2147_v1 = vmul.f32 %v4441_v32, %v4992_v56  ;;  %v1841_v22 = vadd.f32 %v4997_v34, %v1840_v59  ;;  %1939 = vst.msk [vmem:[#allocation2 + $0x151] sm:$0xff] %vm801_vm2, %v1849_v27  ;;  %v2487_v59 = vmul.f32 %v4480_v7, %v4912_v41  ;;  %v2452_v10 = vld [vmem:[#allocation2 + $0xfa] sm:$0xff]  ;;  %v2251_v41 = vmul.f32 %v4446_v36, %v4957_v49 }
 0x248   : > { %v3068_v28 = vpop.f32.mrf.mxu0  ;;  %2751 = vst.msk [vmem:[#allocation2 + $0x49] sm:$0xff] %vm801_vm2, %v2727_v13  ;;  %v2712_v30 = vmax.f32 %v2652_v2, %v2654_v47  ;;  %2680 = vst.msk [vmem:[#allocation2 + $0x68] sm:$0xff] %vm801_vm2, %v2654_v47  ;;  %v2281_v16 = vadd.f32 %v2249_v44, %v2177_v46  ;;  %v5023_v13 = vadd.f32 %v4399_v57, %v4609_v4 }
 0x249   : > { %v1852_v9 = vadd.f32 %v4997_v34, %v3068_v28  ;;  %v2179_v63 = vadd.f32 %v2147_v1, %v2111_v62  ;;  %1937 = vst.msk [vmem:[#allocation2 + $0x139] sm:$0xff] %vm801_vm2, %v1841_v22  ;;  %v2384_v28 = vmul.f32 %v4467_v33, %v2212_v50  ;;  %v2010_v57 = vmul.f32 %v4419_v60, %v4905_v17  ;;  %v5049_v17 = vld [vmem:[%s5395_s8] ss:$0 sm:$0xff] }
 0x24a   : > { %v1843_v43 = vpop.f32.mrf.mxu0  ;;  %v2728_v11 = vmax.f32 %v2712_v30, %v2696_v0  ;;  %v2349_v4 = vadd.f32 %v2317_v5, %v2281_v16  ;;  %v2078_v0 = vmul.f32 %v4433_v54, %v4948_v19  ;;  %v5042_v42 = vmul.f32 %v4446_v36, %v2212_v50 }
 0x24b   : > { %v5012_v53 = vld [vmem:[#allocation2 + $0x60] sm:$0xff]  ;;  %v1844_v24 = vadd.f32 %v4997_v34, %v1843_v43  ;;  %1940 = vst.msk [vmem:[#allocation2 + $0x159] sm:$0xff] %vm801_vm2, %v1852_v9  ;;  %v2318_v44 = vmul.f32 %v4462_v48, %v2212_v50  ;;  %v2044_v5 = vadd.f32 %v5049_v17, %v2012_v31  ;;  %v2416_v26 = vadd.f32 %v2384_v28, %v2348_v61 }
 0x24c   : > { %2741 = vst.msk [vmem:[#allocation2 + $0x60] sm:$0x1] %vm811_vm3, %v5442_v40  ;;  %v2519_v3 = vadd.f32 %v2487_v59, %v2415_v58  ;;  %v2385_v49 = vmul.f32 %v4467_v33, %v5027_v29  ;;  %v5055_v19 = vmul.f32 %v4480_v7, %v2451_v23  ;;  %v5058_v2 = vmul.f32 %v4480_v7, %v2452_v10  ;;  %v5073_v30 = vld [vmem:[#allocation2 + $0x110] sm:$0xff]  ;;  %v2215_v61 = vld [vmem:[#allocation2 + $0x121] sm:$0xff] }
 0x24d   : > { %1938 = vst.msk [vmem:[#allocation2 + $0x141] sm:$0xff] %vm801_vm2, %v1844_v24  ;;  %2752 = vst.msk [vmem:[#allocation2 + $0x51] sm:$0xff] %vm801_vm2, %v2728_v11  ;;  %v2557_v47 = vmul.f32 %v4495_v20, %v2451_v23  ;;  %v2283_v62 = vadd.f32 %v2251_v41, %v2179_v63  ;;  %v5062_v46 = vmul.f32 %v4495_v20, %v2452_v10  ;;  %v5093_v41 = vld [vmem:[#allocation2 + $0x10a] sm:$0xff] }
 0x24e   : > { %v2042_v35 = vadd.f32 %v5049_v17, %v2010_v57  ;;  %v2555_v43 = vmul.f32 %v4495_v20, %v4934_v15  ;;  %v2417_v31 = vadd.f32 %v2385_v49, %v2349_v4  ;;  %v2623_v52 = vmul.f32 %v4498_v37, %v2451_v23 }
 0x24f   : > { %v2624_v38 = vmul.f32 %v4498_v37, %v2452_v10  ;;  %v2015_v27 = vmul.f32 %v4419_v60, %v4992_v56  ;;  %v2319_v50 = vmul.f32 %v4462_v48, %v5027_v29  ;;  %v2250_v1 = vmul.f32 %v4446_v36, %v4944_v18  ;;  %v1976_v18 = vld [vmem:[#allocation2 + $0x128] sm:$0xff] }
 0x250   : > { %v2489_v16 = vmul.f32 %v4480_v7, %v4934_v15  ;;  %v2520_v22 = vadd.f32 %v2488_v21, %v2416_v26  ;;  %v2587_v58 = vadd.f32 %v2555_v43, %v2519_v3  ;;  %v2490_v9 = vmul.f32 %v4480_v7, %v4968_v8 }
 0x251   : > { %v2556_v24 = vmul.f32 %v4495_v20, %v4968_v8  ;;  %v2013_v59 = vmul.f32 %v4419_v60, %v4964_v14  ;;  %v2351_v11 = vadd.f32 %v2319_v50, %v2283_v62  ;;  %v2080_v15 = vmul.f32 %v4433_v54, %v5073_v30 }
 0x252   : > { %v2521_v23 = vadd.f32 %v2489_v16, %v2417_v31  ;;  %v2110_v21 = vadd.f32 %v2078_v0, %v2042_v35  ;;  %v2146_v10 = vmul.f32 %v4441_v32, %v5073_v30  ;;  %v2047_v4 = vadd.f32 %v5049_v17, %v2015_v27  ;;  %v5097_v27 = vld [vmem:[#allocation2 + $0x111] sm:$0xff]  ;;  %v2220_v51 = vld [vmem:[#allocation2 + $0x159] sm:$0xff] }
 0x253   : > { %v2081_v8 = vmul.f32 %v4433_v54, %v4992_v56  ;;  %v2387_v14 = vmul.f32 %v4467_v33, %v2215_v61  ;;  %v2588_v26 = vadd.f32 %v2556_v24, %v2520_v22  ;;  %v2655_v3 = vadd.f32 %v2623_v52, %v2587_v58  ;;  %v2216_v24 = vld [vmem:[#allocation2 + $0x129] sm:$0xff] }
 0x254   : > { %v2767_v63 = vld [vmem:[#allocation2 + $0x48] ss:$2 sm:$0xff]  ;;  %v2783_v28 = vld [vmem:[#allocation2 + $0x49] ss:$2 sm:$0xff]  ;;  %v2112_v62 = vadd.f32 %v2080_v15, %v2044_v5  ;;  %v2178_v43 = vadd.f32 %v2146_v10, %v2110_v21  ;;  %v2045_v0 = vadd.f32 %v5049_v17, %v2013_v59  ;;  %v2148_v50 = vmul.f32 %v4441_v32, %v1976_v18 }
 0x255   : > { %v2795_v57 = vmax.f32 %v2767_v63, %v2783_v28  ;;  %v2807_v49 = vld [vmem:[#allocation2 + $0x4a] ss:$2 sm:$0xff]  ;;  %v2419_v35 = vadd.f32 %v2387_v14, %v2351_v11  ;;  %v5100_v56 = vmul.f32 %v4446_v36, %v2215_v61  ;;  %v2589_v63 = vadd.f32 %v2557_v47, %v2521_v23  ;;  %v2455_v23 = vld [vmem:[#allocation2 + $0x122] sm:$0xff] }
 0x256   : > { %v2282_v16 = vadd.f32 %v2250_v1, %v2178_v43  ;;  %v2625_v52 = vmul.f32 %v4498_v37, %v5093_v41  ;;  %v2321_v22 = vmul.f32 %v4462_v48, %v2215_v61  ;;  %v2253_v58 = vmul.f32 %v4446_v36, %v5027_v29  ;;  %v5112_v47 = vld [vmem:[#allocation2 + $0x138] sm:$0xff]  ;;  %v2456_v29 = vld [vmem:[#allocation2 + $0x12a] sm:$0xff] }
 0x257   : > { %v2819_v31 = vmax.f32 %v2795_v57, %v2807_v49  ;;  %v2180_v59 = vadd.f32 %v2148_v50, %v2112_v62  ;;  %v5108_v11 = vadd.f32 %v2624_v38, %v2588_v26  ;;  %v2386_v15 = vmul.f32 %v4467_v33, %v5097_v27  ;;  %v2454_v49 = vld [vmem:[#allocation2 + $0x112] sm:$0xff]  ;;  %v2698_v62 = vld [vmem:[#allocation2 + $0x68] sm:$0xff] }
 0x258   : > { %v2350_v28 = vadd.f32 %v2318_v44, %v2282_v16  ;;  %v2657_v1 = vadd.f32 %v2625_v52, %v2589_v63  ;;  %v5118_v61 = vmul.f32 %v4433_v54, %v1976_v18  ;;  %v2523_v21 = vadd.f32 %v5055_v19, %v2419_v35  ;;  %v1979_v16 = vld [vmem:[#allocation2 + $0x150] sm:$0xff]  ;;  %v5146_v52 = vpop.f32.mrf.mxu0 }
 0x259   : > { %v2827_v5 = vadd.f32 %v2819_v31, %v5023_v13  ;;  %v2016_v13 = vmul.f32 %v4419_v60, %v1976_v18  ;;  %v2113_v38 = vadd.f32 %v2081_v8, %v2045_v0  ;;  %v5122_v44 = vmul.f32 %v4446_v36, %v2216_v24 }
 0x25a   : > { %v5125_v10 = vmul.f32 %v4462_v48, %v2216_v24  ;;  %v2418_v57 = vadd.f32 %v2386_v15, %v2350_v28  ;;  %v2713_v14 = vmax.f32 %v2655_v3, %v2657_v1  ;;  %2681 = vst.msk [vmem:[#allocation2 + $0x78] sm:$0xff] %vm801_vm2, %v2657_v1  ;;  %v2388_v26 = vmul.f32 %v4467_v33, %v2216_v24 }
 0x25b   : > { %2835 = vst.msk [vmem:[%s4678_s21 + $0x18] sm:$0xff] %vm801_vm2, %v2827_v5  ;;  %v2284_v18 = vadd.f32 %v5042_v42, %v2180_v59  ;;  %v2083_v19 = vmul.f32 %v4433_v54, %v5112_v47  ;;  %v2149_v8 = vmul.f32 %v4441_v32, %v5112_v47  ;;  %v5135_v43 = vmul.f32 %v4480_v7, %v2455_v23  ;;  %v2217_v59 = vld [vmem:[#allocation2 + $0x139] sm:$0xff] }
 0x25c   : > { %v5138_v31 = vmul.f32 %v4480_v7, %v2456_v29  ;;  %v2522_v3 = vadd.f32 %v2490_v9, %v2418_v57  ;;  %v2729_v0 = vmax.f32 %v2713_v14, %v5012_v53  ;;  %v2048_v35 = vadd.f32 %v5049_v17, %v2016_v13 }
 0x25d   : > { %v2014_v42 = vmul.f32 %v4419_v60, %v5073_v30  ;;  %v2320_v50 = vmul.f32 %v4462_v48, %v5097_v27  ;;  %v2181_v63 = vadd.f32 %v2149_v8, %v2113_v38  ;;  %v2559_v5 = vmul.f32 %v4495_v20, %v5093_v41 }
 0x25e   : > { %v2590_v24 = vadd.f32 %v5062_v46, %v2522_v3  ;;  %v2626_v9 = vmul.f32 %v4498_v37, %v2454_v49  ;;  %2753 = vst.msk [vmem:[#allocation2 + $0x61] sm:$0xff] %vm801_vm2, %v2729_v0  ;;  %v2115_v53 = vadd.f32 %v2083_v19, %v2047_v4  ;;  %v2561_v30 = vmul.f32 %v4495_v20, %v2455_v23  ;;  %v1856_v0 = vpop.f32.mrf.mxu0 }
 0x25f   : > { %v5155_v28 = vmul.f32 %v4495_v20, %v2456_v29  ;;  %v2352_v15 = vadd.f32 %v2320_v50, %v2284_v18  ;;  %v2285_v1 = vadd.f32 %v2253_v58, %v2181_v63  ;;  %v2627_v13 = vmul.f32 %v4498_v37, %v2455_v23  ;;  %v5171_v50 = vld [vmem:[#allocation2 + $0x140] sm:$0xff] }
 0x260   : > { %v2591_v38 = vadd.f32 %v2559_v5, %v2523_v21  ;;  %v2658_v57 = vadd.f32 %v2626_v9, %v2590_v24  ;;  %v2151_v14 = vmul.f32 %v4441_v32, %v1979_v16  ;;  %v5160_v46 = vmul.f32 %v4498_v37, %v2456_v29  ;;  %v2219_v21 = vld [vmem:[#allocation2 + $0x151] sm:$0xff] }
 0x261   : > { %v2019_v8 = vmul.f32 %v4419_v60, %v1979_v16  ;;  %v2353_v4 = vadd.f32 %v2321_v22, %v2285_v1  ;;  %v2389_v19 = vmul.f32 %v4467_v33, %v2217_v59  ;;  %v5164_v3 = vld [vmem:[#allocation2 + $0x78] sm:$0xff]  ;;  %v2046_v18 = vadd.f32 %v5049_v17, %v2014_v42 }
 0x262   : > { %v2254_v58 = vmul.f32 %v4446_v36, %v5097_v27  ;;  %v2714_v23 = vmax.f32 %v5108_v11, %v2658_v57  ;;  %2682 = vst.msk [vmem:[#allocation2 + $0x80] sm:$0xff] %vm801_vm2, %v2658_v57  ;;  %v2183_v29 = vadd.f32 %v2151_v14, %v2115_v53  ;;  %v2420_v22 = vadd.f32 %v2388_v26, %v2352_v15  ;;  %v1980_v53 = vld [vmem:[#allocation2 + $0x158] sm:$0xff]  ;;  %v3072_v57 = vpop.f32.mrf.mxu0 }
 0x263   : > { %2742 = vst.msk [vmem:[#allocation2 + $0x78] sm:$0x1] %vm811_vm3, %v5442_v40  ;;  %v2493_v63 = vmul.f32 %v4480_v7, %v5093_v41  ;;  %v5178_v42 = vmul.f32 %v4480_v7, %v2454_v49  ;;  %v2421_v5 = vadd.f32 %v2389_v19, %v2353_v4  ;;  %v2560_v27 = vmul.f32 %v4495_v20, %v2454_v49 }
 0x264   : > { %v5181_v11 = vadd.f32 %v2627_v13, %v2591_v38  ;;  %v2730_v24 = vmax.f32 %v2714_v23, %v2698_v62  ;;  %v5184_v9 = vmul.f32 %v4433_v54, %v1979_v16  ;;  %v5187_v1 = vadd.f32 %v5049_v17, %v2019_v8  ;;  %v5202_v38 = vld [vmem:[#allocation2 + $0x13a] sm:$0xff] }
 0x265   : > { %v5190_v26 = vmul.f32 %v4446_v36, %v2219_v21  ;;  %v2525_v41 = vadd.f32 %v2493_v63, %v2421_v5  ;;  %v2084_v15 = vmul.f32 %v4433_v54, %v5171_v50  ;;  %v5196_v49 = vmul.f32 %v4462_v48, %v2219_v21  ;;  %v2218_v5 = vld [vmem:[#allocation2 + $0x141] sm:$0xff] }
 0x266   : > { %2754 = vst.msk [vmem:[#allocation2 + $0x69] sm:$0xff] %vm801_vm2, %v2730_v24  ;;  %v2287_v62 = vadd.f32 %v5100_v56, %v2183_v29  ;;  %v2114_v16 = vadd.f32 %v5118_v61, %v2046_v18  ;;  %v2150_v13 = vmul.f32 %v4441_v32, %v5171_v50  ;;  %v2524_v14 = vadd.f32 %v5058_v2, %v2420_v22 }
 0x267   : > { %v2017_v8 = vmul.f32 %v4419_v60, %v5112_v47  ;;  %v2152_v4 = vmul.f32 %v4441_v32, %v1980_v53  ;;  %v2116_v19 = vadd.f32 %v2084_v15, %v2048_v35  ;;  %v2391_v23 = vmul.f32 %v4467_v33, %v2219_v21  ;;  %v1859_v47 = vpop.f32.mrf.mxu0 }
 0x268   : > { %v5210_v63 = vmul.f32 %v4446_v36, %v2217_v59  ;;  %v2323_v56 = vmul.f32 %v4462_v48, %v2217_v59  ;;  %v2182_v61 = vadd.f32 %v2150_v13, %v2114_v16  ;;  %v2020_v18 = vmul.f32 %v4419_v60, %v1980_v53 }
 0x269   : > { %v2184_v29 = vadd.f32 %v2152_v4, %v2116_v19  ;;  %v2593_v24 = vadd.f32 %v2561_v30, %v2525_v41  ;;  %v2629_v2 = vmul.f32 %v4498_v37, %v5202_v38  ;;  %v1865_v21 = vadd.f32 %v4997_v34, %v5146_v52  ;;  %v2460_v4 = vld [vmem:[#allocation2 + $0x15a] sm:$0xff] }
 0x26a   : > { %v2355_v22 = vadd.f32 %v2323_v56, %v2287_v62  ;;  %v2286_v35 = vadd.f32 %v2254_v58, %v2182_v61  ;;  %v1857_v15 = vadd.f32 %v4997_v34, %v1856_v0  ;;  %v2592_v39 = vadd.f32 %v2560_v27, %v2524_v14  ;;  %v2700_v61 = vld [vmem:[#allocation2 + $0x80] sm:$0xff] }
 0x26b   : > { %v5220_v59 = vadd.f32 %v5049_v17, %v2017_v8  ;;  %v2661_v16 = vadd.f32 %v2629_v2, %v2593_v24  ;;  %v1868_v13 = vadd.f32 %v4997_v34, %v3072_v57  ;;  %v2288_v30 = vadd.f32 %v5122_v44, %v2184_v29  ;;  %1943 = vst.msk [vmem:[#allocation2 + $0x181] sm:$0xff] %vm801_vm2, %v1865_v21  ;;  %v2458_v24 = vld [vmem:[#allocation2 + $0x142] sm:$0xff] }
 0x26c   : > { %v2354_v41 = vadd.f32 %v5125_v10, %v2286_v35  ;;  %v2390_v62 = vmul.f32 %v4467_v33, %v2218_v5  ;;  %1941 = vst.msk [vmem:[#allocation2 + $0x169] sm:$0xff] %vm801_vm2, %v1857_v15  ;;  %v1860_v52 = vadd.f32 %v4997_v34, %v1859_v47  ;;  %v5230_v27 = vadd.f32 %v5049_v17, %v2020_v18  ;;  %v2459_v34 = vld [vmem:[#allocation2 + $0x152] sm:$0xff] }
 0x26d   : > { %v2769_v0 = vld [vmem:[#allocation2 + $0x60] ss:$2 sm:$0xff]  ;;  %v2785_v58 = vld [vmem:[#allocation2 + $0x61] ss:$2 sm:$0xff]  ;;  %v5233_v14 = vmul.f32 %v4433_v54, %v1980_v53  ;;  %v5236_v44 = vmul.f32 %v4446_v36, %v2220_v51  ;;  %v2715_v10 = vmax.f32 %v5181_v11, %v2661_v16  ;;  %2683 = vst.msk [vmem:[#allocation2 + $0x90] sm:$0xff] %vm801_vm2, %v2661_v16  ;;  %1944 = vst.msk [vmem:[#allocation2 + $0x189] sm:$0xff] %vm801_vm2, %v1868_v13 }
 0x26e   : > { %v2796_v57 = vmax.f32 %v2769_v0, %v2785_v58  ;;  %v2423_v8 = vadd.f32 %v2391_v23, %v2355_v22  ;;  %v2324_v19 = vmul.f32 %v4462_v48, %v2218_v5  ;;  %v2422_v56 = vadd.f32 %v2390_v62, %v2354_v41  ;;  %1942 = vst.msk [vmem:[#allocation2 + $0x171] sm:$0xff] %vm801_vm2, %v1860_v52  ;;  %v2809_v53 = vld [vmem:[#allocation2 + $0x62] ss:$2 sm:$0xff] }
 0x26f   : > { %v5244_v18 = vmul.f32 %v4462_v48, %v2220_v51  ;;  %v2392_v11 = vmul.f32 %v4467_v33, %v2220_v51  ;;  %v2018_v29 = vmul.f32 %v4419_v60, %v5171_v50  ;;  %v2731_v23 = vmax.f32 %v2715_v10, %v5164_v3 }
 0x270   : > { %v2660_v2 = vadd.f32 %v5160_v46, %v2592_v39  ;;  %v2820_v47 = vmax.f32 %v2796_v57, %v2809_v53  ;;  %v2356_v22 = vadd.f32 %v2324_v19, %v2288_v30  ;;  %v2526_v35 = vadd.f32 %v5178_v42, %v2422_v56 }
 0x271   : > { %v5253_v21 = vmul.f32 %v4480_v7, %v2459_v34  ;;  %v5256_v15 = vmul.f32 %v4480_v7, %v2460_v4  ;;  %v5259_v51 = vmul.f32 %v4495_v20, %v2459_v34  ;;  %v5262_v50 = vmul.f32 %v4495_v20, %v2460_v4  ;;  %2755 = vst.msk [vmem:[#allocation2 + $0x79] sm:$0xff] %vm801_vm2, %v2731_v23 }
 0x272   : > { %v2828_v39 = vadd.f32 %v2820_v47, %v4722_v25  ;;  %v2527_v46 = vadd.f32 %v5135_v43, %v2423_v8  ;;  %v2594_v3 = vadd.f32 %v5155_v28, %v2526_v35  ;;  %v2630_v42 = vmul.f32 %v4498_v37, %v2458_v24  ;;  %v1983_v0 = vld [vmem:[#allocation2 + $0x180] sm:$0xff] }
 0x273   : > { %v5270_v16 = vmul.f32 %v4498_v37, %v2459_v34  ;;  %v5273_v13 = vmul.f32 %v4498_v37, %v2460_v4  ;;  %v2050_v30 = vadd.f32 %v5049_v17, %v2018_v29  ;;  %v5277_v41 = vmul.f32 %v4446_v36, %v2218_v5  ;;  %v1981_v62 = vld [vmem:[#allocation2 + $0x168] sm:$0xff] }
 0x274   : > { %2836 = vst.msk [vmem:[%s4678_s21 + $0x20] sm:$0xff] %vm801_vm2, %v2828_v39  ;;  %v2424_v25 = vadd.f32 %v2392_v11, %v2356_v22  ;;  %v2497_v43 = vmul.f32 %v4480_v7, %v5202_v38  ;;  %v2563_v28 = vmul.f32 %v4495_v20, %v5202_v38  ;;  %v2662_v52 = vadd.f32 %v2630_v42, %v2594_v3  ;;  %v2223_v4 = vld [vmem:[#allocation2 + $0x181] sm:$0xff]  ;;  %v5303_v23 = vld [vmem:[#allocation2 + $0x90] sm:$0xff] }
 0x275   : > { %v5286_v58 = vmul.f32 %v4480_v7, %v2458_v24  ;;  %v5289_v10 = vmul.f32 %v4495_v20, %v2458_v24  ;;  %v2021_v5 = vmul.f32 %v4419_v60, %v1981_v62  ;;  %v2087_v57 = vmul.f32 %v4433_v54, %v1981_v62  ;;  %v2221_v24 = vld [vmem:[#allocation2 + $0x169] sm:$0xff]  ;;  %2743 = vst.msk [vmem:[#allocation2 + $0x90] sm:$0x1] %vm811_vm3, %v5442_v40 }
 0x276   : > { %v5293_v8 = vadd.f32 %v2563_v28, %v2527_v46  ;;  %v2716_v34 = vmax.f32 %v2660_v2, %v2662_v52  ;;  %2684 = vst.msk [vmem:[#allocation2 + $0x98] sm:$0xff] %vm801_vm2, %v2662_v52  ;;  %v2117_v38 = vadd.f32 %v5184_v9, %v5220_v59  ;;  %v2153_v19 = vmul.f32 %v4441_v32, %v1981_v62  ;;  %v1982_v35 = vld [vmem:[#allocation2 + $0x170] sm:$0xff]  ;;  %v1984_v3 = vld [vmem:[#allocation2 + $0x188] sm:$0xff] }
 0x277   : > { %v2089_v56 = vmul.f32 %v4433_v54, %v1983_v0  ;;  %v2155_v53 = vmul.f32 %v4441_v32, %v1983_v0  ;;  %v2053_v11 = vadd.f32 %v5049_v17, %v2021_v5  ;;  %v2119_v29 = vadd.f32 %v2087_v57, %v5187_v1 }
 0x278   : > { %v5306_v2 = vadd.f32 %v5138_v31, %v2424_v25  ;;  %v2732_v47 = vmax.f32 %v2716_v34, %v2700_v61  ;;  %v2185_v22 = vadd.f32 %v2153_v19, %v2117_v38  ;;  %v2118_v9 = vadd.f32 %v5233_v14, %v2050_v30  ;;  %v2224_v30 = vld [vmem:[#allocation2 + $0x189] sm:$0xff]  ;;  %v2222_v34 = vld [vmem:[#allocation2 + $0x171] sm:$0xff] }
 0x279   : > { %v2329_v59 = vmul.f32 %v4462_v48, %v2223_v4  ;;  %v2395_v39 = vmul.f32 %v4467_v33, %v2223_v4  ;;  %v2121_v46 = vadd.f32 %v2089_v56, %v2053_v11  ;;  %v2187_v1 = vadd.f32 %v2155_v53, %v2119_v29 }
 0x27a   : > { %2756 = vst.msk [vmem:[#allocation2 + $0x81] sm:$0xff] %vm801_vm2, %v2732_v47  ;;  %v2261_v31 = vmul.f32 %v4446_v36, %v2221_v24  ;;  %v2289_v61 = vadd.f32 %v5210_v63, %v2185_v22  ;;  %v2327_v42 = vmul.f32 %v4462_v48, %v2221_v24  ;;  %v2393_v14 = vmul.f32 %v4467_v33, %v2221_v24  ;;  %v2463_v47 = vld [vmem:[#allocation2 + $0x182] sm:$0xff] }
 0x27b   : > { %v2189_v62 = vadd.f32 %v4733_v6, %v2121_v46  ;;  %v2291_v25 = vadd.f32 %v5190_v26, %v2187_v1  ;;  %v2022_v28 = vmul.f32 %v4419_v60, %v1982_v35  ;;  %v2088_v52 = vmul.f32 %v4433_v54, %v1982_v35 }
 0x27c   : > { %v2357_v0 = vadd.f32 %v5196_v49, %v2289_v61  ;;  %v2090_v5 = vmul.f32 %v4433_v54, %v1984_v3  ;;  %v2156_v57 = vmul.f32 %v4441_v32, %v1984_v3  ;;  %v2154_v63 = vmul.f32 %v4441_v32, %v1982_v35  ;;  %v2461_v49 = vld [vmem:[#allocation2 + $0x16a] sm:$0xff] }
 0x27d   : > { %v2293_v4 = vadd.f32 %v2261_v31, %v2189_v62  ;;  %v2330_v38 = vmul.f32 %v4462_v48, %v2224_v30  ;;  %v2054_v6 = vadd.f32 %v5049_v17, %v2022_v28  ;;  %v2120_v26 = vadd.f32 %v2088_v52, %v5230_v27  ;;  %v2466_v28 = vld [vmem:[#allocation2 + $0x1a2] sm:$0xff] }
 0x27e   : > { %v2359_v19 = vadd.f32 %v2327_v42, %v2291_v25  ;;  %v2425_v60 = vadd.f32 %v2393_v14, %v2357_v0  ;;  %v2396_v56 = vmul.f32 %v4467_v33, %v2224_v30  ;;  %v2186_v53 = vadd.f32 %v2154_v63, %v2118_v9  ;;  %v2464_v0 = vld [vmem:[#allocation2 + $0x18a] sm:$0xff] }
 0x27f   : > { %v2361_v11 = vadd.f32 %v2329_v59, %v2293_v4  ;;  %v2122_v54 = vadd.f32 %v2090_v5, %v2054_v6  ;;  %v2188_v29 = vadd.f32 %v2156_v57, %v2120_v26  ;;  %v2262_v24 = vmul.f32 %v4446_v36, %v2222_v34  ;;  %v5447_v57 = vld [vmem:[#allocation18_spill] sm:$0xff]  ;;  %v5448_v6 = vld [vmem:[#allocation17_spill] sm:$0xff] }
 0x280   : > { %v2529_v32 = vadd.f32 %v2497_v43, %v2425_v60  ;;  %v2290_v22 = vadd.f32 %v5277_v41, %v2186_v53  ;;  %v2328_v35 = vmul.f32 %v4462_v48, %v2222_v34  ;;  %v2394_v17 = vmul.f32 %v4467_v33, %v2222_v34  ;;  %v2702_v60 = vld [vmem:[#allocation2 + $0x98] sm:$0xff] }
 0x281   : > { %v2771_v27 = vld [vmem:[#allocation2 + $0x78] ss:$2 sm:$0xff]  ;;  %v2787_v46 = vld [vmem:[#allocation2 + $0x79] ss:$2 sm:$0xff]  ;;  %v2190_v1 = vadd.f32 %v4824_v12, %v2122_v54  ;;  %v2292_v9 = vadd.f32 %v5236_v44, %v2188_v29  ;;  %v2429_v59 = vadd.f32 %v4850_v55, %v2361_v11  ;;  %v2501_v3 = vmul.f32 %v4480_v7, %v2461_v49 }
 0x282   : > { %v2797_v31 = vmax.f32 %v2771_v27, %v2787_v46  ;;  %v2427_v36 = vadd.f32 %v2395_v39, %v2359_v19  ;;  %v2358_v43 = vadd.f32 %v5244_v18, %v2290_v22  ;;  %v2597_v41 = vadd.f32 %v5259_v51, %v2529_v32  ;;  %v2811_v61 = vld [vmem:[#allocation2 + $0x7a] ss:$2 sm:$0xff]  ;;  %v2462_v55 = vld [vmem:[#allocation2 + $0x172] sm:$0xff] }
 0x283   : > { %v2569_v48 = vmul.f32 %v4495_v20, %v2463_v47  ;;  %v2294_v33 = vadd.f32 %v2262_v24, %v2190_v1  ;;  %v2360_v42 = vadd.f32 %v2328_v35, %v2292_v9  ;;  %v2533_v14 = vadd.f32 %v2501_v3, %v2429_v59  ;;  %v5449_v3 = vld [vmem:[#allocation10_spill] sm:$0xff] }
 0x284   : > { %v2663_v12 = vadd.f32 %v5270_v16, %v5293_v8  ;;  %v2821_v44 = vmax.f32 %v2797_v31, %v2811_v61  ;;  %v2426_v30 = vadd.f32 %v2394_v17, %v2358_v43  ;;  %v2633_v62 = vmul.f32 %v4498_v37, %v2461_v49 }
 0x285   : > { %v2596_v18 = vadd.f32 %v5289_v10, %v5306_v2  ;;  %v2362_v39 = vadd.f32 %v2330_v38, %v2294_v33  ;;  %v2428_v51 = vadd.f32 %v2396_v56, %v2360_v42  ;;  %v2601_v25 = vadd.f32 %v2569_v48, %v2533_v14  ;;  %v5450_v42 = vld [vmem:[#allocation12_spill] sm:$0xff] }
 0x286   : > { %v2829_v52 = vadd.f32 %v2821_v44, %v4726_v45  ;;  %v2530_v5 = vadd.f32 %v5286_v58, %v2426_v30  ;;  %v2531_v16 = vadd.f32 %v5253_v21, %v2427_v36  ;;  %v2665_v8 = vadd.f32 %v2633_v62, %v2597_v41 }
 0x287   : > { %v2430_v63 = vadd.f32 %v5447_v57, %v2362_v39  ;;  %v2502_v34 = vmul.f32 %v4480_v7, %v2462_v55  ;;  %v2567_v4 = vmul.f32 %v4495_v20, %v2461_v49  ;;  %v2669_v10 = vadd.f32 %v5448_v6, %v2601_v25 }
 0x288   : > { %2837 = vst.msk [vmem:[%s4678_s21 + $0x28] sm:$0xff] %vm801_vm2, %v2829_v52  ;;  %v2532_v2 = vadd.f32 %v5256_v15, %v2428_v51  ;;  %v2598_v45 = vadd.f32 %v5262_v50, %v2530_v5  ;;  %v2634_v38 = vmul.f32 %v4498_v37, %v2462_v55  ;;  %2685 = vst.msk [vmem:[#allocation2 + $0xa8] sm:$0xff] %vm801_vm2, %v2665_v8 }
 0x289   : > { %v2717_v21 = vmax.f32 %v2663_v12, %v2665_v8  ;;  %v2638_v58 = vmul.f32 %v4498_v37, %v2466_v28  ;;  %v2664_v26 = vadd.f32 %v5273_v13, %v2596_v18  ;;  %v2570_v7 = vmul.f32 %v4495_v20, %v2464_v0  ;;  %2687 = vst.msk [vmem:[#allocation2 + $0xc0] sm:$0xff] %vm801_vm2, %v2669_v10 }
 0x28a   : > { %v2534_v19 = vadd.f32 %v2502_v34, %v2430_v63  ;;  %v2568_v56 = vmul.f32 %v4495_v20, %v2462_v55  ;;  %v2599_v15 = vadd.f32 %v2567_v4, %v2531_v16  ;;  %v2666_v53 = vadd.f32 %v2634_v38, %v2598_v45 }
 0x28b   : > { %v2733_v50 = vmax.f32 %v2717_v21, %v5303_v23  ;;  %v2635_v11 = vmul.f32 %v4498_v37, %v2463_v47  ;;  %v2636_v24 = vmul.f32 %v4498_v37, %v2464_v0 }
 0x28c   : > { %v2602_v49 = vadd.f32 %v2570_v7, %v2534_v19  ;;  %v2600_v54 = vadd.f32 %v2568_v56, %v2532_v2  ;;  %2686 = vst.msk [vmem:[#allocation2 + $0xb0] sm:$0xff] %vm801_vm2, %v2666_v53  ;;  %v2718_v29 = vmax.f32 %v2664_v26, %v2666_v53 }
 0x28d   : > { %2757 = vst.msk [vmem:[#allocation2 + $0x91] sm:$0xff] %vm801_vm2, %v2733_v50  ;;  %v2667_v32 = vadd.f32 %v2635_v11, %v2599_v15 }
 0x28e   : > { %v2670_v13 = vadd.f32 %v2638_v58, %v2602_v49  ;;  %v2734_v22 = vmax.f32 %v2718_v29, %v2702_v60  ;;  %v2668_v35 = vadd.f32 %v2636_v24, %v2600_v54 }
 0x28f   : > { %v2703_v20 = vld [vmem:[#allocation2 + $0xa8] sm:$0xff]  ;;  %v2719_v17 = vmax.f32 %v2667_v32, %v2669_v10 }
 0x290   : > { %2688 = vst.msk [vmem:[#allocation2 + $0xc8] sm:$0xff] %vm801_vm2, %v2670_v13  ;;  %2758 = vst.msk [vmem:[#allocation2 + $0x99] sm:$0xff] %vm801_vm2, %v2734_v22  ;;  %v2720_v23 = vmax.f32 %v2668_v35, %v2670_v13 }
 0x291   : > { %2744 = vst.msk [vmem:[#allocation2 + $0xa8] sm:$0x1] %vm811_vm3, %v5442_v40  ;;  %v2735_v47 = vmax.f32 %v2719_v17, %v2703_v20  ;;  %v3092_v40 = vld [vmem:[%s5397_s10] ss:$0 sm:$0xff] }
 0x292   : > { %v491_v31 = vadd.f32 %v3092_v40, %v5449_v3  ;;  %v494_v14 = vadd.f32 %v3092_v40, %v5450_v42 }
 0x293   : > { %v2704_v27 = vld [vmem:[#allocation2 + $0xb0] sm:$0xff] }
 0x294   : > { %v2736_v46 = vmax.f32 %v2720_v23, %v2704_v27  ;;  %2759 = vst.msk [vmem:[#allocation2 + $0xa9] sm:$0xff] %vm801_vm2, %v2735_v47 }
 0x296   : > { %2760 = vst.msk [vmem:[#allocation2 + $0xb1] sm:$0xff] %vm801_vm2, %v2736_v46 }
 0x297   : > { %v2773_v37 = vld [vmem:[#allocation2 + $0x90] ss:$2 sm:$0xff]  ;;  %v2789_v1 = vld [vmem:[#allocation2 + $0x91] ss:$2 sm:$0xff] }
 0x298   : > { %v2798_v9 = vmax.f32 %v2773_v37, %v2789_v1  ;;  %v2813_v59 = vld [vmem:[#allocation2 + $0x92] ss:$2 sm:$0xff] }
 0x29a   : > { %v2822_v36 = vmax.f32 %v2798_v9, %v2813_v59 }
 0x29c   : > { %v2830_v43 = vadd.f32 %v2822_v36, %v491_v31 }
 0x29d   : > { %v2775_v41 = vld [vmem:[#allocation2 + $0xa8] ss:$2 sm:$0xff]  ;;  %v2791_v61 = vld [vmem:[#allocation2 + $0xa9] ss:$2 sm:$0xff] }
 0x29e   : > { %v2799_v48 = vmax.f32 %v2775_v41, %v2791_v61  ;;  %2838 = vst.msk [vmem:[%s4678_s21 + $0x30] sm:$0xff] %vm801_vm2, %v2830_v43  ;;  %v2815_v33 = vld [vmem:[#allocation2 + $0xaa] ss:$2 sm:$0xff] }
 0x2a0   : > { %v2823_v12 = vmax.f32 %v2799_v48, %v2815_v33 }
 0x2a2   : > { %v2831_v44 = vadd.f32 %v2823_v12, %v494_v14 }
 0x2a4   : > { %2839 = vst.msk [vmem:[%s4678_s21 + $0x38] sm:$0xff] %vm801_vm2, %v2831_v44 }
 0x2a5 PF: > { %s21_s17 = sadd.s32 1, %s3099_s17  }
 0x2a6   : > { %p18_p4 = scmp.ge.s32.totalorder %s21_s17, 4  }
 0x2a8   :  { %20 = sbr.rel (!%p18_p4) target bundleno = 1 (0x1), region = 126 }

</bundles_post_ra>
